<compile_context>
chip_gen: v7x
topology: tpu7x:2x2x1
jax: 0.10.0
libtpu: 0.0.40
codegen_flags: <defaults>
</compile_context>

<pallas_src>
import math
import functools

import jax
import jax.numpy as jnp
from jax.experimental import pallas as pl
from jax.experimental.pallas import tpu as pltpu

LN_EPS = 1e-5          # torch.nn.LayerNorm default
NEG_BIG = -1e30        # finite "minus infinity" for masking (NaN-safe)


# ----------------------------- in-kernel helpers -----------------------------

def _layernorm(x, g, b):
    # f32 statistics.
    mu = jnp.mean(x, axis=-1, keepdims=True)
    xc = x - mu
    var = jnp.mean(xc * xc, axis=-1, keepdims=True)
    return xc * jax.lax.rsqrt(var + LN_EPS) * g + b


def _gelu_tanh(x):
    # tanh-GELU: tanh lowers to the EUP slot instead of a long VALU polynomial.
    # (Approximation of torch's exact erf-GELU; well inside the test tolerance.)
    c = math.sqrt(2.0 / math.pi)
    return 0.5 * x * (1.0 + jnp.tanh(c * (x + 0.044715 * x * x * x)))


# ------------------------------ transformer block -----------------------------

def block_kernel(n_heads,
                 x_ref, bias_ref, g1_ref, b1_ref,
                 wqkv_ref, wo_ref, bo_ref,
                 g2_ref, b2_ref, w1_ref, bb1_ref, w2_ref, bb2_ref,
                 out_ref):
    x = x_ref[...]                                    # (N, C) f32 residual stream
    N, C = x.shape
    hs = C // n_heads
    scale = 1.0 / math.sqrt(hs)

    # ---- x + attention(ln1(x)) ----
    h = _layernorm(x, g1_ref[...], b1_ref[...]).astype(jnp.bfloat16)
    qkv = jnp.dot(h, wqkv_ref[...], preferred_element_type=jnp.float32)   # (N, 3C)
    q, k, v = qkv[:, 0:C], qkv[:, C:2 * C], qkv[:, 2 * C:3 * C]

    # head-batched layout (H, N, hs)
    qh = jnp.stack([q[:, i * hs:(i + 1) * hs] for i in range(n_heads)], axis=0)
    kh = jnp.stack([k[:, i * hs:(i + 1) * hs] for i in range(n_heads)], axis=0)
    vh = jnp.stack([v[:, i * hs:(i + 1) * hs] for i in range(n_heads)], axis=0)
    qh = qh.astype(jnp.bfloat16)
    kh = kh.astype(jnp.bfloat16)
    vh = vh.astype(jnp.bfloat16)

    # batched scores over heads; block-diagonal causal bias handles batch+causal
    s = jnp.einsum('hqd,hkd->hqk', qh, kh,
                   preferred_element_type=jnp.float32) * scale            # (H, N, N)
    s = s + bias_ref[...][None, :, :]
    m = jnp.max(s, axis=-1, keepdims=True)
    p = jnp.exp(s - m)
    w = p / jnp.sum(p, axis=-1, keepdims=True)
    # TODO(synk): nn.Dropout on attention weights / projections is a no-op here
    # (config.dropout = 0.0, i.e. eval semantics).
    ctx = jnp.einsum('hqk,hkd->hqd', w.astype(jnp.bfloat16), vh,
                     preferred_element_type=jnp.float32)                  # (H, N, hs)

    # concat heads once -> single K=C output projection
    ctx_cat = jnp.concatenate([ctx[i] for i in range(n_heads)],
                              axis=-1).astype(jnp.bfloat16)               # (N, C)
    attn = jnp.dot(ctx_cat, wo_ref[...],
                   preferred_element_type=jnp.float32) + bo_ref[...]
    x = x + attn

    # ---- x + mlp(ln2(x)) ----
    h2 = _layernorm(x, g2_ref[...], b2_ref[...]).astype(jnp.bfloat16)
    m1 = jnp.dot(h2, w1_ref[...], preferred_element_type=jnp.float32) + bb1_ref[...]
    g = _gelu_tanh(m1).astype(jnp.bfloat16)
    m2 = jnp.dot(g, w2_ref[...], preferred_element_type=jnp.float32) + bb2_ref[...]
    out_ref[...] = x + m2


def run_block(x, bias, p, n_heads):
    """x: (N, C) f32, bias: (N, N) f32 additive causal mask."""
    N, C = x.shape

    def full(a):
        shape = a.shape
        return pl.BlockSpec(shape, lambda i, _n=len(shape): (0,) * _n)

    args = [x, bias, p['ln1_g'], p['ln1_b'],
            p['wqkv'], p['wo'], p['bo'],
            p['ln2_g'], p['ln2_b'], p['w1'], p['b1'], p['w2'], p['b2']]

    # Whole batch in one grid step; weights fully resident in VMEM.
    # TODO(synk): at production sizes (large C / T) tile the MLP over 4C and use
    # pl.Buffered(1) / vmem_limit_bytes to stay inside v7x's 64 MiB VMEM.
    return pl.pallas_call(
        functools.partial(block_kernel, n_heads),
        out_shape=jax.ShapeDtypeStruct((N, C), jnp.float32),
        grid=(1,),
        in_specs=[full(a) for a in args],
        out_specs=pl.BlockSpec((N, C), lambda i: (0, 0)),
        compiler_params=pltpu.CompilerParams(
            dimension_semantics=("arbitrary",)),
    )(*args)


# -------------------- final LN + vocab projection + cross-entropy -------------------

def final_kernel(n_tokens, v_tile,
                 x_ref, g_ref, b_ref, tgt_ref, wp_ref, bp_ref,
                 logits_ref, loss_ref,
                 hn_ref, m_ref, l_ref, p_ref):
    j = pl.program_id(0)

    @pl.when(j == 0)
    def _():
        hn_ref[...] = _layernorm(x_ref[...], g_ref[...],
                                 b_ref[...]).astype(jnp.bfloat16)
        m_ref[...] = jnp.full_like(m_ref, NEG_BIG)
        l_ref[...] = jnp.zeros_like(l_ref)
        p_ref[...] = jnp.zeros_like(p_ref)

    # (N, v_tile) logits tile — lane-dense 128-wide stores
    logits = jnp.dot(hn_ref[...], wp_ref[...],
                     preferred_element_type=jnp.float32) + bp_ref[...]
    logits_ref[...] = logits

    # online logsumexp across vocab tiles
    m_prev = m_ref[...]
    m_new = jnp.maximum(m_prev, jnp.max(logits, axis=-1, keepdims=True))
    l_ref[...] = (l_ref[...] * jnp.exp(m_prev - m_new)
                  + jnp.sum(jnp.exp(logits - m_new), axis=-1, keepdims=True))
    m_ref[...] = m_new

    # pick the target logit from int32 targets (no one-hot input)
    vidx = j * v_tile + jax.lax.broadcasted_iota(jnp.int32, logits.shape, 1)
    hit = vidx == tgt_ref[...]                                   # (N, v_tile)
    p_ref[...] = p_ref[...] + jnp.sum(jnp.where(hit, logits, 0.0),
                                      axis=-1, keepdims=True)

    @pl.when(j == pl.num_programs(0) - 1)
    def _():
        lse = m_ref[...] + jnp.log(l_ref[...])                   # (N, 1)
        loss_ref[...] = jnp.sum(lse - p_ref[...], keepdims=True) / n_tokens


def run_final(x, g, b, wp, bp, tgt):
    """x: (N, C) f32, wp: (C, V) bf16, tgt: (N, 1) int32."""
    N, C = x.shape
    V = wp.shape[1]
    v_tile = 128 if V % 128 == 0 else V
    n_vt = V // v_tile

    logits, loss = pl.pallas_call(
        functools.partial(final_kernel, float(N), v_tile),
        out_shape=(jax.ShapeDtypeStruct((N, V), jnp.float32),
                   jax.ShapeDtypeStruct((1, 1), jnp.float32)),
        grid=(n_vt,),
        in_specs=[
            pl.BlockSpec((N, C), lambda j: (0, 0)),
            pl.BlockSpec((1, C), lambda j: (0, 0)),
            pl.BlockSpec((1, C), lambda j: (0, 0)),
            pl.BlockSpec((N, 1), lambda j: (0, 0)),
            pl.BlockSpec((C, v_tile), lambda j: (0, j)),
            pl.BlockSpec((1, v_tile), lambda j: (0, j)),
        ],
        out_specs=(pl.BlockSpec((N, v_tile), lambda j: (0, j)),
                   pl.BlockSpec((1, 1), lambda j: (0, 0))),
        scratch_shapes=[
            pltpu.VMEM((N, C), jnp.bfloat16),   # ln(x), computed once
            pltpu.VMEM((N, 1), jnp.float32),    # running max
            pltpu.VMEM((N, 1), jnp.float32),    # running sum-exp
            pltpu.VMEM((N, 1), jnp.float32),    # picked target logit
        ],
        compiler_params=pltpu.CompilerParams(
            dimension_semantics=("arbitrary",)),
    )(x, g, b, tgt, wp, bp)
    return logits, loss


# --------------------------------- full model ---------------------------------

def _attn_bias(B, T):
    """(B*T, B*T) additive bias: 0 where same-batch & causal, NEG_BIG otherwise."""
    n = B * T
    r = jnp.arange(n)
    same = (r[:, None] // T) == (r[None, :] // T)
    causal = (r[None, :] % T) <= (r[:, None] % T)
    return jnp.where(same & causal, 0.0, NEG_BIG).astype(jnp.float32)


def gpt_forward(params, tokens, targets, n_heads):
    B, T = tokens.shape
    C = params['wte'].shape[1]
    V = params['wp'].shape[1]
    N = B * T

    # embedding gathers are plain-JAX glue
    x = (jnp.take(params['wte'], tokens, axis=0)
         + params['wpe'][:T][None, :, :]).reshape(N, C)
    bias = _attn_bias(B, T)

    for p in params['blocks']:
        x = run_block(x, bias, p, n_heads)

    tgt = targets.reshape(N, 1).astype(jnp.int32)
    logits, loss = run_final(x, params['lnf_g'], params['lnf_b'],
                             params['wp'], params['bp'], tgt)
    return logits.reshape(B, T, V), loss[0, 0]


def init_params(key, cfg):
    V, C = cfg['vocab_size'], cfg['n_embed']
    L, BS = cfg['n_layers'], cfg['block_size']

    def norm(k, shape, dtype=jnp.float32):
        return (0.02 * jax.random.normal(k, shape, jnp.float32)).astype(dtype)

    keys = jax.random.split(key, 3 + L)
    params = {
        'wte': norm(keys[0], (V, C)),
        'wpe': norm(keys[1], (BS, C)),
        'lnf_g': jnp.ones((1, C), jnp.float32),
        'lnf_b': jnp.zeros((1, C), jnp.float32),
        'wp': norm(keys[2], (C, V), jnp.bfloat16),     # matmul weights in bf16
        'bp': jnp.zeros((1, V), jnp.float32),
        'blocks': [],
    }
    for l in range(L):
        ks = jax.random.split(keys[3 + l], 6)
        wq, wk, wv = norm(ks[0], (C, C)), norm(ks[1], (C, C)), norm(ks[2], (C, C))
        params['blocks'].append({
            'ln1_g': jnp.ones((1, C), jnp.float32),
            'ln1_b': jnp.zeros((1, C), jnp.float32),
            'wqkv': jnp.concatenate([wq, wk, wv], axis=1).astype(jnp.bfloat16),
            'wo': norm(ks[3], (C, C), jnp.bfloat16),
            'bo': jnp.zeros((1, C), jnp.float32),
            'ln2_g': jnp.ones((1, C), jnp.float32),
            'ln2_b': jnp.zeros((1, C), jnp.float32),
            'w1': norm(ks[4], (C, 4 * C), jnp.bfloat16),
            'b1': jnp.zeros((1, 4 * C), jnp.float32),
            'w2': norm(ks[5], (4 * C, C), jnp.bfloat16),
            'b2': jnp.zeros((1, C), jnp.float32),
        })
    return params


# ------------------------------ plain-JAX reference ---------------------------

def ref_forward(params, tokens, targets, n_heads):
    B, T = tokens.shape
    x = jnp.take(params['wte'], tokens, axis=0) + params['wpe'][:T][None]

    def ln(y, g, b):
        mu = y.mean(-1, keepdims=True)
        var = ((y - mu) ** 2).mean(-1, keepdims=True)
        return (y - mu) / jnp.sqrt(var + LN_EPS) * g + b

    for p in params['blocks']:
        C = x.shape[-1]
        hs = C // n_heads
        wqkv = p['wqkv'].astype(jnp.float32)
        h = ln(x, p['ln1_g'], p['ln1_b'])
        q = (h @ wqkv[:, 0:C]).reshape(B, T, n_heads, hs).transpose(0, 2, 1, 3)
        k = (h @ wqkv[:, C:2 * C]).reshape(B, T, n_heads, hs).transpose(0, 2, 1, 3)
        v = (h @ wqkv[:, 2 * C:3 * C]).reshape(B, T, n_heads, hs).transpose(0, 2, 1, 3)
        scores = jnp.einsum('bhqd,bhkd->bhqk', q, k) / math.sqrt(hs)
        mask = jnp.tril(jnp.ones((T, T), bool))
        scores = jnp.where(mask, scores, -jnp.inf)
        w = jax.nn.softmax(scores, axis=-1)
        o = jnp.einsum('bhqk,bhkd->bhqd', w, v).transpose(0, 2, 1, 3).reshape(B, T, C)
        x = x + (o @ p['wo'].astype(jnp.float32) + p['bo'])
        h2 = ln(x, p['ln2_g'], p['ln2_b'])
        m1 = h2 @ p['w1'].astype(jnp.float32) + p['b1']
        g = 0.5 * m1 * (1.0 + jax.scipy.special.erf(m1 / math.sqrt(2.0)))
        x = x + (g @ p['w2'].astype(jnp.float32) + p['b2'])
    x = ln(x, params['lnf_g'], params['lnf_b'])
    logits = x @ params['wp'].astype(jnp.float32) + params['bp']
    logp = jax.nn.log_softmax(logits, axis=-1)
    nll = -jnp.take_along_axis(logp, targets[..., None], axis=-1)
    return logits, nll.mean()


# ------------------------------------ main -------------------------------------

if __name__ == "__main__":
    # (8,128)-aligned toy config: C and V multiples of 128, B*T multiple of 8.
    cfg = dict(vocab_size=256, block_size=16, n_embed=128,
               n_heads=4, n_layers=2, dropout=0.0)
    key = jax.random.PRNGKey(0)
    pkey, tkey, ykey = jax.random.split(key, 3)
    params = init_params(pkey, cfg)

    B, T = 2, 8
    tokens = jax.random.randint(tkey, (B, T), 0, cfg['vocab_size'], jnp.int32)
    targets = jax.random.randint(ykey, (B, T), 0, cfg['vocab_size'], jnp.int32)

    fwd = jax.jit(functools.partial(gpt_forward, n_heads=cfg['n_heads']))
    logits, loss = fwd(params, tokens, targets)
    jax.block_until_ready((logits, loss))

    ref_logits, ref_loss = ref_forward(params, tokens, targets, cfg['n_heads'])
    assert logits.shape == (B, T, cfg['vocab_size'])
    # bf16 matmul inputs + tanh-GELU vs f32/erf reference -> slightly relaxed tol.
    assert jnp.allclose(logits, ref_logits, atol=2e-2, rtol=2e-2)
    assert jnp.allclose(loss, ref_loss, atol=2e-2, rtol=2e-2)
    print("KERNEL_OK")
</pallas_src>

<mosaic_0001>
module attributes {stable_mosaic.version = 11 : i64} {
  func.func @block_kernel(%arg0: i32, %arg1: memref<16x128xf32, #tpu.memory_space<vmem>>, %arg2: memref<16x16xf32, #tpu.memory_space<vmem>>, %arg3: memref<1x128xf32, #tpu.memory_space<vmem>>, %arg4: memref<1x128xf32, #tpu.memory_space<vmem>>, %arg5: memref<128x384xbf16, #tpu.memory_space<vmem>>, %arg6: memref<128x128xbf16, #tpu.memory_space<vmem>>, %arg7: memref<1x128xf32, #tpu.memory_space<vmem>>, %arg8: memref<1x128xf32, #tpu.memory_space<vmem>>, %arg9: memref<1x128xf32, #tpu.memory_space<vmem>>, %arg10: memref<128x512xbf16, #tpu.memory_space<vmem>>, %arg11: memref<1x512xf32, #tpu.memory_space<vmem>>, %arg12: memref<512x128xbf16, #tpu.memory_space<vmem>>, %arg13: memref<1x128xf32, #tpu.memory_space<vmem>>, %arg14: memref<16x128xf32, #tpu.memory_space<vmem>>) attributes {dimension_semantics = [#tpu.dimension_semantics<arbitrary>], iteration_bounds = array<i64: 1>, scalar_prefetch = 0 : i64, scratch_operands = 0 : i64, tpu.core_type = #tpu.core_type<tc>, window_params = [{pipeline_mode = #tpu.pipeline_mode<synchronous>, transform_indices = @transform_0, window_bounds = array<i64: 16, 128>}, {pipeline_mode = #tpu.pipeline_mode<synchronous>, transform_indices = @transform_1, window_bounds = array<i64: 16, 16>}, {pipeline_mode = #tpu.pipeline_mode<synchronous>, transform_indices = @transform_2, window_bounds = array<i64: 1, 128>}, {pipeline_mode = #tpu.pipeline_mode<synchronous>, transform_indices = @transform_3, window_bounds = array<i64: 1, 128>}, {pipeline_mode = #tpu.pipeline_mode<synchronous>, transform_indices = @transform_4, window_bounds = array<i64: 128, 384>}, {pipeline_mode = #tpu.pipeline_mode<synchronous>, transform_indices = @transform_5, window_bounds = array<i64: 128, 128>}, {pipeline_mode = #tpu.pipeline_mode<synchronous>, transform_indices = @transform_6, window_bounds = array<i64: 1, 128>}, {pipeline_mode = #tpu.pipeline_mode<synchronous>, transform_indices = @transform_7, window_bounds = array<i64: 1, 128>}, {pipeline_mode = #tpu.pipeline_mode<synchronous>, transform_indices = @transform_8, window_bounds = array<i64: 1, 128>}, {pipeline_mode = #tpu.pipeline_mode<synchronous>, transform_indices = @transform_9, window_bounds = array<i64: 128, 512>}, {pipeline_mode = #tpu.pipeline_mode<synchronous>, transform_indices = @transform_10, window_bounds = array<i64: 1, 512>}, {pipeline_mode = #tpu.pipeline_mode<synchronous>, transform_indices = @transform_11, window_bounds = array<i64: 512, 128>}, {pipeline_mode = #tpu.pipeline_mode<synchronous>, transform_indices = @transform_12, window_bounds = array<i64: 1, 128>}, {pipeline_mode = #tpu.pipeline_mode<synchronous>, transform_indices = @transform_13, window_bounds = array<i64: 16, 128>}]} {
    %c0 = arith.constant 0 : index
    %c0_0 = arith.constant 0 : index
    %0 = vector.load %arg1[%c0, %c0_0] : memref<16x128xf32, #tpu.memory_space<vmem>>, vector<16x128xf32>
    %c0_1 = arith.constant 0 : index
    %c0_2 = arith.constant 0 : index
    %1 = vector.load %arg3[%c0_1, %c0_2] : memref<1x128xf32, #tpu.memory_space<vmem>>, vector<1x128xf32>
    %c0_3 = arith.constant 0 : index
    %c0_4 = arith.constant 0 : index
    %2 = vector.load %arg4[%c0_3, %c0_4] : memref<1x128xf32, #tpu.memory_space<vmem>>, vector<1x128xf32>
    %cst = arith.constant dense<0.000000e+00> : vector<16xf32>
    %3 = vector.multi_reduction <add>, %0, %cst [1] : vector<16x128xf32> to vector<16xf32>
    %4 = vector.shape_cast %3 : vector<16xf32> to vector<16x1xf32>
    %cst_5 = arith.constant 1.280000e+02 : f32
    %5 = vector.broadcast %cst_5 : f32 to vector<16x1xf32>
    %6 = arith.divf %4, %5 : vector<16x1xf32>
    %7 = vector.broadcast %6 : vector<16x1xf32> to vector<16x128xf32>
    %8 = arith.subf %0, %7 : vector<16x128xf32>
    %9 = arith.mulf %8, %8 : vector<16x128xf32>
    %cst_6 = arith.constant dense<0.000000e+00> : vector<16xf32>
    %10 = vector.multi_reduction <add>, %9, %cst_6 [1] : vector<16x128xf32> to vector<16xf32>
    %11 = vector.shape_cast %10 : vector<16xf32> to vector<16x1xf32>
    %cst_7 = arith.constant 1.280000e+02 : f32
    %12 = vector.broadcast %cst_7 : f32 to vector<16x1xf32>
    %13 = arith.divf %11, %12 : vector<16x1xf32>
    %cst_8 = arith.constant 9.99999974E-6 : f32
    %14 = vector.broadcast %cst_8 : f32 to vector<16x1xf32>
    %15 = arith.addf %13, %14 : vector<16x1xf32>
    %16 = math.rsqrt %15 : vector<16x1xf32>
    %17 = vector.broadcast %16 : vector<16x1xf32> to vector<16x128xf32>
    %18 = arith.mulf %8, %17 : vector<16x128xf32>
    %19 = vector.broadcast %1 : vector<1x128xf32> to vector<16x128xf32>
    %20 = arith.mulf %18, %19 : vector<16x128xf32>
    %21 = vector.broadcast %2 : vector<1x128xf32> to vector<16x128xf32>
    %22 = arith.addf %20, %21 : vector<16x128xf32>
    %23 = arith.truncf %22 : vector<16x128xf32> to vector<16x128xbf16>
    %c0_9 = arith.constant 0 : index
    %c0_10 = arith.constant 0 : index
    %24 = vector.load %arg5[%c0_9, %c0_10] : memref<128x384xbf16, #tpu.memory_space<vmem>>, vector<128x384xbf16>
    %cst_11 = arith.constant dense<0.000000e+00> : vector<16x384xf32>
    %25 = tpu.matmul %23, %24, %cst_11 {dimension_numbers = #tpu.dot_dimension_numbers<[1], [0], [0], [1], [0, 0, 1, 1], [], []>} : vector<16x128xbf16>, vector<128x384xbf16>, vector<16x384xf32> -> vector<16x384xf32>
    %26 = vector.extract_strided_slice %25 {offsets = [0, 0], sizes = [16, 128], strides = [1, 1]} : vector<16x384xf32> to vector<16x128xf32>
    %27 = vector.extract_strided_slice %25 {offsets = [0, 128], sizes = [16, 128], strides = [1, 1]} : vector<16x384xf32> to vector<16x128xf32>
    %28 = vector.extract_strided_slice %25 {offsets = [0, 256], sizes = [16, 128], strides = [1, 1]} : vector<16x384xf32> to vector<16x128xf32>
    %29 = vector.extract_strided_slice %26 {offsets = [0, 0], sizes = [16, 32], strides = [1, 1]} : vector<16x128xf32> to vector<16x32xf32>
    %30 = vector.extract_strided_slice %26 {offsets = [0, 32], sizes = [16, 32], strides = [1, 1]} : vector<16x128xf32> to vector<16x32xf32>
    %31 = vector.extract_strided_slice %26 {offsets = [0, 64], sizes = [16, 32], strides = [1, 1]} : vector<16x128xf32> to vector<16x32xf32>
    %32 = vector.extract_strided_slice %26 {offsets = [0, 96], sizes = [16, 32], strides = [1, 1]} : vector<16x128xf32> to vector<16x32xf32>
    %33 = vector.shape_cast %29 : vector<16x32xf32> to vector<1x16x32xf32>
    %34 = vector.shape_cast %30 : vector<16x32xf32> to vector<1x16x32xf32>
    %35 = vector.shape_cast %31 : vector<16x32xf32> to vector<1x16x32xf32>
    %36 = vector.shape_cast %32 : vector<16x32xf32> to vector<1x16x32xf32>
    %37 = tpu.concatenate %33, %34, %35, %36 in 0 : vector<1x16x32xf32>, vector<1x16x32xf32>, vector<1x16x32xf32>, vector<1x16x32xf32> -> vector<4x16x32xf32>
    %38 = vector.extract_strided_slice %27 {offsets = [0, 0], sizes = [16, 32], strides = [1, 1]} : vector<16x128xf32> to vector<16x32xf32>
    %39 = vector.extract_strided_slice %27 {offsets = [0, 32], sizes = [16, 32], strides = [1, 1]} : vector<16x128xf32> to vector<16x32xf32>
    %40 = vector.extract_strided_slice %27 {offsets = [0, 64], sizes = [16, 32], strides = [1, 1]} : vector<16x128xf32> to vector<16x32xf32>
    %41 = vector.extract_strided_slice %27 {offsets = [0, 96], sizes = [16, 32], strides = [1, 1]} : vector<16x128xf32> to vector<16x32xf32>
    %42 = vector.shape_cast %38 : vector<16x32xf32> to vector<1x16x32xf32>
    %43 = vector.shape_cast %39 : vector<16x32xf32> to vector<1x16x32xf32>
    %44 = vector.shape_cast %40 : vector<16x32xf32> to vector<1x16x32xf32>
    %45 = vector.shape_cast %41 : vector<16x32xf32> to vector<1x16x32xf32>
    %46 = tpu.concatenate %42, %43, %44, %45 in 0 : vector<1x16x32xf32>, vector<1x16x32xf32>, vector<1x16x32xf32>, vector<1x16x32xf32> -> vector<4x16x32xf32>
    %47 = vector.extract_strided_slice %28 {offsets = [0, 0], sizes = [16, 32], strides = [1, 1]} : vector<16x128xf32> to vector<16x32xf32>
    %48 = vector.extract_strided_slice %28 {offsets = [0, 32], sizes = [16, 32], strides = [1, 1]} : vector<16x128xf32> to vector<16x32xf32>
    %49 = vector.extract_strided_slice %28 {offsets = [0, 64], sizes = [16, 32], strides = [1, 1]} : vector<16x128xf32> to vector<16x32xf32>
    %50 = vector.extract_strided_slice %28 {offsets = [0, 96], sizes = [16, 32], strides = [1, 1]} : vector<16x128xf32> to vector<16x32xf32>
    %51 = vector.shape_cast %47 : vector<16x32xf32> to vector<1x16x32xf32>
    %52 = vector.shape_cast %48 : vector<16x32xf32> to vector<1x16x32xf32>
    %53 = vector.shape_cast %49 : vector<16x32xf32> to vector<1x16x32xf32>
    %54 = vector.shape_cast %50 : vector<16x32xf32> to vector<1x16x32xf32>
    %55 = tpu.concatenate %51, %52, %53, %54 in 0 : vector<1x16x32xf32>, vector<1x16x32xf32>, vector<1x16x32xf32>, vector<1x16x32xf32> -> vector<4x16x32xf32>
    %56 = arith.truncf %37 : vector<4x16x32xf32> to vector<4x16x32xbf16>
    %57 = arith.truncf %46 : vector<4x16x32xf32> to vector<4x16x32xbf16>
    %58 = arith.truncf %55 : vector<4x16x32xf32> to vector<4x16x32xbf16>
    "tpu.trace_start"() <{level = 10 : i32, message = "hqd,hkd->hqk"}> : () -> ()
    %cst_12 = arith.constant dense<0.000000e+00> : vector<4x16x16xf32>
    %59 = tpu.matmul %56, %57, %cst_12 {dimension_numbers = #tpu.dot_dimension_numbers<[2], [2], [1], [1], [0, 0, 0, 1, 1, 1], [0], [0]>} : vector<4x16x32xbf16>, vector<4x16x32xbf16>, vector<4x16x16xf32> -> vector<4x16x16xf32>
    "tpu.trace_stop"() : () -> ()
    %cst_13 = arith.constant 0.176776692 : f32
    %60 = vector.broadcast %cst_13 : f32 to vector<4x16x16xf32>
    %61 = arith.mulf %59, %60 : vector<4x16x16xf32>
    %c0_14 = arith.constant 0 : index
    %c0_15 = arith.constant 0 : index
    %62 = vector.load %arg2[%c0_14, %c0_15] : memref<16x16xf32, #tpu.memory_space<vmem>>, vector<16x16xf32>
    %63 = vector.shape_cast %62 : vector<16x16xf32> to vector<1x16x16xf32>
    %64 = vector.broadcast %63 : vector<1x16x16xf32> to vector<4x16x16xf32>
    %65 = arith.addf %61, %64 : vector<4x16x16xf32>
    %cst_16 = arith.constant dense<0xFF800000> : vector<4x16xf32>
    %66 = vector.multi_reduction <maximumf>, %65, %cst_16 [2] : vector<4x16x16xf32> to vector<4x16xf32>
    %67 = vector.shape_cast %66 : vector<4x16xf32> to vector<4x16x1xf32>
    %68 = vector.broadcast %67 : vector<4x16x1xf32> to vector<4x16x16xf32>
    %69 = arith.subf %65, %68 : vector<4x16x16xf32>
    %70 = math.exp %69 : vector<4x16x16xf32>
    %cst_17 = arith.constant dense<0.000000e+00> : vector<4x16xf32>
    %71 = vector.multi_reduction <add>, %70, %cst_17 [2] : vector<4x16x16xf32> to vector<4x16xf32>
    %72 = vector.shape_cast %71 : vector<4x16xf32> to vector<4x16x1xf32>
    %73 = vector.broadcast %72 : vector<4x16x1xf32> to vector<4x16x16xf32>
    %74 = arith.divf %70, %73 : vector<4x16x16xf32>
    %75 = arith.truncf %74 : vector<4x16x16xf32> to vector<4x16x16xbf16>
    "tpu.trace_start"() <{level = 10 : i32, message = "hqk,hkd->hqd"}> : () -> ()
    %cst_18 = arith.constant dense<0.000000e+00> : vector<4x16x32xf32>
    %76 = tpu.matmul %75, %58, %cst_18 {dimension_numbers = #tpu.dot_dimension_numbers<[2], [1], [1], [2], [0, 0, 0, 1, 1, 2], [0], [0]>} : vector<4x16x16xbf16>, vector<4x16x32xbf16>, vector<4x16x32xf32> -> vector<4x16x32xf32>
    "tpu.trace_stop"() : () -> ()
    %77 = vector.extract_strided_slice %76 {offsets = [0, 0, 0], sizes = [1, 16, 32], strides = [1, 1, 1]} : vector<4x16x32xf32> to vector<1x16x32xf32>
    %78 = vector.shape_cast %77 : vector<1x16x32xf32> to vector<16x32xf32>
    %79 = vector.extract_strided_slice %76 {offsets = [1, 0, 0], sizes = [1, 16, 32], strides = [1, 1, 1]} : vector<4x16x32xf32> to vector<1x16x32xf32>
    %80 = vector.shape_cast %79 : vector<1x16x32xf32> to vector<16x32xf32>
    %81 = vector.extract_strided_slice %76 {offsets = [2, 0, 0], sizes = [1, 16, 32], strides = [1, 1, 1]} : vector<4x16x32xf32> to vector<1x16x32xf32>
    %82 = vector.shape_cast %81 : vector<1x16x32xf32> to vector<16x32xf32>
    %83 = vector.extract_strided_slice %76 {offsets = [3, 0, 0], sizes = [1, 16, 32], strides = [1, 1, 1]} : vector<4x16x32xf32> to vector<1x16x32xf32>
    %84 = vector.shape_cast %83 : vector<1x16x32xf32> to vector<16x32xf32>
    %85 = tpu.concatenate %78, %80, %82, %84 in 1 : vector<16x32xf32>, vector<16x32xf32>, vector<16x32xf32>, vector<16x32xf32> -> vector<16x128xf32>
    %86 = arith.truncf %85 : vector<16x128xf32> to vector<16x128xbf16>
    %c0_19 = arith.constant 0 : index
    %c0_20 = arith.constant 0 : index
    %87 = vector.load %arg6[%c0_19, %c0_20] : memref<128x128xbf16, #tpu.memory_space<vmem>>, vector<128x128xbf16>
    %cst_21 = arith.constant dense<0.000000e+00> : vector<16x128xf32>
    %88 = tpu.matmul %86, %87, %cst_21 {dimension_numbers = #tpu.dot_dimension_numbers<[1], [0], [0], [1], [0, 0, 1, 1], [], []>} : vector<16x128xbf16>, vector<128x128xbf16>, vector<16x128xf32> -> vector<16x128xf32>
    %c0_22 = arith.constant 0 : index
    %c0_23 = arith.constant 0 : index
    %89 = vector.load %arg7[%c0_22, %c0_23] : memref<1x128xf32, #tpu.memory_space<vmem>>, vector<1x128xf32>
    %90 = vector.broadcast %89 : vector<1x128xf32> to vector<16x128xf32>
    %91 = arith.addf %88, %90 : vector<16x128xf32>
    %92 = arith.addf %0, %91 : vector<16x128xf32>
    %c0_24 = arith.constant 0 : index
    %c0_25 = arith.constant 0 : index
    %93 = vector.load %arg8[%c0_24, %c0_25] : memref<1x128xf32, #tpu.memory_space<vmem>>, vector<1x128xf32>
    %c0_26 = arith.constant 0 : index
    %c0_27 = arith.constant 0 : index
    %94 = vector.load %arg9[%c0_26, %c0_27] : memref<1x128xf32, #tpu.memory_space<vmem>>, vector<1x128xf32>
    %cst_28 = arith.constant dense<0.000000e+00> : vector<16xf32>
    %95 = vector.multi_reduction <add>, %92, %cst_28 [1] : vector<16x128xf32> to vector<16xf32>
    %96 = vector.shape_cast %95 : vector<16xf32> to vector<16x1xf32>
    %cst_29 = arith.constant 1.280000e+02 : f32
    %97 = vector.broadcast %cst_29 : f32 to vector<16x1xf32>
    %98 = arith.divf %96, %97 : vector<16x1xf32>
    %99 = vector.broadcast %98 : vector<16x1xf32> to vector<16x128xf32>
    %100 = arith.subf %92, %99 : vector<16x128xf32>
    %101 = arith.mulf %100, %100 : vector<16x128xf32>
    %cst_30 = arith.constant dense<0.000000e+00> : vector<16xf32>
    %102 = vector.multi_reduction <add>, %101, %cst_30 [1] : vector<16x128xf32> to vector<16xf32>
    %103 = vector.shape_cast %102 : vector<16xf32> to vector<16x1xf32>
    %cst_31 = arith.constant 1.280000e+02 : f32
    %104 = vector.broadcast %cst_31 : f32 to vector<16x1xf32>
    %105 = arith.divf %103, %104 : vector<16x1xf32>
    %cst_32 = arith.constant 9.99999974E-6 : f32
    %106 = vector.broadcast %cst_32 : f32 to vector<16x1xf32>
    %107 = arith.addf %105, %106 : vector<16x1xf32>
    %108 = math.rsqrt %107 : vector<16x1xf32>
    %109 = vector.broadcast %108 : vector<16x1xf32> to vector<16x128xf32>
    %110 = arith.mulf %100, %109 : vector<16x128xf32>
    %111 = vector.broadcast %93 : vector<1x128xf32> to vector<16x128xf32>
    %112 = arith.mulf %110, %111 : vector<16x128xf32>
    %113 = vector.broadcast %94 : vector<1x128xf32> to vector<16x128xf32>
    %114 = arith.addf %112, %113 : vector<16x128xf32>
    %115 = arith.truncf %114 : vector<16x128xf32> to vector<16x128xbf16>
    %c0_33 = arith.constant 0 : index
    %c0_34 = arith.constant 0 : index
    %116 = vector.load %arg10[%c0_33, %c0_34] : memref<128x512xbf16, #tpu.memory_space<vmem>>, vector<128x512xbf16>
    %cst_35 = arith.constant dense<0.000000e+00> : vector<16x512xf32>
    %117 = tpu.matmul %115, %116, %cst_35 {dimension_numbers = #tpu.dot_dimension_numbers<[1], [0], [0], [1], [0, 0, 1, 1], [], []>} : vector<16x128xbf16>, vector<128x512xbf16>, vector<16x512xf32> -> vector<16x512xf32>
    %c0_36 = arith.constant 0 : index
    %c0_37 = arith.constant 0 : index
    %118 = vector.load %arg11[%c0_36, %c0_37] : memref<1x512xf32, #tpu.memory_space<vmem>>, vector<1x512xf32>
    %119 = vector.broadcast %118 : vector<1x512xf32> to vector<16x512xf32>
    %120 = arith.addf %117, %119 : vector<16x512xf32>
    %cst_38 = arith.constant 5.000000e-01 : f32
    %121 = vector.broadcast %cst_38 : f32 to vector<16x512xf32>
    %122 = arith.mulf %121, %120 : vector<16x512xf32>
    %cst_39 = arith.constant 4.471500e-02 : f32
    %123 = vector.broadcast %cst_39 : f32 to vector<16x512xf32>
    %124 = arith.mulf %123, %120 : vector<16x512xf32>
    %125 = arith.mulf %124, %120 : vector<16x512xf32>
    %126 = arith.mulf %125, %120 : vector<16x512xf32>
    %127 = arith.addf %120, %126 : vector<16x512xf32>
    %cst_40 = arith.constant 0.797884583 : f32
    %128 = vector.broadcast %cst_40 : f32 to vector<16x512xf32>
    %129 = arith.mulf %128, %127 : vector<16x512xf32>
    %130 = math.tanh %129 : vector<16x512xf32>
    %cst_41 = arith.constant 1.000000e+00 : f32
    %131 = vector.broadcast %cst_41 : f32 to vector<16x512xf32>
    %132 = arith.addf %131, %130 : vector<16x512xf32>
    %133 = arith.mulf %122, %132 : vector<16x512xf32>
    %134 = arith.truncf %133 : vector<16x512xf32> to vector<16x512xbf16>
    %c0_42 = arith.constant 0 : index
    %c0_43 = arith.constant 0 : index
    %135 = vector.load %arg12[%c0_42, %c0_43] : memref<512x128xbf16, #tpu.memory_space<vmem>>, vector<512x128xbf16>
    %cst_44 = arith.constant dense<0.000000e+00> : vector<16x128xf32>
    %136 = tpu.matmul %134, %135, %cst_44 {dimension_numbers = #tpu.dot_dimension_numbers<[1], [0], [0], [1], [0, 0, 1, 1], [], []>} : vector<16x512xbf16>, vector<512x128xbf16>, vector<16x128xf32> -> vector<16x128xf32>
    %c0_45 = arith.constant 0 : index
    %c0_46 = arith.constant 0 : index
    %137 = vector.load %arg13[%c0_45, %c0_46] : memref<1x128xf32, #tpu.memory_space<vmem>>, vector<1x128xf32>
    %138 = vector.broadcast %137 : vector<1x128xf32> to vector<16x128xf32>
    %139 = arith.addf %136, %138 : vector<16x128xf32>
    %140 = arith.addf %92, %139 : vector<16x128xf32>
    %c0_47 = arith.constant 0 : index
    %c0_48 = arith.constant 0 : index
    %141 = vector.load %arg14[%c0_47, %c0_48] : memref<16x128xf32, #tpu.memory_space<vmem>>, vector<16x128xf32>
    tpu.vector_store %arg14[%c0_47, %c0_48], %140 {strides = array<i32>} : memref<16x128xf32, #tpu.memory_space<vmem>>, vector<16x128xf32>,
    return
  }
  func.func @transform_0(%arg0: i32) -> (i32, i32) {
    %c0_i32 = arith.constant 0 : i32
    %c0_i32_0 = arith.constant 0 : i32
    %c0_i32_1 = arith.constant 0 : i32
    return %c0_i32, %c0_i32_0 : i32, i32
  }
  func.func @transform_1(%arg0: i32) -> (i32, i32) {
    %c0_i32 = arith.constant 0 : i32
    %c0_i32_0 = arith.constant 0 : i32
    %c0_i32_1 = arith.constant 0 : i32
    return %c0_i32, %c0_i32_0 : i32, i32
  }
  func.func @transform_2(%arg0: i32) -> (i32, i32) {
    %c0_i32 = arith.constant 0 : i32
    %c0_i32_0 = arith.constant 0 : i32
    %c0_i32_1 = arith.constant 0 : i32
    return %c0_i32, %c0_i32_0 : i32, i32
  }
  func.func @transform_3(%arg0: i32) -> (i32, i32) {
    %c0_i32 = arith.constant 0 : i32
    %c0_i32_0 = arith.constant 0 : i32
    %c0_i32_1 = arith.constant 0 : i32
    return %c0_i32, %c0_i32_0 : i32, i32
  }
  func.func @transform_4(%arg0: i32) -> (i32, i32) {
    %c0_i32 = arith.constant 0 : i32
    %c0_i32_0 = arith.constant 0 : i32
    %c0_i32_1 = arith.constant 0 : i32
    return %c0_i32, %c0_i32_0 : i32, i32
  }
  func.func @transform_5(%arg0: i32) -> (i32, i32) {
    %c0_i32 = arith.constant 0 : i32
    %c0_i32_0 = arith.constant 0 : i32
    %c0_i32_1 = arith.constant 0 : i32
    return %c0_i32, %c0_i32_0 : i32, i32
  }
  func.func @transform_6(%arg0: i32) -> (i32, i32) {
    %c0_i32 = arith.constant 0 : i32
    %c0_i32_0 = arith.constant 0 : i32
    %c0_i32_1 = arith.constant 0 : i32
    return %c0_i32, %c0_i32_0 : i32, i32
  }
  func.func @transform_7(%arg0: i32) -> (i32, i32) {
    %c0_i32 = arith.constant 0 : i32
    %c0_i32_0 = arith.constant 0 : i32
    %c0_i32_1 = arith.constant 0 : i32
    return %c0_i32, %c0_i32_0 : i32, i32
  }
  func.func @transform_8(%arg0: i32) -> (i32, i32) {
    %c0_i32 = arith.constant 0 : i32
    %c0_i32_0 = arith.constant 0 : i32
    %c0_i32_1 = arith.constant 0 : i32
    return %c0_i32, %c0_i32_0 : i32, i32
  }
  func.func @transform_9(%arg0: i32) -> (i32, i32) {
    %c0_i32 = arith.constant 0 : i32
    %c0_i32_0 = arith.constant 0 : i32
    %c0_i32_1 = arith.constant 0 : i32
    return %c0_i32, %c0_i32_0 : i32, i32
  }
  func.func @transform_10(%arg0: i32) -> (i32, i32) {
    %c0_i32 = arith.constant 0 : i32
    %c0_i32_0 = arith.constant 0 : i32
    %c0_i32_1 = arith.constant 0 : i32
    return %c0_i32, %c0_i32_0 : i32, i32
  }
  func.func @transform_11(%arg0: i32) -> (i32, i32) {
    %c0_i32 = arith.constant 0 : i32
    %c0_i32_0 = arith.constant 0 : i32
    %c0_i32_1 = arith.constant 0 : i32
    return %c0_i32, %c0_i32_0 : i32, i32
  }
  func.func @transform_12(%arg0: i32) -> (i32, i32) {
    %c0_i32 = arith.constant 0 : i32
    %c0_i32_0 = arith.constant 0 : i32
    %c0_i32_1 = arith.constant 0 : i32
    return %c0_i32, %c0_i32_0 : i32, i32
  }
  func.func @transform_13(%arg0: i32) -> (i32, i32) {
    %c0_i32 = arith.constant 0 : i32
    %c0_i32_0 = arith.constant 0 : i32
    %c0_i32_1 = arith.constant 0 : i32
    return %c0_i32, %c0_i32_0 : i32, i32
  }
}

module attributes {stable_mosaic.version = 11 : i64} {
  func.func @final_kernel(%arg0: i32, %arg1: memref<16x128xf32, #tpu.memory_space<vmem>>, %arg2: memref<1x128xf32, #tpu.memory_space<vmem>>, %arg3: memref<1x128xf32, #tpu.memory_space<vmem>>, %arg4: memref<16x1xi32, #tpu.memory_space<vmem>>, %arg5: memref<128x128xbf16, #tpu.memory_space<vmem>>, %arg6: memref<1x128xf32, #tpu.memory_space<vmem>>, %arg7: memref<16x128xf32, #tpu.memory_space<vmem>>, %arg8: memref<1x1xf32, #tpu.memory_space<vmem>>, %arg9: memref<16x128xbf16, #tpu.memory_space<vmem>>, %arg10: memref<16x1xf32, #tpu.memory_space<vmem>>, %arg11: memref<16x1xf32, #tpu.memory_space<vmem>>, %arg12: memref<16x1xf32, #tpu.memory_space<vmem>>) attributes {dimension_semantics = [#tpu.dimension_semantics<arbitrary>], iteration_bounds = array<i64: 2>, scalar_prefetch = 0 : i64, scratch_operands = 4 : i64, tpu.core_type = #tpu.core_type<tc>, window_params = [{pipeline_mode = #tpu.pipeline_mode<synchronous>, transform_indices = @transform_0, window_bounds = array<i64: 16, 128>}, {pipeline_mode = #tpu.pipeline_mode<synchronous>, transform_indices = @transform_1, window_bounds = array<i64: 1, 128>}, {pipeline_mode = #tpu.pipeline_mode<synchronous>, transform_indices = @transform_2, window_bounds = array<i64: 1, 128>}, {pipeline_mode = #tpu.pipeline_mode<synchronous>, transform_indices = @transform_3, window_bounds = array<i64: 16, 1>}, {transform_indices = @transform_4, window_bounds = array<i64: 128, 128>}, {transform_indices = @transform_5, window_bounds = array<i64: 1, 128>}, {transform_indices = @transform_6, window_bounds = array<i64: 16, 128>}, {pipeline_mode = #tpu.pipeline_mode<synchronous>, transform_indices = @transform_7, window_bounds = array<i64: 1, 1>}]} {
    %c0_i32 = arith.constant 0 : i32
    %0 = arith.cmpi eq, %arg0, %c0_i32 : i32
    %1 = arith.extui %0 : i1 to i32
    %c0_i32_0 = arith.constant 0 : i32
    %2 = arith.cmpi ne, %1, %c0_i32_0 : i32
    scf.if %2 {
      %c0_27 = arith.constant 0 : index
      %c0_28 = arith.constant 0 : index
      %43 = vector.load %arg1[%c0_27, %c0_28] : memref<16x128xf32, #tpu.memory_space<vmem>>, vector<16x128xf32>
      %c0_29 = arith.constant 0 : index
      %c0_30 = arith.constant 0 : index
      %44 = vector.load %arg2[%c0_29, %c0_30] : memref<1x128xf32, #tpu.memory_space<vmem>>, vector<1x128xf32>
      %c0_31 = arith.constant 0 : index
      %c0_32 = arith.constant 0 : index
      %45 = vector.load %arg3[%c0_31, %c0_32] : memref<1x128xf32, #tpu.memory_space<vmem>>, vector<1x128xf32>
      %cst_33 = arith.constant dense<0.000000e+00> : vector<16xf32>
      %46 = vector.multi_reduction <add>, %43, %cst_33 [1] : vector<16x128xf32> to vector<16xf32>
      %47 = vector.shape_cast %46 : vector<16xf32> to vector<16x1xf32>
      %cst_34 = arith.constant 1.280000e+02 : f32
      %48 = vector.broadcast %cst_34 : f32 to vector<16x1xf32>
      %49 = arith.divf %47, %48 : vector<16x1xf32>
      %50 = vector.broadcast %49 : vector<16x1xf32> to vector<16x128xf32>
      %51 = arith.subf %43, %50 : vector<16x128xf32>
      %52 = arith.mulf %51, %51 : vector<16x128xf32>
      %cst_35 = arith.constant dense<0.000000e+00> : vector<16xf32>
      %53 = vector.multi_reduction <add>, %52, %cst_35 [1] : vector<16x128xf32> to vector<16xf32>
      %54 = vector.shape_cast %53 : vector<16xf32> to vector<16x1xf32>
      %cst_36 = arith.constant 1.280000e+02 : f32
      %55 = vector.broadcast %cst_36 : f32 to vector<16x1xf32>
      %56 = arith.divf %54, %55 : vector<16x1xf32>
      %cst_37 = arith.constant 9.99999974E-6 : f32
      %57 = vector.broadcast %cst_37 : f32 to vector<16x1xf32>
      %58 = arith.addf %56, %57 : vector<16x1xf32>
      %59 = math.rsqrt %58 : vector<16x1xf32>
      %60 = vector.broadcast %59 : vector<16x1xf32> to vector<16x128xf32>
      %61 = arith.mulf %51, %60 : vector<16x128xf32>
      %62 = vector.broadcast %44 : vector<1x128xf32> to vector<16x128xf32>
      %63 = arith.mulf %61, %62 : vector<16x128xf32>
      %64 = vector.broadcast %45 : vector<1x128xf32> to vector<16x128xf32>
      %65 = arith.addf %63, %64 : vector<16x128xf32>
      %66 = arith.truncf %65 : vector<16x128xf32> to vector<16x128xbf16>
      %c0_38 = arith.constant 0 : index
      %c0_39 = arith.constant 0 : index
      %67 = vector.load %arg9[%c0_38, %c0_39] : memref<16x128xbf16, #tpu.memory_space<vmem>>, vector<16x128xbf16>
      tpu.vector_store %arg9[%c0_38, %c0_39], %66 {strides = array<i32>} : memref<16x128xbf16, #tpu.memory_space<vmem>>, vector<16x128xbf16>,
      %cst_40 = arith.constant -1.000000e+30 : f32
      %68 = vector.broadcast %cst_40 : f32 to vector<16x1xf32>
      %c0_41 = arith.constant 0 : index
      %c0_42 = arith.constant 0 : index
      %69 = vector.load %arg10[%c0_41, %c0_42] : memref<16x1xf32, #tpu.memory_space<vmem>>, vector<16x1xf32>
      tpu.vector_store %arg10[%c0_41, %c0_42], %68 {strides = array<i32>} : memref<16x1xf32, #tpu.memory_space<vmem>>, vector<16x1xf32>,
      %cst_43 = arith.constant 0.000000e+00 : f32
      %70 = vector.broadcast %cst_43 : f32 to vector<16x1xf32>
      %c0_44 = arith.constant 0 : index
      %c0_45 = arith.constant 0 : index
      %71 = vector.load %arg11[%c0_44, %c0_45] : memref<16x1xf32, #tpu.memory_space<vmem>>, vector<16x1xf32>
      tpu.vector_store %arg11[%c0_44, %c0_45], %70 {strides = array<i32>} : memref<16x1xf32, #tpu.memory_space<vmem>>, vector<16x1xf32>,
      %cst_46 = arith.constant 0.000000e+00 : f32
      %72 = vector.broadcast %cst_46 : f32 to vector<16x1xf32>
      %c0_47 = arith.constant 0 : index
      %c0_48 = arith.constant 0 : index
      %73 = vector.load %arg12[%c0_47, %c0_48] : memref<16x1xf32, #tpu.memory_space<vmem>>, vector<16x1xf32>
      tpu.vector_store %arg12[%c0_47, %c0_48], %72 {strides = array<i32>} : memref<16x1xf32, #tpu.memory_space<vmem>>, vector<16x1xf32>,
    } else {
    }
    %c0 = arith.constant 0 : index
    %c0_1 = arith.constant 0 : index
    %3 = vector.load %arg9[%c0, %c0_1] : memref<16x128xbf16, #tpu.memory_space<vmem>>, vector<16x128xbf16>
    %c0_2 = arith.constant 0 : index
    %c0_3 = arith.constant 0 : index
    %4 = vector.load %arg5[%c0_2, %c0_3] : memref<128x128xbf16, #tpu.memory_space<vmem>>, vector<128x128xbf16>
    %cst = arith.constant dense<0.000000e+00> : vector<16x128xf32>
    %5 = tpu.matmul %3, %4, %cst {dimension_numbers = #tpu.dot_dimension_numbers<[1], [0], [0], [1], [0, 0, 1, 1], [], []>} : vector<16x128xbf16>, vector<128x128xbf16>, vector<16x128xf32> -> vector<16x128xf32>
    %c0_4 = arith.constant 0 : index
    %c0_5 = arith.constant 0 : index
    %6 = vector.load %arg6[%c0_4, %c0_5] : memref<1x128xf32, #tpu.memory_space<vmem>>, vector<1x128xf32>
    %7 = vector.broadcast %6 : vector<1x128xf32> to vector<16x128xf32>
    %8 = arith.addf %5, %7 : vector<16x128xf32>
    %c0_6 = arith.constant 0 : index
    %c0_7 = arith.constant 0 : index
    %9 = vector.load %arg7[%c0_6, %c0_7] : memref<16x128xf32, #tpu.memory_space<vmem>>, vector<16x128xf32>
    tpu.vector_store %arg7[%c0_6, %c0_7], %8 {strides = array<i32>} : memref<16x128xf32, #tpu.memory_space<vmem>>, vector<16x128xf32>,
    %c0_8 = arith.constant 0 : index
    %c0_9 = arith.constant 0 : index
    %10 = vector.load %arg10[%c0_8, %c0_9] : memref<16x1xf32, #tpu.memory_space<vmem>>, vector<16x1xf32>
    %cst_10 = arith.constant dense<0xFF800000> : vector<16xf32>
    %11 = vector.multi_reduction <maximumf>, %8, %cst_10 [1] : vector<16x128xf32> to vector<16xf32>
    %12 = vector.shape_cast %11 : vector<16xf32> to vector<16x1xf32>
    %13 = arith.maximumf %10, %12 : vector<16x1xf32>
    %c0_11 = arith.constant 0 : index
    %c0_12 = arith.constant 0 : index
    %14 = vector.load %arg11[%c0_11, %c0_12] : memref<16x1xf32, #tpu.memory_space<vmem>>, vector<16x1xf32>
    %15 = arith.subf %10, %13 : vector<16x1xf32>
    %16 = math.exp %15 : vector<16x1xf32>
    %17 = arith.mulf %14, %16 : vector<16x1xf32>
    %18 = vector.broadcast %13 : vector<16x1xf32> to vector<16x128xf32>
    %19 = arith.subf %8, %18 : vector<16x128xf32>
    %20 = math.exp %19 : vector<16x128xf32>
    %cst_13 = arith.constant dense<0.000000e+00> : vector<16xf32>
    %21 = vector.multi_reduction <add>, %20, %cst_13 [1] : vector<16x128xf32> to vector<16xf32>
    %22 = vector.shape_cast %21 : vector<16xf32> to vector<16x1xf32>
    %23 = arith.addf %17, %22 : vector<16x1xf32>
    %c0_14 = arith.constant 0 : index
    %c0_15 = arith.constant 0 : index
    %24 = vector.load %arg11[%c0_14, %c0_15] : memref<16x1xf32, #tpu.memory_space<vmem>>, vector<16x1xf32>
    tpu.vector_store %arg11[%c0_14, %c0_15], %23 {strides = array<i32>} : memref<16x1xf32, #tpu.memory_space<vmem>>, vector<16x1xf32>,
    %c0_16 = arith.constant 0 : index
    %c0_17 = arith.constant 0 : index
    %25 = vector.load %arg10[%c0_16, %c0_17] : memref<16x1xf32, #tpu.memory_space<vmem>>, vector<16x1xf32>
    tpu.vector_store %arg10[%c0_16, %c0_17], %13 {strides = array<i32>} : memref<16x1xf32, #tpu.memory_space<vmem>>, vector<16x1xf32>,
    %c128_i32 = arith.constant 128 : i32
    %26 = arith.muli %arg0, %c128_i32 : i32
    %27 = tpu.iota {dimensions = array<i32: 1>} : vector<16x128xi32>
    %28 = vector.broadcast %26 : i32 to vector<16x128xi32>
    %29 = arith.addi %28, %27 : vector<16x128xi32>
    %c0_18 = arith.constant 0 : index
    %c0_19 = arith.constant 0 : index
    %30 = vector.load %arg4[%c0_18, %c0_19] : memref<16x1xi32, #tpu.memory_space<vmem>>, vector<16x1xi32>
    %31 = vector.broadcast %30 : vector<16x1xi32> to vector<16x128xi32>
    %32 = arith.cmpi eq, %29, %31 : vector<16x128xi32>
    %c0_20 = arith.constant 0 : index
    %c0_21 = arith.constant 0 : index
    %33 = vector.load %arg12[%c0_20, %c0_21] : memref<16x1xf32, #tpu.memory_space<vmem>>, vector<16x1xf32>
    %cst_22 = arith.constant 0.000000e+00 : f32
    %34 = vector.broadcast %cst_22 : f32 to vector<16x128xf32>
    %35 = arith.select %32, %8, %34 : vector<16x128xi1>, vector<16x128xf32>
    %cst_23 = arith.constant dense<0.000000e+00> : vector<16xf32>
    %36 = vector.multi_reduction <add>, %35, %cst_23 [1] : vector<16x128xf32> to vector<16xf32>
    %37 = vector.shape_cast %36 : vector<16xf32> to vector<16x1xf32>
    %38 = arith.addf %33, %37 : vector<16x1xf32>
    %c0_24 = arith.constant 0 : index
    %c0_25 = arith.constant 0 : index
    %39 = vector.load %arg12[%c0_24, %c0_25] : memref<16x1xf32, #tpu.memory_space<vmem>>, vector<16x1xf32>
    tpu.vector_store %arg12[%c0_24, %c0_25], %38 {strides = array<i32>} : memref<16x1xf32, #tpu.memory_space<vmem>>, vector<16x1xf32>,
    %c1_i32 = arith.constant 1 : i32
    %40 = arith.cmpi eq, %arg0, %c1_i32 : i32
    %41 = arith.extui %40 : i1 to i32
    %c0_i32_26 = arith.constant 0 : i32
    %42 = arith.cmpi ne, %41, %c0_i32_26 : i32
    scf.if %42 {
      %c0_27 = arith.constant 0 : index
      %c0_28 = arith.constant 0 : index
      %43 = vector.load %arg10[%c0_27, %c0_28] : memref<16x1xf32, #tpu.memory_space<vmem>>, vector<16x1xf32>
      %c0_29 = arith.constant 0 : index
      %c0_30 = arith.constant 0 : index
      %44 = vector.load %arg11[%c0_29, %c0_30] : memref<16x1xf32, #tpu.memory_space<vmem>>, vector<16x1xf32>
      %45 = math.log %44 : vector<16x1xf32>
      %46 = arith.addf %43, %45 : vector<16x1xf32>
      %c0_31 = arith.constant 0 : index
      %c0_32 = arith.constant 0 : index
      %47 = vector.load %arg12[%c0_31, %c0_32] : memref<16x1xf32, #tpu.memory_space<vmem>>, vector<16x1xf32>
      %48 = arith.subf %46, %47 : vector<16x1xf32>
      %49 = vector.shape_cast %48 : vector<16x1xf32> to vector<1x16x1xf32>
      %cst_33 = arith.constant dense<0.000000e+00> : vector<1xf32>
      %50 = vector.multi_reduction <add>, %49, %cst_33 [1, 2] : vector<1x16x1xf32> to vector<1xf32>
      %51 = vector.shape_cast %50 : vector<1xf32> to vector<1x1x1xf32>
      %52 = vector.extract %51[0, 0, 0] : f32 from vector<1x1x1xf32>
      %53 = vector.broadcast %52 : f32 to vector<1x1xf32>
      %cst_34 = arith.constant 1.600000e+01 : f32
      %54 = vector.broadcast %cst_34 : f32 to vector<1x1xf32>
      %55 = arith.divf %53, %54 : vector<1x1xf32>
      %c0_35 = arith.constant 0 : index
      %c0_36 = arith.constant 0 : index
      %56 = vector.load %arg8[%c0_35, %c0_36] : memref<1x1xf32, #tpu.memory_space<vmem>>, vector<1x1xf32>
      tpu.vector_store %arg8[%c0_35, %c0_36], %55 {strides = array<i32>} : memref<1x1xf32, #tpu.memory_space<vmem>>, vector<1x1xf32>,
    } else {
    }
    return
  }
  func.func @transform_0(%arg0: i32) -> (i32, i32) {
    %c0_i32 = arith.constant 0 : i32
    %c0_i32_0 = arith.constant 0 : i32
    %c0_i32_1 = arith.constant 0 : i32
    return %c0_i32, %c0_i32_0 : i32, i32
  }
  func.func @transform_1(%arg0: i32) -> (i32, i32) {
    %c0_i32 = arith.constant 0 : i32
    %c0_i32_0 = arith.constant 0 : i32
    %c0_i32_1 = arith.constant 0 : i32
    return %c0_i32, %c0_i32_0 : i32, i32
  }
  func.func @transform_2(%arg0: i32) -> (i32, i32) {
    %c0_i32 = arith.constant 0 : i32
    %c0_i32_0 = arith.constant 0 : i32
    %c0_i32_1 = arith.constant 0 : i32
    return %c0_i32, %c0_i32_0 : i32, i32
  }
  func.func @transform_3(%arg0: i32) -> (i32, i32) {
    %c0_i32 = arith.constant 0 : i32
    %c0_i32_0 = arith.constant 0 : i32
    %c0_i32_1 = arith.constant 0 : i32
    return %c0_i32, %c0_i32_0 : i32, i32
  }
  func.func @transform_4(%arg0: i32) -> (i32, i32) {
    %c0_i32 = arith.constant 0 : i32
    %c0_i32_0 = arith.constant 0 : i32
    return %c0_i32, %arg0 : i32, i32
  }
  func.func @transform_5(%arg0: i32) -> (i32, i32) {
    %c0_i32 = arith.constant 0 : i32
    %c0_i32_0 = arith.constant 0 : i32
    return %c0_i32, %arg0 : i32, i32
  }
  func.func @transform_6(%arg0: i32) -> (i32, i32) {
    %c0_i32 = arith.constant 0 : i32
    %c0_i32_0 = arith.constant 0 : i32
    return %c0_i32, %arg0 : i32, i32
  }
  func.func @transform_7(%arg0: i32) -> (i32, i32) {
    %c0_i32 = arith.constant 0 : i32
    %c0_i32_0 = arith.constant 0 : i32
    %c0_i32_1 = arith.constant 0 : i32
    return %c0_i32, %c0_i32_0 : i32, i32
  }
}

module attributes {stable_mosaic.version = 11 : i64} {
  func.func @block_kernel(%arg0: i32, %arg1: memref<16x128xf32, #tpu.memory_space<vmem>>, %arg2: memref<16x16xf32, #tpu.memory_space<vmem>>, %arg3: memref<1x128xf32, #tpu.memory_space<vmem>>, %arg4: memref<1x128xf32, #tpu.memory_space<vmem>>, %arg5: memref<128x384xbf16, #tpu.memory_space<vmem>>, %arg6: memref<128x128xbf16, #tpu.memory_space<vmem>>, %arg7: memref<1x128xf32, #tpu.memory_space<vmem>>, %arg8: memref<1x128xf32, #tpu.memory_space<vmem>>, %arg9: memref<1x128xf32, #tpu.memory_space<vmem>>, %arg10: memref<128x512xbf16, #tpu.memory_space<vmem>>, %arg11: memref<1x512xf32, #tpu.memory_space<vmem>>, %arg12: memref<512x128xbf16, #tpu.memory_space<vmem>>, %arg13: memref<1x128xf32, #tpu.memory_space<vmem>>, %arg14: memref<16x128xf32, #tpu.memory_space<vmem>>) attributes {dimension_semantics = [#tpu.dimension_semantics<arbitrary>], iteration_bounds = array<i64: 1>, scalar_prefetch = 0 : i64, scratch_operands = 0 : i64, tpu.core_type = #tpu.core_type<tc>, window_params = [{pipeline_mode = #tpu.pipeline_mode<synchronous>, transform_indices = @transform_0, window_bounds = array<i64: 16, 128>}, {pipeline_mode = #tpu.pipeline_mode<synchronous>, transform_indices = @transform_1, window_bounds = array<i64: 16, 16>}, {pipeline_mode = #tpu.pipeline_mode<synchronous>, transform_indices = @transform_2, window_bounds = array<i64: 1, 128>}, {pipeline_mode = #tpu.pipeline_mode<synchronous>, transform_indices = @transform_3, window_bounds = array<i64: 1, 128>}, {pipeline_mode = #tpu.pipeline_mode<synchronous>, transform_indices = @transform_4, window_bounds = array<i64: 128, 384>}, {pipeline_mode = #tpu.pipeline_mode<synchronous>, transform_indices = @transform_5, window_bounds = array<i64: 128, 128>}, {pipeline_mode = #tpu.pipeline_mode<synchronous>, transform_indices = @transform_6, window_bounds = array<i64: 1, 128>}, {pipeline_mode = #tpu.pipeline_mode<synchronous>, transform_indices = @transform_7, window_bounds = array<i64: 1, 128>}, {pipeline_mode = #tpu.pipeline_mode<synchronous>, transform_indices = @transform_8, window_bounds = array<i64: 1, 128>}, {pipeline_mode = #tpu.pipeline_mode<synchronous>, transform_indices = @transform_9, window_bounds = array<i64: 128, 512>}, {pipeline_mode = #tpu.pipeline_mode<synchronous>, transform_indices = @transform_10, window_bounds = array<i64: 1, 512>}, {pipeline_mode = #tpu.pipeline_mode<synchronous>, transform_indices = @transform_11, window_bounds = array<i64: 512, 128>}, {pipeline_mode = #tpu.pipeline_mode<synchronous>, transform_indices = @transform_12, window_bounds = array<i64: 1, 128>}, {pipeline_mode = #tpu.pipeline_mode<synchronous>, transform_indices = @transform_13, window_bounds = array<i64: 16, 128>}]} {
    %c0 = arith.constant 0 : index
    %c0_0 = arith.constant 0 : index
    %0 = vector.load %arg1[%c0, %c0_0] : memref<16x128xf32, #tpu.memory_space<vmem>>, vector<16x128xf32>
    %c0_1 = arith.constant 0 : index
    %c0_2 = arith.constant 0 : index
    %1 = vector.load %arg3[%c0_1, %c0_2] : memref<1x128xf32, #tpu.memory_space<vmem>>, vector<1x128xf32>
    %c0_3 = arith.constant 0 : index
    %c0_4 = arith.constant 0 : index
    %2 = vector.load %arg4[%c0_3, %c0_4] : memref<1x128xf32, #tpu.memory_space<vmem>>, vector<1x128xf32>
    %cst = arith.constant dense<0.000000e+00> : vector<16xf32>
    %3 = vector.multi_reduction <add>, %0, %cst [1] : vector<16x128xf32> to vector<16xf32>
    %4 = vector.shape_cast %3 : vector<16xf32> to vector<16x1xf32>
    %cst_5 = arith.constant 1.280000e+02 : f32
    %5 = vector.broadcast %cst_5 : f32 to vector<16x1xf32>
    %6 = arith.divf %4, %5 : vector<16x1xf32>
    %7 = vector.broadcast %6 : vector<16x1xf32> to vector<16x128xf32>
    %8 = arith.subf %0, %7 : vector<16x128xf32>
    %9 = arith.mulf %8, %8 : vector<16x128xf32>
    %cst_6 = arith.constant dense<0.000000e+00> : vector<16xf32>
    %10 = vector.multi_reduction <add>, %9, %cst_6 [1] : vector<16x128xf32> to vector<16xf32>
    %11 = vector.shape_cast %10 : vector<16xf32> to vector<16x1xf32>
    %cst_7 = arith.constant 1.280000e+02 : f32
    %12 = vector.broadcast %cst_7 : f32 to vector<16x1xf32>
    %13 = arith.divf %11, %12 : vector<16x1xf32>
    %cst_8 = arith.constant 9.99999974E-6 : f32
    %14 = vector.broadcast %cst_8 : f32 to vector<16x1xf32>
    %15 = arith.addf %13, %14 : vector<16x1xf32>
    %16 = math.rsqrt %15 : vector<16x1xf32>
    %17 = vector.broadcast %16 : vector<16x1xf32> to vector<16x128xf32>
    %18 = arith.mulf %8, %17 : vector<16x128xf32>
    %19 = vector.broadcast %1 : vector<1x128xf32> to vector<16x128xf32>
    %20 = arith.mulf %18, %19 : vector<16x128xf32>
    %21 = vector.broadcast %2 : vector<1x128xf32> to vector<16x128xf32>
    %22 = arith.addf %20, %21 : vector<16x128xf32>
    %23 = arith.truncf %22 : vector<16x128xf32> to vector<16x128xbf16>
    %c0_9 = arith.constant 0 : index
    %c0_10 = arith.constant 0 : index
    %24 = vector.load %arg5[%c0_9, %c0_10] : memref<128x384xbf16, #tpu.memory_space<vmem>>, vector<128x384xbf16>
    %cst_11 = arith.constant dense<0.000000e+00> : vector<16x384xf32>
    %25 = tpu.matmul %23, %24, %cst_11 {dimension_numbers = #tpu.dot_dimension_numbers<[1], [0], [0], [1], [0, 0, 1, 1], [], []>} : vector<16x128xbf16>, vector<128x384xbf16>, vector<16x384xf32> -> vector<16x384xf32>
    %26 = vector.extract_strided_slice %25 {offsets = [0, 0], sizes = [16, 128], strides = [1, 1]} : vector<16x384xf32> to vector<16x128xf32>
    %27 = vector.extract_strided_slice %25 {offsets = [0, 128], sizes = [16, 128], strides = [1, 1]} : vector<16x384xf32> to vector<16x128xf32>
    %28 = vector.extract_strided_slice %25 {offsets = [0, 256], sizes = [16, 128], strides = [1, 1]} : vector<16x384xf32> to vector<16x128xf32>
    %29 = vector.extract_strided_slice %26 {offsets = [0, 0], sizes = [16, 32], strides = [1, 1]} : vector<16x128xf32> to vector<16x32xf32>
    %30 = vector.extract_strided_slice %26 {offsets = [0, 32], sizes = [16, 32], strides = [1, 1]} : vector<16x128xf32> to vector<16x32xf32>
    %31 = vector.extract_strided_slice %26 {offsets = [0, 64], sizes = [16, 32], strides = [1, 1]} : vector<16x128xf32> to vector<16x32xf32>
    %32 = vector.extract_strided_slice %26 {offsets = [0, 96], sizes = [16, 32], strides = [1, 1]} : vector<16x128xf32> to vector<16x32xf32>
    %33 = vector.shape_cast %29 : vector<16x32xf32> to vector<1x16x32xf32>
    %34 = vector.shape_cast %30 : vector<16x32xf32> to vector<1x16x32xf32>
    %35 = vector.shape_cast %31 : vector<16x32xf32> to vector<1x16x32xf32>
    %36 = vector.shape_cast %32 : vector<16x32xf32> to vector<1x16x32xf32>
    %37 = tpu.concatenate %33, %34, %35, %36 in 0 : vector<1x16x32xf32>, vector<1x16x32xf32>, vector<1x16x32xf32>, vector<1x16x32xf32> -> vector<4x16x32xf32>
    %38 = vector.extract_strided_slice %27 {offsets = [0, 0], sizes = [16, 32], strides = [1, 1]} : vector<16x128xf32> to vector<16x32xf32>
    %39 = vector.extract_strided_slice %27 {offsets = [0, 32], sizes = [16, 32], strides = [1, 1]} : vector<16x128xf32> to vector<16x32xf32>
    %40 = vector.extract_strided_slice %27 {offsets = [0, 64], sizes = [16, 32], strides = [1, 1]} : vector<16x128xf32> to vector<16x32xf32>
    %41 = vector.extract_strided_slice %27 {offsets = [0, 96], sizes = [16, 32], strides = [1, 1]} : vector<16x128xf32> to vector<16x32xf32>
    %42 = vector.shape_cast %38 : vector<16x32xf32> to vector<1x16x32xf32>
    %43 = vector.shape_cast %39 : vector<16x32xf32> to vector<1x16x32xf32>
    %44 = vector.shape_cast %40 : vector<16x32xf32> to vector<1x16x32xf32>
    %45 = vector.shape_cast %41 : vector<16x32xf32> to vector<1x16x32xf32>
    %46 = tpu.concatenate %42, %43, %44, %45 in 0 : vector<1x16x32xf32>, vector<1x16x32xf32>, vector<1x16x32xf32>, vector<1x16x32xf32> -> vector<4x16x32xf32>
    %47 = vector.extract_strided_slice %28 {offsets = [0, 0], sizes = [16, 32], strides = [1, 1]} : vector<16x128xf32> to vector<16x32xf32>
    %48 = vector.extract_strided_slice %28 {offsets = [0, 32], sizes = [16, 32], strides = [1, 1]} : vector<16x128xf32> to vector<16x32xf32>
    %49 = vector.extract_strided_slice %28 {offsets = [0, 64], sizes = [16, 32], strides = [1, 1]} : vector<16x128xf32> to vector<16x32xf32>
    %50 = vector.extract_strided_slice %28 {offsets = [0, 96], sizes = [16, 32], strides = [1, 1]} : vector<16x128xf32> to vector<16x32xf32>
    %51 = vector.shape_cast %47 : vector<16x32xf32> to vector<1x16x32xf32>
    %52 = vector.shape_cast %48 : vector<16x32xf32> to vector<1x16x32xf32>
    %53 = vector.shape_cast %49 : vector<16x32xf32> to vector<1x16x32xf32>
    %54 = vector.shape_cast %50 : vector<16x32xf32> to vector<1x16x32xf32>
    %55 = tpu.concatenate %51, %52, %53, %54 in 0 : vector<1x16x32xf32>, vector<1x16x32xf32>, vector<1x16x32xf32>, vector<1x16x32xf32> -> vector<4x16x32xf32>
    %56 = arith.truncf %37 : vector<4x16x32xf32> to vector<4x16x32xbf16>
    %57 = arith.truncf %46 : vector<4x16x32xf32> to vector<4x16x32xbf16>
    %58 = arith.truncf %55 : vector<4x16x32xf32> to vector<4x16x32xbf16>
    "tpu.trace_start"() <{level = 10 : i32, message = "hqd,hkd->hqk"}> : () -> ()
    %cst_12 = arith.constant dense<0.000000e+00> : vector<4x16x16xf32>
    %59 = tpu.matmul %56, %57, %cst_12 {dimension_numbers = #tpu.dot_dimension_numbers<[2], [2], [1], [1], [0, 0, 0, 1, 1, 1], [0], [0]>} : vector<4x16x32xbf16>, vector<4x16x32xbf16>, vector<4x16x16xf32> -> vector<4x16x16xf32>
    "tpu.trace_stop"() : () -> ()
    %cst_13 = arith.constant 0.176776692 : f32
    %60 = vector.broadcast %cst_13 : f32 to vector<4x16x16xf32>
    %61 = arith.mulf %59, %60 : vector<4x16x16xf32>
    %c0_14 = arith.constant 0 : index
    %c0_15 = arith.constant 0 : index
    %62 = vector.load %arg2[%c0_14, %c0_15] : memref<16x16xf32, #tpu.memory_space<vmem>>, vector<16x16xf32>
    %63 = vector.shape_cast %62 : vector<16x16xf32> to vector<1x16x16xf32>
    %64 = vector.broadcast %63 : vector<1x16x16xf32> to vector<4x16x16xf32>
    %65 = arith.addf %61, %64 : vector<4x16x16xf32>
    %cst_16 = arith.constant dense<0xFF800000> : vector<4x16xf32>
    %66 = vector.multi_reduction <maximumf>, %65, %cst_16 [2] : vector<4x16x16xf32> to vector<4x16xf32>
    %67 = vector.shape_cast %66 : vector<4x16xf32> to vector<4x16x1xf32>
    %68 = vector.broadcast %67 : vector<4x16x1xf32> to vector<4x16x16xf32>
    %69 = arith.subf %65, %68 : vector<4x16x16xf32>
    %70 = math.exp %69 : vector<4x16x16xf32>
    %cst_17 = arith.constant dense<0.000000e+00> : vector<4x16xf32>
    %71 = vector.multi_reduction <add>, %70, %cst_17 [2] : vector<4x16x16xf32> to vector<4x16xf32>
    %72 = vector.shape_cast %71 : vector<4x16xf32> to vector<4x16x1xf32>
    %73 = vector.broadcast %72 : vector<4x16x1xf32> to vector<4x16x16xf32>
    %74 = arith.divf %70, %73 : vector<4x16x16xf32>
    %75 = arith.truncf %74 : vector<4x16x16xf32> to vector<4x16x16xbf16>
    "tpu.trace_start"() <{level = 10 : i32, message = "hqk,hkd->hqd"}> : () -> ()
    %cst_18 = arith.constant dense<0.000000e+00> : vector<4x16x32xf32>
    %76 = tpu.matmul %75, %58, %cst_18 {dimension_numbers = #tpu.dot_dimension_numbers<[2], [1], [1], [2], [0, 0, 0, 1, 1, 2], [0], [0]>} : vector<4x16x16xbf16>, vector<4x16x32xbf16>, vector<4x16x32xf32> -> vector<4x16x32xf32>
    "tpu.trace_stop"() : () -> ()
    %77 = vector.extract_strided_slice %76 {offsets = [0, 0, 0], sizes = [1, 16, 32], strides = [1, 1, 1]} : vector<4x16x32xf32> to vector<1x16x32xf32>
    %78 = vector.shape_cast %77 : vector<1x16x32xf32> to vector<16x32xf32>
    %79 = vector.extract_strided_slice %76 {offsets = [1, 0, 0], sizes = [1, 16, 32], strides = [1, 1, 1]} : vector<4x16x32xf32> to vector<1x16x32xf32>
    %80 = vector.shape_cast %79 : vector<1x16x32xf32> to vector<16x32xf32>
    %81 = vector.extract_strided_slice %76 {offsets = [2, 0, 0], sizes = [1, 16, 32], strides = [1, 1, 1]} : vector<4x16x32xf32> to vector<1x16x32xf32>
    %82 = vector.shape_cast %81 : vector<1x16x32xf32> to vector<16x32xf32>
    %83 = vector.extract_strided_slice %76 {offsets = [3, 0, 0], sizes = [1, 16, 32], strides = [1, 1, 1]} : vector<4x16x32xf32> to vector<1x16x32xf32>
    %84 = vector.shape_cast %83 : vector<1x16x32xf32> to vector<16x32xf32>
    %85 = tpu.concatenate %78, %80, %82, %84 in 1 : vector<16x32xf32>, vector<16x32xf32>, vector<16x32xf32>, vector<16x32xf32> -> vector<16x128xf32>
    %86 = arith.truncf %85 : vector<16x128xf32> to vector<16x128xbf16>
    %c0_19 = arith.constant 0 : index
    %c0_20 = arith.constant 0 : index
    %87 = vector.load %arg6[%c0_19, %c0_20] : memref<128x128xbf16, #tpu.memory_space<vmem>>, vector<128x128xbf16>
    %cst_21 = arith.constant dense<0.000000e+00> : vector<16x128xf32>
    %88 = tpu.matmul %86, %87, %cst_21 {dimension_numbers = #tpu.dot_dimension_numbers<[1], [0], [0], [1], [0, 0, 1, 1], [], []>} : vector<16x128xbf16>, vector<128x128xbf16>, vector<16x128xf32> -> vector<16x128xf32>
    %c0_22 = arith.constant 0 : index
    %c0_23 = arith.constant 0 : index
    %89 = vector.load %arg7[%c0_22, %c0_23] : memref<1x128xf32, #tpu.memory_space<vmem>>, vector<1x128xf32>
    %90 = vector.broadcast %89 : vector<1x128xf32> to vector<16x128xf32>
    %91 = arith.addf %88, %90 : vector<16x128xf32>
    %92 = arith.addf %0, %91 : vector<16x128xf32>
    %c0_24 = arith.constant 0 : index
    %c0_25 = arith.constant 0 : index
    %93 = vector.load %arg8[%c0_24, %c0_25] : memref<1x128xf32, #tpu.memory_space<vmem>>, vector<1x128xf32>
    %c0_26 = arith.constant 0 : index
    %c0_27 = arith.constant 0 : index
    %94 = vector.load %arg9[%c0_26, %c0_27] : memref<1x128xf32, #tpu.memory_space<vmem>>, vector<1x128xf32>
    %cst_28 = arith.constant dense<0.000000e+00> : vector<16xf32>
    %95 = vector.multi_reduction <add>, %92, %cst_28 [1] : vector<16x128xf32> to vector<16xf32>
    %96 = vector.shape_cast %95 : vector<16xf32> to vector<16x1xf32>
    %cst_29 = arith.constant 1.280000e+02 : f32
    %97 = vector.broadcast %cst_29 : f32 to vector<16x1xf32>
    %98 = arith.divf %96, %97 : vector<16x1xf32>
    %99 = vector.broadcast %98 : vector<16x1xf32> to vector<16x128xf32>
    %100 = arith.subf %92, %99 : vector<16x128xf32>
    %101 = arith.mulf %100, %100 : vector<16x128xf32>
    %cst_30 = arith.constant dense<0.000000e+00> : vector<16xf32>
    %102 = vector.multi_reduction <add>, %101, %cst_30 [1] : vector<16x128xf32> to vector<16xf32>
    %103 = vector.shape_cast %102 : vector<16xf32> to vector<16x1xf32>
    %cst_31 = arith.constant 1.280000e+02 : f32
    %104 = vector.broadcast %cst_31 : f32 to vector<16x1xf32>
    %105 = arith.divf %103, %104 : vector<16x1xf32>
    %cst_32 = arith.constant 9.99999974E-6 : f32
    %106 = vector.broadcast %cst_32 : f32 to vector<16x1xf32>
    %107 = arith.addf %105, %106 : vector<16x1xf32>
    %108 = math.rsqrt %107 : vector<16x1xf32>
    %109 = vector.broadcast %108 : vector<16x1xf32> to vector<16x128xf32>
    %110 = arith.mulf %100, %109 : vector<16x128xf32>
    %111 = vector.broadcast %93 : vector<1x128xf32> to vector<16x128xf32>
    %112 = arith.mulf %110, %111 : vector<16x128xf32>
    %113 = vector.broadcast %94 : vector<1x128xf32> to vector<16x128xf32>
    %114 = arith.addf %112, %113 : vector<16x128xf32>
    %115 = arith.truncf %114 : vector<16x128xf32> to vector<16x128xbf16>
    %c0_33 = arith.constant 0 : index
    %c0_34 = arith.constant 0 : index
    %116 = vector.load %arg10[%c0_33, %c0_34] : memref<128x512xbf16, #tpu.memory_space<vmem>>, vector<128x512xbf16>
    %cst_35 = arith.constant dense<0.000000e+00> : vector<16x512xf32>
    %117 = tpu.matmul %115, %116, %cst_35 {dimension_numbers = #tpu.dot_dimension_numbers<[1], [0], [0], [1], [0, 0, 1, 1], [], []>} : vector<16x128xbf16>, vector<128x512xbf16>, vector<16x512xf32> -> vector<16x512xf32>
    %c0_36 = arith.constant 0 : index
    %c0_37 = arith.constant 0 : index
    %118 = vector.load %arg11[%c0_36, %c0_37] : memref<1x512xf32, #tpu.memory_space<vmem>>, vector<1x512xf32>
    %119 = vector.broadcast %118 : vector<1x512xf32> to vector<16x512xf32>
    %120 = arith.addf %117, %119 : vector<16x512xf32>
    %cst_38 = arith.constant 5.000000e-01 : f32
    %121 = vector.broadcast %cst_38 : f32 to vector<16x512xf32>
    %122 = arith.mulf %121, %120 : vector<16x512xf32>
    %cst_39 = arith.constant 4.471500e-02 : f32
    %123 = vector.broadcast %cst_39 : f32 to vector<16x512xf32>
    %124 = arith.mulf %123, %120 : vector<16x512xf32>
    %125 = arith.mulf %124, %120 : vector<16x512xf32>
    %126 = arith.mulf %125, %120 : vector<16x512xf32>
    %127 = arith.addf %120, %126 : vector<16x512xf32>
    %cst_40 = arith.constant 0.797884583 : f32
    %128 = vector.broadcast %cst_40 : f32 to vector<16x512xf32>
    %129 = arith.mulf %128, %127 : vector<16x512xf32>
    %130 = math.tanh %129 : vector<16x512xf32>
    %cst_41 = arith.constant 1.000000e+00 : f32
    %131 = vector.broadcast %cst_41 : f32 to vector<16x512xf32>
    %132 = arith.addf %131, %130 : vector<16x512xf32>
    %133 = arith.mulf %122, %132 : vector<16x512xf32>
    %134 = arith.truncf %133 : vector<16x512xf32> to vector<16x512xbf16>
    %c0_42 = arith.constant 0 : index
    %c0_43 = arith.constant 0 : index
    %135 = vector.load %arg12[%c0_42, %c0_43] : memref<512x128xbf16, #tpu.memory_space<vmem>>, vector<512x128xbf16>
    %cst_44 = arith.constant dense<0.000000e+00> : vector<16x128xf32>
    %136 = tpu.matmul %134, %135, %cst_44 {dimension_numbers = #tpu.dot_dimension_numbers<[1], [0], [0], [1], [0, 0, 1, 1], [], []>} : vector<16x512xbf16>, vector<512x128xbf16>, vector<16x128xf32> -> vector<16x128xf32>
    %c0_45 = arith.constant 0 : index
    %c0_46 = arith.constant 0 : index
    %137 = vector.load %arg13[%c0_45, %c0_46] : memref<1x128xf32, #tpu.memory_space<vmem>>, vector<1x128xf32>
    %138 = vector.broadcast %137 : vector<1x128xf32> to vector<16x128xf32>
    %139 = arith.addf %136, %138 : vector<16x128xf32>
    %140 = arith.addf %92, %139 : vector<16x128xf32>
    %c0_47 = arith.constant 0 : index
    %c0_48 = arith.constant 0 : index
    %141 = vector.load %arg14[%c0_47, %c0_48] : memref<16x128xf32, #tpu.memory_space<vmem>>, vector<16x128xf32>
    tpu.vector_store %arg14[%c0_47, %c0_48], %140 {strides = array<i32>} : memref<16x128xf32, #tpu.memory_space<vmem>>, vector<16x128xf32>,
    return
  }
  func.func @transform_0(%arg0: i32) -> (i32, i32) {
    %c0_i32 = arith.constant 0 : i32
    %c0_i32_0 = arith.constant 0 : i32
    %c0_i32_1 = arith.constant 0 : i32
    return %c0_i32, %c0_i32_0 : i32, i32
  }
  func.func @transform_1(%arg0: i32) -> (i32, i32) {
    %c0_i32 = arith.constant 0 : i32
    %c0_i32_0 = arith.constant 0 : i32
    %c0_i32_1 = arith.constant 0 : i32
    return %c0_i32, %c0_i32_0 : i32, i32
  }
  func.func @transform_2(%arg0: i32) -> (i32, i32) {
    %c0_i32 = arith.constant 0 : i32
    %c0_i32_0 = arith.constant 0 : i32
    %c0_i32_1 = arith.constant 0 : i32
    return %c0_i32, %c0_i32_0 : i32, i32
  }
  func.func @transform_3(%arg0: i32) -> (i32, i32) {
    %c0_i32 = arith.constant 0 : i32
    %c0_i32_0 = arith.constant 0 : i32
    %c0_i32_1 = arith.constant 0 : i32
    return %c0_i32, %c0_i32_0 : i32, i32
  }
  func.func @transform_4(%arg0: i32) -> (i32, i32) {
    %c0_i32 = arith.constant 0 : i32
    %c0_i32_0 = arith.constant 0 : i32
    %c0_i32_1 = arith.constant 0 : i32
    return %c0_i32, %c0_i32_0 : i32, i32
  }
  func.func @transform_5(%arg0: i32) -> (i32, i32) {
    %c0_i32 = arith.constant 0 : i32
    %c0_i32_0 = arith.constant 0 : i32
    %c0_i32_1 = arith.constant 0 : i32
    return %c0_i32, %c0_i32_0 : i32, i32
  }
  func.func @transform_6(%arg0: i32) -> (i32, i32) {
    %c0_i32 = arith.constant 0 : i32
    %c0_i32_0 = arith.constant 0 : i32
    %c0_i32_1 = arith.constant 0 : i32
    return %c0_i32, %c0_i32_0 : i32, i32
  }
  func.func @transform_7(%arg0: i32) -> (i32, i32) {
    %c0_i32 = arith.constant 0 : i32
    %c0_i32_0 = arith.constant 0 : i32
    %c0_i32_1 = arith.constant 0 : i32
    return %c0_i32, %c0_i32_0 : i32, i32
  }
  func.func @transform_8(%arg0: i32) -> (i32, i32) {
    %c0_i32 = arith.constant 0 : i32
    %c0_i32_0 = arith.constant 0 : i32
    %c0_i32_1 = arith.constant 0 : i32
    return %c0_i32, %c0_i32_0 : i32, i32
  }
  func.func @transform_9(%arg0: i32) -> (i32, i32) {
    %c0_i32 = arith.constant 0 : i32
    %c0_i32_0 = arith.constant 0 : i32
    %c0_i32_1 = arith.constant 0 : i32
    return %c0_i32, %c0_i32_0 : i32, i32
  }
  func.func @transform_10(%arg0: i32) -> (i32, i32) {
    %c0_i32 = arith.constant 0 : i32
    %c0_i32_0 = arith.constant 0 : i32
    %c0_i32_1 = arith.constant 0 : i32
    return %c0_i32, %c0_i32_0 : i32, i32
  }
  func.func @transform_11(%arg0: i32) -> (i32, i32) {
    %c0_i32 = arith.constant 0 : i32
    %c0_i32_0 = arith.constant 0 : i32
    %c0_i32_1 = arith.constant 0 : i32
    return %c0_i32, %c0_i32_0 : i32, i32
  }
  func.func @transform_12(%arg0: i32) -> (i32, i32) {
    %c0_i32 = arith.constant 0 : i32
    %c0_i32_0 = arith.constant 0 : i32
    %c0_i32_1 = arith.constant 0 : i32
    return %c0_i32, %c0_i32_0 : i32, i32
  }
  func.func @transform_13(%arg0: i32) -> (i32, i32) {
    %c0_i32 = arith.constant 0 : i32
    %c0_i32_0 = arith.constant 0 : i32
    %c0_i32_1 = arith.constant 0 : i32
    return %c0_i32, %c0_i32_0 : i32, i32
  }
}

</mosaic_0001>

<bundles_post_ra>
// kernel: gpt_forward.5
= control target key start
LH: loop header
LB: loop body
LE: loop exit
PB: predicated region body
PF: predicated region fallthrough
CT: control target
= control target key end

     0   :  { %13 = vsyncpa [#allocation8], 0  ;;  %s1279_s0 = inlined_call_operand.vmem [shape: f32[16,128], index: 0, kind: input, shape index: {}]   ;;  %s1280_s1 = inlined_call_operand.vmem [shape: f32[1,128], index: 1, kind: input, shape index: {}]   ;;  %s1281_s2 = inlined_call_operand.vmem [shape: f32[1,128], index: 2, kind: input, shape index: {}]   ;;  %s1282_s3 = inlined_call_operand.vmem [shape: s32[16,1], index: 3, kind: input, shape index: {}]   ;;  %s1283_s4 = inlined_call_operand.vmem [shape: bf16[128,256], index: 4, kind: input, shape index: {}]   ;;  %s1284_s5 = inlined_call_operand.vmem [shape: f32[1,256], index: 5, kind: input, shape index: {}]   ;;  %s1285_s6 = inlined_call_operand.hbm [shape: f32[16,256], index: 6, kind: output, shape index: {0}]   ;;  %s1286_s7 = inlined_call_operand.hbm [shape: f32[1,1], index: 7, kind: output, shape index: {1}]  }
   0x1   :  { %15 = vsyncpa [#allocation8 + $0x1], 0 }
   0x2   :  { %16 = vsyncpa [#allocation10], 0  ;;  %s1065_s24 = smov 0   ;;  %s1067_s25 = smov 0  }
   0x3   :  { %s1069_s26 = smov 0   ;;  %s1071_s27 = smov 0  }
   0x4 LB: > { %s1086_s28 = sadd.s32 4294967295, %s1013_s27   ;;  %s782_s29 = sadd.s32 4294967294, %s1013_s27   ;;  %s1013_s27 = sphi %s1071_s27, %s1292_s27   ;;  %s1009_s26 = sphi %s1069_s26, %s1291_s26   ;;  %s1005_s25 = sphi %s1067_s25, %s1290_s25   ;;  %s1001_s24 = sphi %s1065_s24, %s1289_s24  }
   0x5   : > { %s1090_s30 = sadd.s32 1, %s1013_s27   ;;  %s113_s8 = sadd.s32 1, %s1009_s26 }
   0x6   : > { %s110_s9 = ssub.s32 %s1013_s27, %s1090_s30  ;;  %p120_p0 = scmp.ne.s32.totalorder %s1009_s26, %s1005_s25 }
   0x7   : > { %p111_p1 = scmp.eq.s32.totalorder %s110_s9, 0  ;;  %p121_p2 = scmp.eq.s32.totalorder %s1013_s27, 0 }
   0x8   : > { %p176_p3 = scmp.eq.s32.totalorder %s1086_s28, 1  ;;  %p181_p4 = scmp.ne.s32.totalorder %s1005_s25, %s1001_s24 }
   0x9   : > { %s1102_s10 = scalar_select %p111_p1, %s1009_s26, %s113_s8  }
   0xa   : > { %p122_p5 = por %p121_p2, %p120_p0  ;;  %p1106_p6 = por %p176_p3, %p120_p0 }
   0xb   : > { %p182_p7 = scmp.eq.s32.totalorder %s782_s29, 1  ;;  %p784_p9 = scmp.ge.s32.totalorder %s1013_s27, 2 }
   0xd   : > { %p1110_p8 = por %p182_p7, %p181_p4  ;;  %231 = sbr.rel (%p784_p9) target bundleno = 34 (0x22), region = 32 }
  0x14   : > { %234 = sbr.rel (!%p122_p5) target bundleno = 34 (0x22), region = 36  ;;  %s236_s13 = sand.u32 (%p122_p5), 1, %s1009_s26  }
  0x15   : > { %s786_s14 = sshll.u32 (%p122_p5), %s1013_s27, 2  ;;  %s785_s15 = sshll.u32 (%p122_p5), %s236_s13, 6 }
  0x16   : > { %s1122_s18 = scalar_lea.vmem (%p122_p5), %s1283_s4, %s786_s14  ;;  %s238_s19 = scalar_lea.vmem (%p122_p5), [#allocation6], %s785_s15 }
  0x17   : > { %v256_v0 = vld [vmem:[%s1122_s18] sm:$0xf] (%p122_p5)  ;;  %v258_v1 = vld [vmem:[%s1122_s18 + $0x8] sm:$0xf] (%p122_p5)  ;;  %v260_v2 = vld [vmem:[%s1122_s18 + $0x10] sm:$0xf] (%p122_p5) }
  0x18   : > { %257 = vst [vmem:[%s238_s19] sm:$0xf] (%p122_p5), %v256_v0  ;;  %259 = vst [vmem:[%s238_s19 + $0x4] sm:$0xf] (%p122_p5), %v258_v1  ;;  %v262_v3 = vld [vmem:[%s1122_s18 + $0x18] sm:$0xf] (%p122_p5) }
  0x19   : > { %v264_v4 = vld [vmem:[%s1122_s18 + $0x20] sm:$0xf] (%p122_p5)  ;;  %261 = vst [vmem:[%s238_s19 + $0x8] sm:$0xf] (%p122_p5), %v260_v2  ;;  %263 = vst [vmem:[%s238_s19 + $0xc] sm:$0xf] (%p122_p5), %v262_v3 }
  0x1a   : > { %265 = vst [vmem:[%s238_s19 + $0x10] sm:$0xf] (%p122_p5), %v264_v4  ;;  %v266_v5 = vld [vmem:[%s1122_s18 + $0x28] sm:$0xf] (%p122_p5)  ;;  %v268_v6 = vld [vmem:[%s1122_s18 + $0x30] sm:$0xf] (%p122_p5) }
  0x1b   : > { %v270_v7 = vld [vmem:[%s1122_s18 + $0x38] sm:$0xf]  ;;  %267 = vst [vmem:[%s238_s19 + $0x14] sm:$0xf] %v266_v5  ;;  %269 = vst [vmem:[%s238_s19 + $0x18] sm:$0xf] %v268_v6 }
  0x1c   : > { %271 = vst [vmem:[%s238_s19 + $0x1c] sm:$0xf] %v270_v7  ;;  %v272_v8 = vld [vmem:[%s1122_s18 + $0x40] sm:$0xf]  ;;  %v274_v9 = vld [vmem:[%s1122_s18 + $0x48] sm:$0xf] }
  0x1d   : > { %v276_v10 = vld [vmem:[%s1122_s18 + $0x50] sm:$0xf]  ;;  %273 = vst [vmem:[%s238_s19 + $0x20] sm:$0xf] %v272_v8  ;;  %275 = vst [vmem:[%s238_s19 + $0x24] sm:$0xf] %v274_v9 }
  0x1e   : > { %277 = vst [vmem:[%s238_s19 + $0x28] sm:$0xf] %v276_v10  ;;  %v278_v11 = vld [vmem:[%s1122_s18 + $0x58] sm:$0xf]  ;;  %v280_v12 = vld [vmem:[%s1122_s18 + $0x60] sm:$0xf] }
  0x1f   : > { %v282_v13 = vld [vmem:[%s1122_s18 + $0x68] sm:$0xf]  ;;  %279 = vst [vmem:[%s238_s19 + $0x2c] sm:$0xf] %v278_v11  ;;  %281 = vst [vmem:[%s238_s19 + $0x30] sm:$0xf] %v280_v12 }
  0x20   : > { %283 = vst [vmem:[%s238_s19 + $0x34] sm:$0xf] %v282_v13  ;;  %v284_v14 = vld [vmem:[%s1122_s18 + $0x70] sm:$0xf]  ;;  %v286_v15 = vld [vmem:[%s1122_s18 + $0x78] sm:$0xf] }
  0x21   : > { %285 = vst [vmem:[%s238_s19 + $0x38] sm:$0xf] %v284_v14  ;;  %287 = vst [vmem:[%s238_s19 + $0x3c] sm:$0xf] %v286_v15 }
  0x22 PF: > { %p787_p10 = scmp.ge.s32.totalorder %s1013_s27, 1  ;;  %p347_p11 = scmp.lt.s32.totalorder %s1013_s27, 3 }
  0x24   : > { %p348_p12 = pnand %p787_p10, %p347_p11 }
  0x25   : > { %s1143_s20 = sand.u32 (!%p348_p12), 1, %s1005_s25   ;;  %p388_p13 = scmp.lt.s32.totalorder (!%p348_p12), %s1086_s28, 1 }
  0x26   : > { %351 = sbr.rel (%p348_p12) target bundleno = 1333 (0x535), region = 81  ;;  %s788_s21 = sshll.u32 (!%p348_p12), %s1143_s20, 6 }
  0x27   : > { %s789_s22 = sshll.u32 (!%p348_p12), %s1143_s20, 4  ;;  %s1155_s13 = scalar_lea.vmem (!%p348_p12), [#allocation6], %s788_s21 }
  0x28   : > { %s1157_s14 = scalar_lea.vmem (!%p348_p12), [#allocation7], %s789_s22  ;;  %p790_p0 = scmp.ne.s32.totalorder (!%p348_p12), %s1086_s28, 0 }
  0x2d   : > { %s1149_s23 = scalar_select %p388_p13, %s1086_s28, 1 }
  0x2e   : > { %395 = sbr.rel (%p790_p0) target bundleno = 365 (0x16d), region = 89  ;;  %v396_v16 = vld [vmem:[%s1279_s0] sm:$0xff] (!%p790_p0)  ;;  %v397_v17 = vld [vmem:[%s1279_s0 + $0x8] sm:$0xff] (!%p790_p0)  ;;  %vm441_vm0 = vcmask (!%p790_p0), 7168   ;;  %v1015_v26 = vmov (!%p790_p0), -1e+30  }
  0x2f   : > { %s390_s9 = scalar_lea.vmem %s1284_s5, %s1149_s23  ;;  %400 = vadd.xlane.f32.xlu0 (!%p790_p0), %v396_v16  ;;  %442 = vst.msk [vmem:[#allocation3] sm:$0xff] (!%p790_p0), %vm441_vm0, %v1015_v26  ;;  %443 = vst.msk [vmem:[#allocation3 + $0x8] sm:$0xff] (!%p790_p0), %vm441_vm0, %v1015_v26  ;;  %v1016_v27 = vmov (!%p790_p0), 0.0   ;;  %v791_v36 = vld [vmem:[%s1280_s1] ss:$0 sm:$0xff] (!%p790_p0) }
  0x30   : > { %444 = vst.msk [vmem:[#allocation4] sm:$0xff] (!%p790_p0), %vm441_vm0, %v1016_v27  ;;  %445 = vst.msk [vmem:[#allocation4 + $0x8] sm:$0xff] (!%p790_p0), %vm441_vm0, %v1016_v27  ;;  %v792_v40 = vld [vmem:[%s1281_s2] ss:$0 sm:$0xff] (!%p790_p0) }
  0x31   : > { %446 = vst.msk [vmem:[#allocation5] sm:$0xff] (!%p790_p0), %vm441_vm0, %v1016_v27  ;;  %447 = vst.msk [vmem:[#allocation5 + $0x8] sm:$0xff] (!%p790_p0), %vm441_vm0, %v1016_v27 }
  0x33   : > { %402 = vadd.xlane.f32.xlu0 (!%p790_p0), %v397_v17 }
  0xbc   : > { %v401_v18 = vpop.xlane.xlu0 %400 }
  0xbd   : > { %v405_v19 = vmul.f32 0.0078125, %v401_v18 }
  0xbf   : > { %v407_v20 = vsub.f32 %v396_v16, %v405_v19 }
  0xc0   : > { %v403_v21 = vpop.xlane.xlu0 %402 }
  0xc1   : > { %v406_v22 = vmul.f32 0.0078125, %v403_v21  ;;  %v409_v23 = vmul.f32 %v407_v20, %v407_v20 }
  0xc3   : > { %v408_v24 = vsub.f32 %v397_v17, %v406_v22  ;;  %411 = vadd.xlane.f32.xlu1 %v409_v23 }
  0xc5   : > { %v410_v25 = vmul.f32 %v408_v24, %v408_v24 }
  0xc7   : > { %413 = vadd.xlane.f32.xlu1 %v410_v25 }
 0x150   : > { %v412_v28 = vpop.xlane.xlu1 %411 }
 0x151   : > { %v415_v29 = vmul.f32 0.0078125, %v412_v28 }
 0x153   : > { %v417_v30 = vadd.f32 1e-05, %v415_v29 }
 0x154   : > { %v414_v31 = vpop.xlane.xlu1 %413 }
 0x155   : > { %895 = vrsqrt.f32 %v417_v30  ;;  %v416_v32 = vmul.f32 0.0078125, %v414_v31 }
 0x157   : > { %v418_v33 = vadd.f32 1e-05, %v416_v32 }
 0x159   : > { %897 = vrsqrt.f32 %v418_v33 }
 0x15f   : > { %v896_v34 = vpop.eup %895 }
 0x160   : > { %v421_v35 = vmul.f32 %v896_v34, %v407_v20 }
 0x162   : > { %v429_v38 = vmul.f32 %v791_v36, %v421_v35 }
 0x163   : > { %v898_v37 = vpop.eup %897 }
 0x164   : > { %v422_v39 = vmul.f32 %v898_v37, %v408_v24  ;;  %v437_v42 = vadd.f32 %v792_v40, %v429_v38 }
 0x166   : > { %v430_v41 = vmul.f32 %v791_v36, %v422_v39 }
 0x168   : > { %v438_v43 = vadd.f32 %v792_v40, %v430_v41 }
 0x16a   : > { %v439_v44 = vpack.c.bf16 %v438_v43, %v437_v42 }
 0x16c   : > { %440 = vst [vmem:[#allocation2] sm:$0xff] %v439_v44 }
 0x16d PF: > { %v901_v45 = vld [vmem:[%s1155_s13] sm:$0xff]   ;;  %v1017_v46 = vmov 0.0   ;;  %v902_v47 = vld [vmem:[%s1155_s13 + $0x8] sm:$0xff]   ;;  %vm1018_vm1 = vmmov 0   ;;  %v903_v48 = vld [vmem:[%s1155_s13 + $0x10] sm:$0xff]   ;;  %v1019_v55 = vmov 0   ;;  %v609_v3 = vlaneseq }
 0x16e   : > { %819 = vmatprep.subr.bf16.mxu0 %v1017_v46  ;;  %835 = vmatprep.mubr.msk.bf16.mxu0 %vm1018_vm1, %v1017_v46  ;;  %v904_v49 = vld [vmem:[%s1155_s13 + $0x18] sm:$0xff]   ;;  %v905_v50 = vld [vmem:[%s1155_s13 + $0x20] sm:$0xff]   ;;  %v906_v51 = vld [vmem:[%s1155_s13 + $0x28] sm:$0xff]   ;;  %vm603_vm2 = vcmask 7168   ;;  %s802_s23 = sshll.u32 %s1086_s28, 7  ;;  %p803_p1 = scmp.ne.s32.totalorder %s1086_s28, 1 }
 0x16f   : > { %820 = vmatpush3.bf16.msra.mxu0 %v901_v45  ;;  %v907_v52 = vld [vmem:[%s1155_s13 + $0x30] sm:$0xff]   ;;  %v908_v53 = vld [vmem:[%s1155_s13 + $0x38] sm:$0xff]   ;;  %900 = vset.pattern.permute.xlu0 %v1019_v55  ;;  %v793_v56 = vld [vmem:[%s390_s9] ss:$0 sm:$0xff]  ;;  %v610_v8 = vand.u32 127, %v609_v3  ;;  %v611_v9 = vstv %s802_s23  ;;  %vm668_vm5 = vcmask (!%p803_p1), 0  }
 0x170   : > { %821 = vmatprep.subr.bf16.mxu0 %v1017_v46  ;;  %899 = vset.pattern.permute.xlu1 %v1019_v55  ;;  %v613_v63 = vld [vmem:[%s1282_s3] sm:$0xff]  ;;  %v563_v0 = vld [vmem:[#allocation3] sm:$0xff]  ;;  %v564_v4 = vld [vmem:[#allocation3 + $0x8] sm:$0xff] }
 0x171   : > { %v614_v11 = vld [vmem:[%s1282_s3 + $0x8] sm:$0xff]  ;;  %v612_v12 = vadd.s32 %v611_v9, %v610_v8  ;;  %v571_v31 = vld [vmem:[#allocation4] sm:$0xff]  ;;  %v572_v35 = vld [vmem:[#allocation4 + $0x8] sm:$0xff] }
 0x172   : > { %v623_v25 = vld [vmem:[#allocation5] sm:$0xff]  ;;  %v624_v40 = vld [vmem:[#allocation5 + $0x8] sm:$0xff] }
 0x173   : > { %822 = vmatpush3.bf16.msra.mxu0 %v902_v47  ;;  %v448_v54 = vld [vmem:[#allocation2] sm:$0xff] }
 0x174   : > { %823 = vmatprep.subr.bf16.mxu0 %v1017_v46 }
 0x177   : > { %824 = vmatpush3.bf16.msra.mxu0 %v903_v48 }
 0x178   : > { %825 = vmatprep.subr.bf16.mxu0 %v1017_v46 }
 0x17b   : > { %826 = vmatpush3.bf16.msra.mxu0 %v904_v49 }
 0x17c   : > { %827 = vmatprep.subr.bf16.mxu0 %v1017_v46 }
 0x17f   : > { %828 = vmatpush3.bf16.msra.mxu0 %v905_v50 }
 0x180   : > { %829 = vmatprep.subr.bf16.mxu0 %v1017_v46 }
 0x183   : > { %830 = vmatpush3.bf16.msra.mxu0 %v906_v51 }
 0x184   : > { %831 = vmatprep.subr.bf16.mxu0 %v1017_v46 }
 0x187   : > { %832 = vmatpush3.bf16.msra.mxu0 %v907_v52 }
 0x188   : > { %833 = vmatprep.subr.bf16.mxu0 %v1017_v46 }
 0x18b   : > { %834 = vmatpush3.bf16.msra.mxu0 %v908_v53 }
 0x18e   : > { %836 = vmatmul.mubr.bf16.vlgmr.msra.gmra.mrb[0].mxu0 %v448_v54 }
 0x261   : > { %v554_v57 = vpop.f32.mrb[0].mxu0 }
 0x262   : > { %v555_v58 = vadd.f32 %v793_v56, %v554_v57  ;;  %v837_v59 = vpop.f32.mrb[1].mxu0 }
 0x263   : > { %v557_v60 = vpop.f32.mrb[2].mxu0 }
 0x264   : > { %561 = vst [vmem:[%s1157_s14] sm:$0xff] %v555_v58  ;;  %v558_v61 = vadd.f32 %v793_v56, %v557_v60  ;;  %565 = vmax.xlane.f32.xlu0 %v555_v58  ;;  %v838_v62 = vpop.f32.mrb[3].mxu0 }
 0x266   : > { %562 = vst [vmem:[%s1157_s14 + $0x8] sm:$0xff] %v558_v61 }
 0x268   : > { %567 = vmax.xlane.f32.xlu0 %v558_v61 }
 0x27e   : > { %616 = vperm.xlu0 %900, %v613_v63  }
 0x2f1   : > { %v566_v1 = vpop.xlane.xlu0 %565 }
 0x2f2   : > { %v569_v2 = vmax.f32 %v563_v0, %v566_v1 }
 0x2f4   : > { %v573_v5 = vsub.f32 %v563_v0, %v569_v2  ;;  %606 = vst.msk [vmem:[#allocation3] sm:$0xff] %vm603_vm2, %v569_v2  ;;  %583 = vperm.xlu1 %899, %v569_v2  }
 0x2f5   : > { %v568_v6 = vpop.xlane.xlu0 %567 }
 0x2f6   : > { %v570_v7 = vmax.f32 %v564_v4, %v568_v6  ;;  %v575_v28 = vmul.f32 1.442695, %v573_v5 }
 0x2f8   : > { %v574_v10 = vsub.f32 %v564_v4, %v570_v7  ;;  %607 = vst.msk [vmem:[#allocation3 + $0x8] sm:$0xff] %vm603_vm2, %v570_v7  ;;  %588 = vperm.xlu1 %899, %v570_v7  }
 0x2fa   : > { %v577_v29 = vmul.f32 1.442695, %v574_v10 }
 0x2fb   : > { %v639_v46 = vld [vmem:[#allocation3] sm:$0xff] (!%p803_p1) }
 0x2fc   : > { %619 = vperm.xlu1 %899, %v614_v11  }
 0x2fd   : > { %v617_v13 = vpop.permute.xlu0 %616 }
 0x2fe   : > { %vm621_vm3 = vcmp.eq.s32.totalorder %v612_v12, %v617_v13 }
 0x2ff   : > { %v625_v14 = vsel %vm621_vm3, %v555_v58, 0.0  ;;  %v640_v48 = vld [vmem:[#allocation3 + $0x8] sm:$0xff] (!%p803_p1) }
 0x300   : > { %627 = vadd.xlane.f32.xlu0 %v625_v14 }
 0x373   : > { %v584_v15 = vpop.permute.xlu1 %583 }
 0x374   : > { %v591_v16 = vsub.f32 %v555_v58, %v584_v15 }
 0x376   : > { %v593_v17 = vmul.f32 1.442695, %v591_v16 }
 0x377   : > { %v589_v18 = vpop.permute.xlu1 %588 }
 0x378   : > { %909 = vpow2.f32 %v593_v17  ;;  %v592_v19 = vsub.f32 %v558_v61, %v589_v18 }
 0x37a   : > { %v595_v20 = vmul.f32 1.442695, %v592_v19 }
 0x37b   : > { %v620_v22 = vpop.permute.xlu1 %619 }
 0x37c   : > { %911 = vpow2.f32 %v595_v20  ;;  %vm622_vm4 = vcmp.eq.s32.totalorder %v612_v12, %v620_v22 }
 0x37d   : > { %v626_v24 = vsel %vm622_vm4, %v558_v61, 0.0  ;;  %913 = vpow2.f32 %v575_v28 }
 0x37e   : > { %915 = vpow2.f32 %v577_v29 }
 0x382   : > { %v910_v21 = vpop.eup %909 }
 0x383   : > { %597 = vadd.xlane.f32.xlu1 %v910_v21 }
 0x386   : > { %v912_v23 = vpop.eup %911 }
 0x387   : > { %599 = vadd.xlane.f32.xlu1 %v912_v23  ;;  %v914_v30 = vpop.eup %913 }
 0x388   : > { %v579_v32 = vmul.f32 %v914_v30, %v571_v31  ;;  %v916_v33 = vpop.eup %915 }
 0x389   : > { %v580_v37 = vmul.f32 %v916_v33, %v572_v35 }
 0x38b   : > { %629 = vadd.xlane.f32.xlu1 %v626_v24 }
 0x38d   : > { %v628_v26 = vpop.xlane.xlu0 %627 }
 0x38e   : > { %v631_v27 = vadd.f32 %v628_v26, %v623_v25 }
 0x390   : > { %633 = vst.msk [vmem:[#allocation5] sm:$0xff] %vm603_vm2, %v631_v27 }
 0x397   : > { %v649_v51 = vld [vmem:[#allocation5] sm:$0xff] (!%p803_p1) }
 0x410   : > { %v598_v34 = vpop.xlane.xlu1 %597 }
 0x411   : > { %v601_v36 = vadd.f32 %v598_v34, %v579_v32 }
 0x413   : > { %604 = vst.msk [vmem:[#allocation4] sm:$0xff] %vm603_vm2, %v601_v36 }
 0x414   : > { %v600_v38 = vpop.xlane.xlu1 %599 }
 0x415   : > { %v602_v39 = vadd.f32 %v600_v38, %v580_v37  ;;  %638 = sbr.rel (%p803_p1) target bundleno = 1283 (0x503), region = 93 }
 0x417   : > { %605 = vst.msk [vmem:[#allocation4 + $0x8] sm:$0xff] %vm603_vm2, %v602_v39 }
 0x418   : > { %v630_v41 = vpop.xlane.xlu1 %629 }
 0x419   : > { %v632_v42 = vadd.f32 %v630_v41, %v624_v40 }
 0x41a   : > { %v641_v43 = vld [vmem:[#allocation4] sm:$0xff] (!%p803_p1) }
 0x41b   : > { %634 = vst.msk [vmem:[#allocation5 + $0x8] sm:$0xff] %vm603_vm2, %v632_v42  ;;  %917 = vlog2.f32 (!%p803_p1), %v641_v43 }
 0x41e   : > { %v642_v44 = vld [vmem:[#allocation4 + $0x8] sm:$0xff] }
 0x41f   : > { %919 = vlog2.f32 %v642_v44 }
 0x422   : > { %v650_v53 = vld [vmem:[#allocation5 + $0x8] sm:$0xff] }
 0x425   : > { %v918_v45 = vpop.eup %917 }
 0x426   : > { %v644_v49 = vmul.f32 0.6931472, %v918_v45 }
 0x428   : > { %v647_v52 = vadd.f32 %v644_v49, %v639_v46 }
 0x429   : > { %v920_v47 = vpop.eup %919 }
 0x42a   : > { %v646_v50 = vmul.f32 0.6931472, %v920_v47  ;;  %v651_v55 = vsub.f32 %v647_v52, %v649_v51 }
 0x42c   : > { %v648_v54 = vadd.f32 %v646_v50, %v640_v48  ;;  %v653_v57 = vsel %vm603_vm2, %v651_v55, 0.0 }
 0x42e   : > { %v652_v56 = vsub.f32 %v648_v54, %v650_v53 }
 0x430   : > { %v654_v58 = vsel %vm603_vm2, %v652_v56, 0.0 }
 0x431   : > { %v655_v59 = vadd.f32 %v654_v58, %v653_v57 }
 0x433   : > { %656 = vadd.xlane.f32.xlu0 %v655_v59 }
 0x4c0   : > { %v657_v60 = vpop.xlane.xlu0 %656 }
 0x4c1   : > { %v658_v61 = vrot.slane %v657_v60, 4 }
 0x4c3   : > { %v659_v62 = vadd.f32 %v658_v61, %v657_v60 }
 0x4c5   : > { %v660_v63 = vrot.slane %v659_v62, 2 }
 0x4c7   : > { %v661_v0 = vadd.f32 %v660_v63, %v659_v62 }
 0x4c9   : > { %v662_v1 = vrot.slane %v661_v0, 1 }
 0x4cb   : > { %v663_v2 = vadd.f32 %v662_v1, %v661_v0 }
 0x4cd   : > { %839 = vpush %v663_v2 }
 0x4fe   : > { %s840_s18 = spop %839 }
 0x4ff   : > { %v665_v3 = vstv %s840_s18 }
 0x500   : > { %v667_v4 = vmul.f32 0.0625, %v665_v3 }
 0x502   : > { %669 = vst.msk [vmem:[#allocation9] sm:$0x1] %vm668_vm5, %v667_v4 }
 0x503 PF: > { %s1210_s22 = scalar_lea.hbm %s1285_s6, %s802_s23  ;;  %s683_s29 = sshll.u32 %s1157_s14, 4  ;;  %s1213_s29 = int_to_ptr.vmem [resolvable:$true] %s683_s29 }
 0x504   : > { %s671_s8 = scalar_lea.sflag [#allocation8], %s1143_s20  ;;  %s921_s15 = scalar_lea.vmem %s1213_s29, 256 }
 0x505   : > { %p922_p2 = scmp.ne.s32.totalorder %s1213_s29, %s921_s15  ;;  %s1020_s13 = smov [#allocation7]  }
 0x506   : > { %s925_s16 = sshll.u32 %s1020_s13, 4  ;;  %s926_s16 = int_to_ptr.vmem [resolvable:$false] %s925_s16 }
 0x507   : > { %p923_p4 = pnand %p922_p2, %p1106_p6  ;;  %s927_s9 = scalar_lea.vmem %s926_s16, 512 }
 0x508   : > { %p928_p7 = scmp.lt.s32.totalorder %s1213_s29, %s926_s16  ;;  %p929_p10 = scmp.lt.s32.totalorder %s927_s9, %s921_s15 }
 0x509   : > { %p924_p5 = pneg %p923_p4 }
 0x50a   : > { %p930_p11 = por %p929_p10, %p928_p7 }
 0x50c   : > { %p931_p12 = pnand %p930_p11, %p924_p5 }
 0x50e   : > { %934 = shalt.err (!%p931_p12)
}
 0x50f   : > { %s935_s14 = scalar_lea.hbm %s1210_s22, 256  ;;  %s939_s18 = scalar_lea.hbm %s1285_s6, 512 }
 0x510   : > { %p936_p13 = scmp.ne.s32.totalorder %s1210_s22, %s935_s14  ;;  %p940_p2 = scmp.lt.u32.totalorder %s1210_s22, %s1285_s6 }
 0x511   : > { %p941_p4 = scmp.lt.u32.totalorder %s939_s18, %s935_s14  ;;  %p943_p7 = scmp.lt.u32.totalorder %s935_s14, %s1210_s22 }
 0x512   : > { %p937_p0 = pnand %p936_p13, %p1106_p6 }
 0x513   : > { %p942_p5 = por %p941_p4, %p940_p2 }
 0x514   : > { %p938_p1 = pneg %p937_p0 }
 0x515   : > { %p944_p10 = por %p943_p7, %p942_p5 }
 0x517   : > { %p945_p11 = pnand %p944_p10, %p938_p1 }
 0x519   : > { %948 = shalt.err (!%p945_p11)
}
 0x51a   : > { %s1021_s15 = smov 128   ;;  %s1022_s13 = smov 256  }
 0x51b   : > { %s1023_s16 = smov 8   ;;  %s1024_s9 = smov [#allocation9]  }
 0x51c   : > { %841 = dma.vmem_to_hbm [thread:$0]  (%p1106_p6), %s1213_s29, 256, %s1210_s22, %s671_s8, %s1021_s15, %s1022_s13, %s1023_s16  }
 0x51d   : > { %s697_s23 = sshll.u32 %s1024_s9, 4  ;;  %s698_s23 = int_to_ptr.vmem [resolvable:$true] %s697_s23 }
 0x51e   : > { %s949_s17 = scalar_lea.vmem %s698_s23, 16  ;;  %s955_s14 = scalar_lea.vmem %s698_s23, 32 }
 0x51f   : > { %p950_p12 = scmp.ne.s32.totalorder %s698_s23, %s949_s17  ;;  %p956_p1 = scmp.lt.s32.totalorder %s698_s23, %s698_s23 }
 0x520   : > { %p957_p2 = scmp.lt.s32.totalorder %s955_s14, %s949_s17 }
 0x521   : > { %p951_p13 = pnand %p950_p12, %p176_p3 }
 0x522   : > { %p958_p4 = por %p957_p2, %p956_p1 }
 0x523   : > { %p952_p0 = pneg %p951_p13 }
 0x525   : > { %p959_p5 = pnand %p958_p4, %p952_p0 }
 0x527   : > { %962 = shalt.err (!%p959_p5)
}
 0x528   : > { %s963_s11 = scalar_lea.hbm %s1286_s7, 16 }
 0x529   : > { %p964_p6 = scmp.ne.s32.totalorder %s1286_s7, %s963_s11  ;;  %p969_p11 = scmp.lt.u32.totalorder %s963_s11, %s1286_s7 }
 0x52b   : > { %p965_p7 = pnand %p964_p6, %p176_p3 }
 0x52d   : > { %p966_p10 = pneg %p965_p7 }
 0x52f   : > { %p971_p12 = pnand %p969_p11, %p966_p10 }
 0x531   : > { %974 = shalt.err (!%p971_p12)
}
 0x532   : > { %843 = dma.vmem_to_hbm [thread:$0]  (%p176_p3), %s698_s23, 16, %s1286_s7, [#allocation10]  }
 0x533   : > { %992 = dma.done.wait (%p176_p3), [#allocation10], 16  }
 0x534   : > { %994 = vsyncadd (%p176_p3), [#allocation10], 4294967280 }
 0x535 PF: > { %s713_s13 = sand.u32 1, %s1001_s24   ;;  %p848_p13 = pnand %p784_p9, %p1110_p8 }
 0x536   : > { %s714_s16 = scalar_lea.sflag [#allocation8], %s713_s13 }
 0x537   : > { %996 = dma.done.wait (!%p848_p13), %s714_s16, 256  }
 0x538   : > { %998 = vsyncadd (!%p848_p13), %s714_s16, 4294967040  ;;  %p19_p0 = scmp.ge.s32.totalorder %s1090_s30, 4   ;;  %s1289_s24 = smov %s1005_s25 }
 0x539   : > { %s1290_s25 = smov %s1009_s26  ;;  %s1291_s26 = smov %s1102_s10 }
 0x53a   : > { %s1292_s27 = smov %s1090_s30  ;;  %21 = sbr.rel (!%p19_p0) target bundleno = 4 (0x4), region = 144 }
 0x541   :  { %719 = vsyncpa [#allocation8], 1 }
 0x542   :  { %721 = vsyncpa [#allocation8 + $0x1], 1 }
 0x543   :  { %722 = vsyncpa [#allocation10], 1 }

// kernel: gpt_forward.4
= control target key start
LH: loop header
LB: loop body
LE: loop exit
PB: predicated region body
PF: predicated region fallthrough
CT: control target
= control target key end

     0   :  { %v2316_v3 = vmov 0.0   ;;  %v2317_v30 = vmov 0   ;;  %vm2318_vm0 = vmmov 0   ;;  %vm405_vm1 = vcmask 261120   ;;  %s2321_s26 = smov 32   ;;  %s2907_s0 = inlined_call_operand.vmem [shape: f32[16,128], index: 0, kind: input, shape index: {}]   ;;  %s2908_s4 = inlined_call_operand.vmem [shape: bf16[128,384], index: 4, kind: input, shape index: {}]   ;;  %s2909_s2 = inlined_call_operand.vmem [shape: f32[1,128], index: 2, kind: input, shape index: {}]   ;;  %s2910_s3 = inlined_call_operand.vmem [shape: f32[1,128], index: 3, kind: input, shape index: {}]   ;;  %s2911_s1 = inlined_call_operand.vmem [shape: f32[16,16], index: 1, kind: input, shape index: {}]   ;;  %s2912_s5 = inlined_call_operand.vmem [shape: bf16[128,128], index: 5, kind: input, shape index: {}]   ;;  %s2913_s6 = inlined_call_operand.vmem [shape: f32[1,128], index: 6, kind: input, shape index: {}]   ;;  %s2914_s9 = inlined_call_operand.vmem [shape: bf16[128,512], index: 9, kind: input, shape index: {}]   ;;  %s2915_s7 = inlined_call_operand.vmem [shape: f32[1,128], index: 7, kind: input, shape index: {}]   ;;  %s2916_s8 = inlined_call_operand.vmem [shape: f32[1,128], index: 8, kind: input, shape index: {}]   ;;  %s2917_s11 = inlined_call_operand.vmem [shape: bf16[512,128], index: 11, kind: input, shape index: {}]   ;;  %s2918_s10 = inlined_call_operand.vmem [shape: f32[1,512], index: 10, kind: input, shape index: {}]   ;;  %s2919_s12 = inlined_call_operand.vmem [shape: f32[1,128], index: 12, kind: input, shape index: {}]   ;;  %s2920_s13 = inlined_call_operand.vmem [shape: f32[16,128], index: 13, kind: output, shape index: {}]  }
   0x1   :  { %v2395_v0 = vld [vmem:[%s2907_s0] sm:$0xff]  ;;  %v2401_v1 = vld [vmem:[%s2907_s0 + $0x8] sm:$0xff]  ;;  %1986 = vmatprep.subr.bf16.mxu1 %v2316_v3  ;;  %v2150_v18 = vld [vmem:[%s2908_s4 + $0x30] ss:$12 sps:$4 sm:$0xff]   ;;  %281 = vmatprep.mubr.bf16.mxu0 %v2317_v30  ;;  %vm612_vm2 = vcmask 130048   ;;  %vm907_vm3 = vcmask 523264  }
   0x2   :  { %49 = vadd.xlane.f32.xlu0 %v2395_v0  ;;  %v2140_v2 = vld [vmem:[%s2908_s4 + $0x4] ss:$12 sps:$4 sm:$0xff]   ;;  %v2142_v4 = vld [vmem:[%s2908_s4] ss:$12 sps:$4 sm:$0xff]   ;;  %v2143_v5 = vld [vmem:[%s2908_s4 + $0x8] ss:$12 sps:$4 sm:$0xff]   ;;  %2002 = vmatprep.mubr.msk.bf16.mxu1 %vm2318_vm0, %v2316_v3 }
   0x3   :  { %249 = vmatprep.subr.bf16.mxu0 %v2140_v2  ;;  %v2144_v6 = vld [vmem:[%s2908_s4 + $0x1c] ss:$12 sps:$4 sm:$0xff]   ;;  %1987 = vmatpush3.bf16.msra.mxu1 %v2143_v5  ;;  %v2146_v15 = vld [vmem:[%s2908_s4 + $0x18] ss:$12 sps:$4 sm:$0xff]   ;;  %v2147_v16 = vld [vmem:[%s2908_s4 + $0x20] ss:$12 sps:$4 sm:$0xff]  }
   0x4   :  { %250 = vmatpush1.bf16.msra.mxu0 %v2142_v4  ;;  %1988 = vmatprep.subr.bf16.mxu1 %v2316_v3  ;;  %v2148_v17 = vld [vmem:[%s2908_s4 + $0x34] ss:$12 sps:$4 sm:$0xff]   ;;  %v2151_v19 = vld [vmem:[%s2908_s4 + $0x38] ss:$12 sps:$4 sm:$0xff]   ;;  %v2155_v22 = vld [vmem:[%s2908_s4 + $0x50] ss:$12 sps:$4 sm:$0xff]  }
   0x5   :  { %251 = vmatprep.subr.bf16.mxu0 %v2144_v6  ;;  %v2152_v20 = vld [vmem:[%s2908_s4 + $0x4c] ss:$12 sps:$4 sm:$0xff]   ;;  %v2154_v21 = vld [vmem:[%s2908_s4 + $0x48] ss:$12 sps:$4 sm:$0xff]   ;;  %v2156_v23 = vld [vmem:[%s2908_s4 + $0x64] ss:$12 sps:$4 sm:$0xff]  }
   0x6   :  { %51 = vadd.xlane.f32.xlu0 %v2401_v1  ;;  %v2158_v24 = vld [vmem:[%s2908_s4 + $0x60] ss:$12 sps:$4 sm:$0xff]   ;;  %v2159_v25 = vld [vmem:[%s2908_s4 + $0x68] ss:$12 sps:$4 sm:$0xff]   ;;  %v2162_v27 = vld [vmem:[%s2908_s4 + $0x78] ss:$12 sps:$4 sm:$0xff]  }
   0x7   :  { %1989 = vmatpush3.bf16.msra.mxu1 %v2147_v16  ;;  %v2160_v26 = vld [vmem:[%s2908_s4 + $0x7c] ss:$12 sps:$4 sm:$0xff]   ;;  %v2163_v28 = vld [vmem:[%s2908_s4 + $0x80] ss:$12 sps:$4 sm:$0xff]   ;;  %v2167_v32 = vld [vmem:[%s2908_s4 + $0x98] ss:$12 sps:$4 sm:$0xff]  }
   0x8   :  { %252 = vmatpush1.bf16.msra.mxu0 %v2146_v15  ;;  %1990 = vmatprep.subr.bf16.mxu1 %v2316_v3  ;;  %v2164_v29 = vld [vmem:[%s2908_s4 + $0x94] ss:$12 sps:$4 sm:$0xff]   ;;  %v2166_v31 = vld [vmem:[%s2908_s4 + $0x90] ss:$12 sps:$4 sm:$0xff]   ;;  %v2168_v33 = vld [vmem:[%s2908_s4 + $0xac] ss:$12 sps:$4 sm:$0xff]  }
   0x9   :  { %253 = vmatprep.subr.bf16.mxu0 %v2148_v17  ;;  %v2170_v34 = vld [vmem:[%s2908_s4 + $0xa8] ss:$12 sps:$4 sm:$0xff]   ;;  %v2171_v35 = vld [vmem:[%s2908_s4 + $0xb0] ss:$12 sps:$4 sm:$0xff]   ;;  %v1798_v44 = vld [vmem:[%s2909_s2] ss:$0 sm:$0xff] }
   0xa   :  { %v1799_v48 = vld [vmem:[%s2910_s3] ss:$0 sm:$0xff]  ;;  %s2319_s2 = smov 96   ;;  %s2320_s3 = smov 64   ;;  %vm910_vm4 = vcmask 785408  }
   0xb   :  { %1991 = vmatpush3.bf16.msra.mxu1 %v2151_v19 }
   0xc   :  { %254 = vmatpush1.bf16.msra.mxu0 %v2150_v18  ;;  %1992 = vmatprep.subr.bf16.mxu1 %v2316_v3 }
   0xd   :  { %255 = vmatprep.subr.bf16.mxu0 %v2152_v20 }
   0xf   :  { %1993 = vmatpush3.bf16.msra.mxu1 %v2155_v22 }
  0x10   :  { %256 = vmatpush1.bf16.msra.mxu0 %v2154_v21  ;;  %1994 = vmatprep.subr.bf16.mxu1 %v2316_v3 }
  0x11   :  { %257 = vmatprep.subr.bf16.mxu0 %v2156_v23 }
  0x13   :  { %1995 = vmatpush3.bf16.msra.mxu1 %v2159_v25 }
  0x14   :  { %258 = vmatpush1.bf16.msra.mxu0 %v2158_v24  ;;  %1996 = vmatprep.subr.bf16.mxu1 %v2316_v3 }
  0x15   :  { %259 = vmatprep.subr.bf16.mxu0 %v2160_v26 }
  0x17   :  { %1997 = vmatpush3.bf16.msra.mxu1 %v2163_v28 }
  0x18   :  { %260 = vmatpush1.bf16.msra.mxu0 %v2162_v27  ;;  %1998 = vmatprep.subr.bf16.mxu1 %v2316_v3 }
  0x19   :  { %261 = vmatprep.subr.bf16.mxu0 %v2164_v29 }
  0x1b   :  { %1999 = vmatpush3.bf16.msra.mxu1 %v2167_v32 }
  0x1c   :  { %262 = vmatpush1.bf16.msra.mxu0 %v2166_v31  ;;  %2000 = vmatprep.subr.bf16.mxu1 %v2316_v3 }
  0x1d   :  { %263 = vmatprep.subr.bf16.mxu0 %v2168_v33 }
  0x1f   :  { %2001 = vmatpush3.bf16.msra.mxu1 %v2171_v35 }
  0x20   :  { %264 = vmatpush1.bf16.msra.mxu0 %v2170_v34  ;;  %2006 = vmatprep.subr.bf16.mxu1 %v2316_v3 }
  0x21   :  { %2030 = vmatprep.subr.bf16.mxu0 %v2316_v3 }
  0x8f   :  { %v50_v7 = vpop.xlane.xlu0 %49 }
  0x90   :  { %v54_v8 = vmul.f32 0.0078125, %v50_v7 }
  0x92   :  { %v2419_v9 = vsub.f32 %v2395_v0, %v54_v8 }
  0x93   :  { %v52_v10 = vpop.xlane.xlu0 %51 }
  0x94   :  { %v55_v11 = vmul.f32 0.0078125, %v52_v10  ;;  %v58_v12 = vmul.f32 %v2419_v9, %v2419_v9 }
  0x96   :  { %v2424_v13 = vsub.f32 %v2401_v1, %v55_v11  ;;  %60 = vadd.xlane.f32.xlu1 %v58_v12 }
  0x98   :  { %v59_v14 = vmul.f32 %v2424_v13, %v2424_v13 }
  0x9a   :  { %62 = vadd.xlane.f32.xlu1 %v59_v14 }
 0x123   :  { %v61_v36 = vpop.xlane.xlu1 %60 }
 0x124   :  { %v64_v37 = vmul.f32 0.0078125, %v61_v36  ;;  %v602_v36 = vld [vmem:[%s2911_s1] sm:$0xff] }
 0x126   :  { %v66_v38 = vadd.f32 1e-05, %v64_v37 }
 0x127   :  { %v63_v39 = vpop.xlane.xlu1 %62 }
 0x128   :  { %2260 = vrsqrt.f32 %v66_v38  ;;  %v65_v40 = vmul.f32 0.0078125, %v63_v39 }
 0x12a   :  { %v67_v41 = vadd.f32 1e-05, %v65_v40  ;;  %v603_v40 = vld [vmem:[%s2911_s1 + $0x8] sm:$0xff] }
 0x12c   :  { %2262 = vrsqrt.f32 %v67_v41 }
 0x132   :  { %v2261_v42 = vpop.eup %2260 }
 0x133   :  { %v70_v43 = vmul.f32 %v2261_v42, %v2419_v9 }
 0x135   :  { %v78_v47 = vmul.f32 %v1798_v44, %v70_v43 }
 0x136   :  { %v2263_v45 = vpop.eup %2262 }
 0x137   :  { %v71_v46 = vmul.f32 %v2263_v45, %v2424_v13  ;;  %v86_v50 = vadd.f32 %v1799_v48, %v78_v47 }
 0x139   :  { %v79_v49 = vmul.f32 %v1798_v44, %v71_v46 }
 0x13b   :  { %v87_v51 = vadd.f32 %v1799_v48, %v79_v49 }
 0x13d   :  { %v88_v52 = vpack.c.bf16 %v87_v51, %v86_v50 }
 0x13f   :  { %282 = vmatmul.mubr.bf16.vlgmr.msra.gmra.mrb[0].mxu0 %v88_v52  ;;  %2003 = vmatmul.mubr.bf16.vlgmr.msra.gmra.mrb[0].mxu1 %v88_v52 }
 0x140   :  { %2008 = vmatprep.mubr.msk.bf16.mxu1 %vm2318_vm0, %v2316_v3  ;;  %2032 = vmatprep.mubr.msk.bf16.mxu0 %vm2318_vm0, %v2316_v3 }
 0x212   :  { %v283_v53 = vpop.f32.mrb[0].mxu0  ;;  %v326_v54 = vpop.f32.mrb[0].mxu1 }
 0x213   :  { %v285_v55 = vpop.f32.mrb[1].mxu0  ;;  %v2004_v56 = vpop.f32.mrb[1].mxu1 }
 0x214   :  { %v287_v57 = vpop.f32.mrb[2].mxu0  ;;  %v329_v58 = vpop.f32.mrb[2].mxu1 }
 0x215   :  { %v393_v59 = vpack.c.bf16 %v287_v57, %v283_v53  ;;  %v401_v60 = vpack.c.bf16 %v329_v58, %v326_v54  ;;  %v289_v61 = vpop.f32.mrb[3].mxu0  ;;  %v2005_v62 = vpop.f32.mrb[3].mxu1  ;;  %v2085_v63 = vpack.i.bf16 %v287_v57, %v283_v53  ;;  %v2512_v5 = vpack.i.bf16 %v329_v58, %v326_v54 }
 0x216   :  { %v2080_v2 = vpack.i.bf16 %v289_v61, %v285_v55  ;;  %v397_v4 = vpack.c.bf16 %v289_v61, %v285_v55 }
 0x217   :  { %2031 = vmatpush3.bf16.msra.mxu0 %v401_v60  ;;  %2086 = vrot.lane.b32.xlu1 %v2085_v63, %s2319_s2 }
 0x218   :  { %2081 = vrot.lane.b32.xlu0 %v2080_v2, %s2319_s2  ;;  %v410_v6 = vsel %vm405_vm1, %v397_v4, 0  ;;  %2042 = vmatprep.subr.bf16.mxu0 %v2316_v3 }
 0x219   :  { %2007 = vmatpush3.bf16.xpose.msra.mxu1 %v410_v6 }
 0x21a   :  { %2012 = vmatprep.subr.bf16.mxu1 %v2316_v3 }
 0x21b   :  { %2091 = vrot.lane.b32.xlu1 %v2080_v2, %s2320_s3 }
 0x21c   :  { %2101 = vrot.lane.b32.xlu0 %v2080_v2, %s2321_s26 }
 0x21f   :  { %2096 = vrot.lane.b32.xlu1 %v2085_v63, %s2320_s3 }
 0x220   :  { %2009 = vmatmul.mubr.msk.bf16.vlgmr.msra.gmra.mrb[4].mxu1 %vm405_vm1, %v393_v59 }
 0x221   :  { %2014 = vmatprep.mubr.msk.bf16.mxu1 %vm2318_vm0, %v2316_v3 }
 0x223   :  { %2106 = vrot.lane.b32.xlu1 %v2085_v63, %s2321_s26 }
 0x289   :  { %v2087_v7 = vpop.permute.xlu1 %2086 }
 0x28a   :  { %v2082_v8 = vpop.permute.xlu0 %2081  ;;  %v2089_v16 = vunpack.i.h.bf16 %v2087_v7  ;;  %v2088_v17 = vunpack.i.l.bf16 %v2087_v7 }
 0x28b   :  { %v2084_v9 = vunpack.i.h.bf16 %v2082_v8  ;;  %v2083_v10 = vunpack.i.l.bf16 %v2082_v8 }
 0x28c   :  { %v394_v20 = vpack.c.bf16 %v2089_v16, %v2088_v17 }
 0x28d   :  { %v398_v11 = vpack.c.bf16 %v2084_v9, %v2083_v10  ;;  %v2092_v12 = vpop.permute.xlu1 %2091 }
 0x28e   :  { %v2094_v13 = vunpack.i.h.bf16 %v2092_v12  ;;  %v2093_v14 = vunpack.i.l.bf16 %v2092_v12  ;;  %v2102_v19 = vpop.permute.xlu0 %2101 }
 0x28f   :  { %v457_v15 = vsel %vm405_vm1, %v398_v11, 0  ;;  %v2104_v22 = vunpack.i.h.bf16 %v2102_v19  ;;  %v2103_v23 = vunpack.i.l.bf16 %v2102_v19 }
 0x290   :  { %2013 = vmatpush3.bf16.xpose.msra.mxu1 %v457_v15  ;;  %v399_v18 = vpack.c.bf16 %v2094_v13, %v2093_v14 }
 0x291   :  { %2018 = vmatprep.subr.bf16.mxu1 %v2316_v3  ;;  %v2097_v21 = vpop.permute.xlu1 %2096  ;;  %v400_v27 = vpack.c.bf16 %v2104_v22, %v2103_v23 }
 0x292   :  { %v504_v24 = vsel %vm405_vm1, %v399_v18, 0  ;;  %v2099_v25 = vunpack.i.h.bf16 %v2097_v21  ;;  %v2098_v26 = vunpack.i.l.bf16 %v2097_v21 }
 0x293   :  { %v551_v31 = vsel %vm405_vm1, %v400_v27, 0 }
 0x294   :  { %v395_v28 = vpack.c.bf16 %v2099_v25, %v2098_v26 }
 0x295   :  { %v2107_v29 = vpop.permute.xlu1 %2106 }
 0x296   :  { %v2109_v32 = vunpack.i.h.bf16 %v2107_v29  ;;  %v2108_v33 = vunpack.i.l.bf16 %v2107_v29 }
 0x297   :  { %2015 = vmatmul.mubr.msk.bf16.vlgmr.msra.gmra.mrb[8].mxu1 %vm405_vm1, %v394_v20 }
 0x298   :  { %2019 = vmatpush3.bf16.xpose.msra.mxu1 %v504_v24  ;;  %2020 = vmatprep.mubr.msk.bf16.mxu1 %vm2318_vm0, %v2316_v3  ;;  %v396_v34 = vpack.c.bf16 %v2109_v32, %v2108_v33 }
 0x299   :  { %2024 = vmatprep.subr.bf16.mxu1 %v2316_v3 }
 0x29f   :  { %2021 = vmatmul.mubr.msk.bf16.vlgmr.msra.gmra.mrb[12].mxu1 %vm405_vm1, %v395_v28 }
 0x2a0   :  { %2025 = vmatpush3.bf16.xpose.msra.mxu1 %v551_v31  ;;  %2026 = vmatprep.mubr.msk.bf16.mxu1 %vm2318_vm0, %v2316_v3 }
 0x2a1   :  { %2036 = vmatprep.subr.bf16.mxu1 %v2316_v3 }
 0x2a7   :  { %2027 = vmatmul.mubr.msk.bf16.vlgmr.msra.gmra.mrb[16].mxu1 %vm405_vm1, %v396_v34 }
 0x2a8   :  { %2038 = vmatprep.mubr.msk.bf16.mxu1 %vm2318_vm0, %v2316_v3 }
 0x2f3   :  { %v446_v35 = vpop.f32.mrb[4].mxu1 }
 0x2f4   :  { %v594_v37 = vmul.f32 0.17677669, %v446_v35  ;;  %v2010_v38 = vpop.f32.mrb[5].mxu1 }
 0x2f5   :  { %v449_v39 = vpop.f32.mrb[6].mxu1 }
 0x2f6   :  { %v595_v41 = vmul.f32 0.17677669, %v449_v39  ;;  %v2011_v42 = vpop.f32.mrb[7].mxu1  ;;  %v604_v43 = vadd.f32 %v602_v36, %v594_v37 }
 0x2f8   :  { %v613_v44 = vsel %vm612_vm2, %v604_v43, -inf  ;;  %v605_v45 = vadd.f32 %v603_v40, %v595_v41 }
 0x2f9   :  { %614 = vmax.xlane.f32.xlu0 %v613_v44 }
 0x2fa   :  { %v616_v46 = vsel %vm612_vm2, %v605_v45, -inf }
 0x2fb   :  { %617 = vmax.xlane.f32.xlu1 %v616_v46 }
 0x36a   :  { %v493_v47 = vpop.f32.mrb[8].mxu1 }
 0x36b   :  { %v596_v48 = vmul.f32 0.17677669, %v493_v47  ;;  %v2016_v49 = vpop.f32.mrb[9].mxu1 }
 0x36c   :  { %v496_v50 = vpop.f32.mrb[10].mxu1 }
 0x36d   :  { %v597_v51 = vmul.f32 0.17677669, %v496_v50  ;;  %v2017_v52 = vpop.f32.mrb[11].mxu1  ;;  %v606_v53 = vadd.f32 %v602_v36, %v596_v48 }
 0x36f   :  { %v619_v54 = vsel %vm612_vm2, %v606_v53, -inf  ;;  %v607_v55 = vadd.f32 %v603_v40, %v597_v51 }
 0x370   :  { %620 = vmax.xlane.f32.xlu0 %v619_v54 }
 0x371   :  { %v622_v59 = vsel %vm612_vm2, %v607_v55, -inf }
 0x372   :  { %v540_v56 = vpop.f32.mrb[12].mxu1 }
 0x373   :  { %v598_v57 = vmul.f32 0.17677669, %v540_v56  ;;  %v2022_v58 = vpop.f32.mrb[13].mxu1 }
 0x374   :  { %623 = vmax.xlane.f32.xlu0 %v622_v59  ;;  %v543_v60 = vpop.f32.mrb[14].mxu1 }
 0x375   :  { %v599_v61 = vmul.f32 0.17677669, %v543_v60  ;;  %v2023_v62 = vpop.f32.mrb[15].mxu1  ;;  %v608_v63 = vadd.f32 %v602_v36, %v598_v57 }
 0x377   :  { %v625_v2 = vsel %vm612_vm2, %v608_v63, -inf  ;;  %v609_v4 = vadd.f32 %v603_v40, %v599_v61 }
 0x378   :  { %626 = vmax.xlane.f32.xlu0 %v625_v2 }
 0x379   :  { %v628_v6 = vsel %vm612_vm2, %v609_v4, -inf }
 0x37a   :  { %629 = vmax.xlane.f32.xlu1 %v628_v6  ;;  %v587_v7 = vpop.f32.mrb[16].mxu1 }
 0x37b   :  { %v600_v8 = vmul.f32 0.17677669, %v587_v7  ;;  %v2028_v9 = vpop.f32.mrb[17].mxu1 }
 0x37c   :  { %v590_v10 = vpop.f32.mrb[18].mxu1 }
 0x37d   :  { %v601_v11 = vmul.f32 0.17677669, %v590_v10  ;;  %v2029_v12 = vpop.f32.mrb[19].mxu1  ;;  %v610_v13 = vadd.f32 %v602_v36, %v600_v8 }
 0x37f   :  { %v631_v14 = vsel %vm612_vm2, %v610_v13, -inf  ;;  %v2553_v15 = vadd.f32 %v603_v40, %v601_v11 }
 0x380   :  { %632 = vmax.xlane.f32.xlu0 %v631_v14 }
 0x381   :  { %v634_v16 = vsel %vm612_vm2, %v2553_v15, -inf }
 0x382   :  { %635 = vmax.xlane.f32.xlu1 %v634_v16 }
 0x386   :  { %v615_v17 = vpop.xlane.xlu0 %614 }
 0x387   :  { %v637_v18 = vsub.f32 %v604_v43, %v615_v17 }
 0x388   :  { %v618_v19 = vpop.xlane.xlu1 %617 }
 0x389   :  { %v645_v20 = vmul.f32 1.442695, %v637_v18  ;;  %v638_v21 = vsub.f32 %v605_v45, %v618_v19 }
 0x38b   :  { %2264 = vpow2.f32 %v645_v20  ;;  %v647_v22 = vmul.f32 1.442695, %v638_v21 }
 0x38d   :  { %2266 = vpow2.f32 %v647_v22 }
 0x395   :  { %v2265_v23 = vpop.eup %2264 }
 0x396   :  { %v661_v24 = vsel %vm612_vm2, %v2265_v23, 0.0 }
 0x397   :  { %v2267_v25 = vpop.eup %2266  ;;  %662 = vadd.xlane.f32.xlu0 %v661_v24 }
 0x398   :  { %v664_v26 = vsel %vm612_vm2, %v2267_v25, 0.0 }
 0x399   :  { %665 = vadd.xlane.f32.xlu1 %v664_v26 }
 0x3fd   :  { %v621_v27 = vpop.xlane.xlu0 %620 }
 0x3fe   :  { %v639_v28 = vsub.f32 %v606_v53, %v621_v27 }
 0x400   :  { %v649_v29 = vmul.f32 1.442695, %v639_v28 }
 0x401   :  { %v624_v31 = vpop.xlane.xlu0 %623 }
 0x402   :  { %2268 = vpow2.f32 %v649_v29  ;;  %v640_v32 = vsub.f32 %v607_v55, %v624_v31 }
 0x404   :  { %v651_v33 = vmul.f32 1.442695, %v640_v32 }
 0x405   :  { %v627_v34 = vpop.xlane.xlu0 %626 }
 0x406   :  { %2270 = vpow2.f32 %v651_v33  ;;  %v641_v35 = vsub.f32 %v608_v63, %v627_v34 }
 0x407   :  { %v630_v36 = vpop.xlane.xlu1 %629 }
 0x408   :  { %v653_v37 = vmul.f32 1.442695, %v641_v35  ;;  %v642_v38 = vsub.f32 %v609_v4, %v630_v36 }
 0x40a   :  { %2272 = vpow2.f32 %v653_v37  ;;  %v655_v39 = vmul.f32 1.442695, %v642_v38 }
 0x40c   :  { %v2559_v40 = vpop.eup %2268  ;;  %2274 = vpow2.f32 %v655_v39 }
 0x40d   :  { %v633_v41 = vpop.xlane.xlu0 %632  ;;  %v667_v42 = vsel %vm612_vm2, %v2559_v40, 0.0 }
 0x40e   :  { %v643_v43 = vsub.f32 %v610_v13, %v633_v41  ;;  %668 = vadd.xlane.f32.xlu0 %v667_v42  ;;  %v2172_v42 = vld [vmem:[%s2912_s5] sm:$0xff]  }
 0x40f   :  { %v636_v53 = vpop.xlane.xlu1 %635 }
 0x410   :  { %v2271_v44 = vpop.eup %2270  ;;  %v657_v45 = vmul.f32 1.442695, %v643_v43  ;;  %v644_v61 = vsub.f32 %v2553_v15, %v636_v53  ;;  %v2173_v43 = vld [vmem:[%s2912_s5 + $0x8] sm:$0xff]  }
 0x411   :  { %v670_v46 = vsel %vm612_vm2, %v2271_v44, 0.0 }
 0x412   :  { %2276 = vpow2.f32 %v657_v45  ;;  %671 = vadd.xlane.f32.xlu1 %v670_v46  ;;  %v659_v62 = vmul.f32 1.442695, %v644_v61 }
 0x414   :  { %v2273_v47 = vpop.eup %2272 }
 0x415   :  { %v673_v48 = vsel %vm612_vm2, %v2273_v47, 0.0 }
 0x416   :  { %v2275_v49 = vpop.eup %2274  ;;  %674 = vadd.xlane.f32.xlu0 %v673_v48 }
 0x417   :  { %v676_v50 = vsel %vm612_vm2, %v2275_v49, 0.0 }
 0x418   :  { %677 = vadd.xlane.f32.xlu1 %v676_v50 }
 0x41c   :  { %v2566_v51 = vpop.eup %2276 }
 0x41d   :  { %v679_v52 = vsel %vm612_vm2, %v2566_v51, 0.0 }
 0x41e   :  { %680 = vadd.xlane.f32.xlu0 %v679_v52 }
 0x424   :  { %v663_v54 = vpop.xlane.xlu0 %662 }
 0x425   :  { %2278 = vrcp.f32 %v663_v54 }
 0x426   :  { %v666_v55 = vpop.xlane.xlu1 %665 }
 0x427   :  { %2280 = vrcp.f32 %v666_v55  ;;  %v2175_v55 = vld [vmem:[%s2912_s5 + $0x18] sm:$0xff]  }
 0x428   :  { %2282 = vpow2.f32 %v659_v62 }
 0x429   :  { %2116 = vrot.lane.b32.xlu1 %v2512_v5, %s2320_s3 }
 0x42f   :  { %v2279_v56 = vpop.eup %2278 }
 0x430   :  { %v686_v58 = vmul.f32 %v2279_v56, %v2265_v23  ;;  %v2176_v56 = vld [vmem:[%s2912_s5 + $0x20] sm:$0xff]  }
 0x431   :  { %v2281_v57 = vpop.eup %2280 }
 0x432   :  { %v688_v59 = vmul.f32 %v2281_v57, %v2267_v25  ;;  %v2283_v63 = vpop.eup %2282  ;;  %v2177_v57 = vld [vmem:[%s2912_s5 + $0x28] sm:$0xff]  }
 0x433   :  { %v682_v2 = vsel %vm612_vm2, %v2283_v63, 0.0 }
 0x434   :  { %2111 = vrot.lane.b32.xlu0 %v2512_v5, %s2319_s2  ;;  %v701_v60 = vpack.c.bf16 %v688_v59, %v686_v58  ;;  %v2178_v58 = vld [vmem:[%s2912_s5 + $0x30] sm:$0xff]   ;;  %v2179_v59 = vld [vmem:[%s2912_s5 + $0x38] sm:$0xff]  }
 0x436   :  { %2033 = vmatmul.mubr.msk.bf16.vlgmr.msra.gmra.mrb[4].mxu0 %vm612_vm2, %v701_v60 }
 0x437   :  { %2044 = vmatprep.mubr.msk.bf16.mxu0 %vm2318_vm0, %v2316_v3 }
 0x44d   :  { %683 = vadd.xlane.f32.xlu1 %v682_v2 }
 0x45e   :  { %2121 = vrot.lane.b32.xlu1 %v2512_v5, %s2321_s26 }
 0x49b   :  { %v669_v4 = vpop.xlane.xlu0 %668 }
 0x49f   :  { %v672_v6 = vpop.xlane.xlu1 %671 }
 0x4a0   :  { %2284 = vrcp.f32 %v672_v6 }
 0x4a3   :  { %v675_v7 = vpop.xlane.xlu0 %674 }
 0x4a4   :  { %2286 = vrcp.f32 %v675_v7 }
 0x4a5   :  { %2288 = vrcp.f32 %v669_v4  ;;  %v678_v8 = vpop.xlane.xlu1 %677 }
 0x4a6   :  { %2290 = vrcp.f32 %v678_v8 }
 0x4a9   :  { %v2117_v9 = vpop.permute.xlu1 %2116 }
 0x4aa   :  { %v2119_v10 = vunpack.i.h.bf16 %v2117_v9  ;;  %v2118_v11 = vunpack.i.l.bf16 %v2117_v9  ;;  %v2285_v14 = vpop.eup %2284 }
 0x4ab   :  { %v681_v12 = vpop.xlane.xlu0 %680  ;;  %v692_v20 = vmul.f32 %v2285_v14, %v2271_v44 }
 0x4ac   :  { %v403_v13 = vpack.c.bf16 %v2119_v10, %v2118_v11  ;;  %2292 = vrcp.f32 %v681_v12 }
 0x4ae   :  { %v2287_v15 = vpop.eup %2286  ;;  %2043 = vmatpush3.bf16.msra.mxu0 %v403_v13 }
 0x4af   :  { %v2289_v16 = vpop.eup %2288  ;;  %v2112_v17 = vpop.permute.xlu0 %2111  ;;  %2054 = vmatprep.subr.bf16.mxu0 %v2316_v3  ;;  %v694_v21 = vmul.f32 %v2287_v15, %v2273_v47 }
 0x4b0   :  { %v2291_v5 = vpop.eup %2290  ;;  %v2114_v18 = vunpack.i.h.bf16 %v2112_v17  ;;  %v2113_v19 = vunpack.i.l.bf16 %v2112_v17  ;;  %v690_v24 = vmul.f32 %v2289_v16, %v2559_v40 }
 0x4b1   :  { %v696_v22 = vmul.f32 %v2291_v5, %v2275_v49 }
 0x4b2   :  { %v402_v23 = vpack.c.bf16 %v2114_v18, %v2113_v19  ;;  %v702_v26 = vpack.c.bf16 %v692_v20, %v690_v24  ;;  %v1832_v19 = vld [vmem:[%s2913_s6] ss:$0 sm:$0xff] }
 0x4b3   :  { %v703_v25 = vpack.c.bf16 %v696_v22, %v694_v21 }
 0x4b4   :  { %2037 = vmatpush3.bf16.msra.mxu1 %v402_v23 }
 0x4b5   :  { %2045 = vmatmul.mubr.msk.bf16.vlgmr.msra.gmra.mrb[8].mxu0 %vm612_vm2, %v703_v25  ;;  %2048 = vmatprep.subr.bf16.mxu1 %v2316_v3 }
 0x4b6   :  { %2070 = vmatprep.mubr.msk.bf16.mxu0 %vm2318_vm0, %v2316_v3  ;;  %v2293_v33 = vpop.eup %2292  ;;  %2055 = vmatpush3.bf16.msra.mxu0 %v2172_v42  ;;  %v2194_v42 = vld [vmem:[%s2914_s9 + $0x44] ss:$16 sps:$4 sm:$0xff]  }
 0x4b7   :  { %2039 = vmatmul.mubr.msk.bf16.vlgmr.msra.gmra.mrb[20].mxu1 %vm612_vm2, %v702_v26  ;;  %v698_v35 = vmul.f32 %v2293_v33, %v2566_v51  ;;  %2056 = vmatprep.subr.bf16.mxu0 %v2316_v3  ;;  %v2174_v51 = vld [vmem:[%s2912_s5 + $0x10] sm:$0xff]   ;;  %v2191_v33 = vld [vmem:[%s2914_s9 + $0x2c] ss:$16 sps:$4 sm:$0xff]  }
 0x4b8   :  { %2050 = vmatprep.mubr.msk.bf16.mxu1 %vm2318_vm0, %v2316_v3 }
 0x4ba   :  { %2057 = vmatpush3.bf16.msra.mxu0 %v2173_v43  ;;  %v2197_v43 = vld [vmem:[%s2914_s9 + $0x4c] ss:$16 sps:$4 sm:$0xff]  }
 0x4bb   :  { %2058 = vmatprep.subr.bf16.mxu0 %v2316_v3 }
 0x4be   :  { %2059 = vmatpush3.bf16.msra.mxu0 %v2174_v51  ;;  %v2209_v51 = vld [vmem:[%s2914_s9 + $0x8c] ss:$16 sps:$4 sm:$0xff]  }
 0x4bf   :  { %2060 = vmatprep.subr.bf16.mxu0 %v2316_v3 }
 0x4c2   :  { %2061 = vmatpush3.bf16.msra.mxu0 %v2175_v55  ;;  %v2215_v55 = vld [vmem:[%s2914_s9 + $0xac] ss:$16 sps:$4 sm:$0xff]  }
 0x4c3   :  { %2062 = vmatprep.subr.bf16.mxu0 %v2316_v3 }
 0x4c6   :  { %2063 = vmatpush3.bf16.msra.mxu0 %v2176_v56  ;;  %v2210_v56 = vld [vmem:[%s2914_s9 + $0xa0] ss:$16 sps:$4 sm:$0xff]  }
 0x4c7   :  { %2064 = vmatprep.subr.bf16.mxu0 %v2316_v3 }
 0x4ca   :  { %2065 = vmatpush3.bf16.msra.mxu0 %v2177_v57  ;;  %v2213_v57 = vld [vmem:[%s2914_s9 + $0xa8] ss:$16 sps:$4 sm:$0xff]  }
 0x4cb   :  { %2066 = vmatprep.subr.bf16.mxu0 %v2316_v3 }
 0x4ce   :  { %2067 = vmatpush3.bf16.msra.mxu0 %v2178_v58  ;;  %v2216_v58 = vld [vmem:[%s2914_s9 + $0xc0] ss:$16 sps:$4 sm:$0xff]  }
 0x4cf   :  { %2068 = vmatprep.subr.bf16.mxu0 %v2316_v3 }
 0x4d2   :  { %2069 = vmatpush3.bf16.msra.mxu0 %v2179_v59  ;;  %v2218_v59 = vld [vmem:[%s2914_s9 + $0xc4] ss:$16 sps:$4 sm:$0xff]  }
 0x4da   :  { %v684_v27 = vpop.xlane.xlu1 %683 }
 0x4db   :  { %2294 = vrcp.f32 %v684_v27 }
 0x4de   :  { %v2122_v28 = vpop.permute.xlu1 %2121 }
 0x4df   :  { %v2124_v29 = vunpack.i.h.bf16 %v2122_v28  ;;  %v2123_v31 = vunpack.i.l.bf16 %v2122_v28  ;;  %v2182_v28 = vld [vmem:[%s2914_s9 + $0x4] ss:$16 sps:$4 sm:$0xff]  }
 0x4e1   :  { %v404_v32 = vpack.c.bf16 %v2124_v29, %v2123_v31  ;;  %v2186_v29 = vld [vmem:[%s2914_s9 + $0x20] ss:$16 sps:$4 sm:$0xff]   ;;  %v2188_v31 = vld [vmem:[%s2914_s9 + $0x24] ss:$16 sps:$4 sm:$0xff]  }
 0x4e3   :  { %2049 = vmatpush3.bf16.msra.mxu1 %v404_v32  ;;  %v2189_v32 = vld [vmem:[%s2914_s9 + $0x28] ss:$16 sps:$4 sm:$0xff]  }
 0x4e4   :  { %1283 = vmatprep.subr.bf16.mxu1 %v2182_v28  ;;  %v2234_v28 = vld [vmem:[%s2917_s11 + $0x8] sm:$0xff]  }
 0x4e5   :  { %v2295_v34 = vpop.eup %2294 }
 0x4e6   :  { %v700_v36 = vmul.f32 %v2295_v34, %v2283_v63 }
 0x4e8   :  { %v704_v37 = vpack.c.bf16 %v700_v36, %v698_v35 }
 0x4ea   :  { %2051 = vmatmul.mubr.msk.bf16.vlgmr.msra.gmra.mrb[24].mxu1 %vm612_vm2, %v704_v37 }
 0x4eb   :  { %1315 = vmatprep.mubr.bf16.mxu1 %v2317_v30 }
 0x509   :  { %v742_v38 = vpop.f32.mrb[4].mxu0 }
 0x50a   :  { %v2034_v39 = vpop.f32.mrb[5].mxu0 }
 0x50b   :  { %v745_v40 = vpop.f32.mrb[6].mxu0 }
 0x50c   :  { %v2035_v41 = vpop.f32.mrb[7].mxu0 }
 0x588   :  { %v830_v44 = vpop.f32.mrb[8].mxu0 }
 0x589   :  { %v2046_v45 = vpop.f32.mrb[9].mxu0 }
 0x58a   :  { %v786_v46 = vpop.f32.mrb[20].mxu1  ;;  %v833_v47 = vpop.f32.mrb[10].mxu0  ;;  %v2195_v45 = vld [vmem:[%s2914_s9 + $0x48] ss:$16 sps:$4 sm:$0xff]  }
 0x58b   :  { %v2130_v48 = vpack.i.bf16 %v833_v47, %v830_v44  ;;  %v2040_v49 = vpop.f32.mrb[21].mxu1  ;;  %v2047_v50 = vpop.f32.mrb[11].mxu0  ;;  %v2192_v44 = vld [vmem:[%s2914_s9 + $0x40] ss:$16 sps:$4 sm:$0xff]   ;;  %v2203_v47 = vld [vmem:[%s2914_s9 + $0x6c] ss:$16 sps:$4 sm:$0xff]  }
 0x58c   :  { %v789_v52 = vpop.f32.mrb[22].mxu1  ;;  %v2201_v49 = vld [vmem:[%s2914_s9 + $0x68] ss:$16 sps:$4 sm:$0xff]   ;;  %v2206_v50 = vld [vmem:[%s2914_s9 + $0x84] ss:$16 sps:$4 sm:$0xff]  }
 0x58d   :  { %v2125_v53 = vpack.i.bf16 %v789_v52, %v786_v46  ;;  %2131 = vrot.lane.b32.xlu0 %v2130_v48, %s2320_s3  ;;  %v2041_v54 = vpop.f32.mrb[23].mxu1  ;;  %v2200_v46 = vld [vmem:[%s2914_s9 + $0x64] ss:$16 sps:$4 sm:$0xff]   ;;  %v2198_v48 = vld [vmem:[%s2914_s9 + $0x60] ss:$16 sps:$4 sm:$0xff]  }
 0x58e   :  { %v2204_v52 = vld [vmem:[%s2914_s9 + $0x80] ss:$16 sps:$4 sm:$0xff]   ;;  %v2212_v54 = vld [vmem:[%s2914_s9 + $0xa4] ss:$16 sps:$4 sm:$0xff]  }
 0x58f   :  { %2126 = vrot.lane.b32.xlu1 %v2125_v53, %s2321_s26  ;;  %v2207_v53 = vld [vmem:[%s2914_s9 + $0x88] ss:$16 sps:$4 sm:$0xff]  }
 0x5bd   :  { %v874_v60 = vpop.f32.mrb[24].mxu1 }
 0x5be   :  { %v2052_v61 = vpop.f32.mrb[25].mxu1 }
 0x5bf   :  { %v877_v62 = vpop.f32.mrb[26].mxu1  ;;  %v2221_v61 = vld [vmem:[%s2914_s9 + $0xcc] ss:$16 sps:$4 sm:$0xff]  }
 0x5c0   :  { %v2135_v63 = vpack.i.bf16 %v877_v62, %v874_v60  ;;  %v2053_v2 = vpop.f32.mrb[27].mxu1  ;;  %v2219_v60 = vld [vmem:[%s2914_s9 + $0xc8] ss:$16 sps:$4 sm:$0xff]   ;;  %v2224_v62 = vld [vmem:[%s2914_s9 + $0xe4] ss:$16 sps:$4 sm:$0xff]  }
 0x5c1   :  { %v2222_v2 = vld [vmem:[%s2914_s9 + $0xe0] ss:$16 sps:$4 sm:$0xff]  }
 0x5c2   :  { %2136 = vrot.lane.b32.xlu1 %v2135_v63, %s2319_s2  ;;  %v2227_v63 = vld [vmem:[%s2914_s9 + $0xec] ss:$16 sps:$4 sm:$0xff]  }
 0x5ff   :  { %v2132_v8 = vpop.permute.xlu0 %2131 }
 0x600   :  { %v2134_v10 = vunpack.i.h.bf16 %v2132_v8  ;;  %v2133_v11 = vunpack.i.l.bf16 %v2132_v8 }
 0x601   :  { %v2127_v4 = vpop.permute.xlu1 %2126 }
 0x602   :  { %v2129_v6 = vunpack.i.h.bf16 %v2127_v4  ;;  %v2128_v7 = vunpack.i.l.bf16 %v2127_v4  ;;  %v2225_v4 = vld [vmem:[%s2914_s9 + $0xe8] ss:$16 sps:$4 sm:$0xff]  }
 0x604   :  { %v906_v9 = vsel %vm405_vm1, %v745_v40, %v2129_v6  ;;  %v905_v3 = vsel %vm405_vm1, %v742_v38, %v2128_v7 }
 0x605   :  { %v908_v15 = vsel %vm907_vm3, %v905_v3, %v2133_v11  ;;  %v909_v16 = vsel %vm907_vm3, %v906_v9, %v2134_v10 }
 0x634   :  { %v2137_v12 = vpop.permute.xlu1 %2136 }
 0x635   :  { %v2139_v13 = vunpack.i.h.bf16 %v2137_v12  ;;  %v2138_v14 = vunpack.i.l.bf16 %v2137_v12 }
 0x637   :  { %v912_v17 = vsel %vm910_vm4, %v909_v16, %v2139_v13  ;;  %v911_v5 = vsel %vm910_vm4, %v908_v15, %v2138_v14  ;;  %v1841_v13 = vld [vmem:[%s2915_s7] ss:$0 sm:$0xff] }
 0x638   :  { %v913_v18 = vpack.c.bf16 %v912_v17, %v911_v5  ;;  %v1842_v17 = vld [vmem:[%s2916_s8] ss:$0 sm:$0xff] }
 0x63a   :  { %2071 = vmatmul.mubr.bf16.vlgmr.msra.gmra.mrb[12].mxu0 %v913_v18 }
 0x63b   :  { %1358 = vmatprep.mubr.bf16.mxu0 %v2317_v30  ;;  %v2180_v30 = vld [vmem:[%s2914_s9] ss:$16 sps:$4 sm:$0xff]  }
 0x63c   :  { %1284 = vmatpush1.bf16.msra.mxu1 %v2180_v30  ;;  %v2233_v30 = vld [vmem:[%s2917_s11 + $0xc8] sm:$0xff]  }
 0x63d   :  { %1285 = vmatprep.subr.bf16.mxu1 %v2188_v31  ;;  %v2238_v31 = vld [vmem:[%s2917_s11 + $0x10] sm:$0xff]  }
 0x640   :  { %1286 = vmatpush1.bf16.msra.mxu1 %v2186_v29  ;;  %v2237_v29 = vld [vmem:[%s2917_s11 + $0xd0] sm:$0xff]  }
 0x641   :  { %1287 = vmatprep.subr.bf16.mxu1 %v2194_v42  ;;  %v2249_v42 = vld [vmem:[%s2917_s11 + $0xe8] sm:$0xff]  }
 0x644   :  { %1288 = vmatpush1.bf16.msra.mxu1 %v2192_v44  ;;  %v2251_v44 = vld [vmem:[%s2917_s11 + $0xa8] sm:$0xff]  }
 0x645   :  { %1289 = vmatprep.subr.bf16.mxu1 %v2200_v46  ;;  %v2253_v46 = vld [vmem:[%s2917_s11 + $0xf0] sm:$0xff]  }
 0x648   :  { %1290 = vmatpush1.bf16.msra.mxu1 %v2198_v48  ;;  %v2255_v48 = vld [vmem:[%s2917_s11 + $0xb0] sm:$0xff]  }
 0x649   :  { %1291 = vmatprep.subr.bf16.mxu1 %v2206_v50  ;;  %v2257_v50 = vld [vmem:[%s2917_s11 + $0xf8] sm:$0xff]  }
 0x64c   :  { %1292 = vmatpush1.bf16.msra.mxu1 %v2204_v52  ;;  %v2259_v52 = vld [vmem:[%s2917_s11 + $0xb8] sm:$0xff]  }
 0x64d   :  { %1293 = vmatprep.subr.bf16.mxu1 %v2212_v54 }
 0x650   :  { %1294 = vmatpush1.bf16.msra.mxu1 %v2210_v56 }
 0x651   :  { %1295 = vmatprep.subr.bf16.mxu1 %v2218_v59 }
 0x654   :  { %1296 = vmatpush1.bf16.msra.mxu1 %v2216_v58 }
 0x655   :  { %1297 = vmatprep.subr.bf16.mxu1 %v2224_v62 }
 0x658   :  { %1298 = vmatpush1.bf16.msra.mxu1 %v2222_v2 }
 0x70d   :  { %v1019_v20 = vpop.f32.mrb[12].mxu0 }
 0x70e   :  { %v1020_v21 = vadd.f32 %v1832_v19, %v1019_v20  ;;  %v2072_v22 = vpop.f32.mrb[13].mxu0 }
 0x70f   :  { %v1022_v23 = vpop.f32.mrb[14].mxu0  ;;  %v2229_v22 = vld [vmem:[%s2917_s11 + $0xc0] sm:$0xff]  }
 0x710   :  { %v2634_v24 = vadd.f32 %v1020_v21, %v2395_v0  ;;  %v1023_v25 = vadd.f32 %v1832_v19, %v1022_v23  ;;  %v2073_v26 = vpop.f32.mrb[15].mxu0  ;;  %v2183_v0 = vld [vmem:[%s2914_s9 + $0x8] ss:$16 sps:$4 sm:$0xff]   ;;  %v2228_v21 = vld [vmem:[%s2917_s11 + $0x40] sm:$0xff]  }
 0x711   :  { %1942 = vmatprep.subr.bf16.mxu1 %v2228_v21  ;;  %v2230_v23 = vld [vmem:[%s2917_s11] sm:$0xff]   ;;  %v2232_v26 = vld [vmem:[%s2917_s11 + $0x48] sm:$0xff]  }
 0x712   :  { %v2637_v27 = vadd.f32 %v1023_v25, %v2401_v1  ;;  %1030 = vadd.xlane.f32.xlu0 %v2634_v24  ;;  %v2185_v1 = vld [vmem:[%s2914_s9 + $0xc] ss:$16 sps:$4 sm:$0xff]   ;;  %v2231_v25 = vld [vmem:[%s2917_s11 + $0x80] sm:$0xff]  }
 0x713   :  { %1326 = vmatprep.subr.bf16.mxu0 %v2185_v1  ;;  %v2236_v1 = vld [vmem:[%s2917_s11 + $0x50] sm:$0xff]  }
 0x714   :  { %1032 = vadd.xlane.f32.xlu1 %v2637_v27  ;;  %1327 = vmatpush1.bf16.msra.mxu0 %v2183_v0  ;;  %v2235_v0 = vld [vmem:[%s2917_s11 + $0x88] sm:$0xff]  }
 0x715   :  { %1328 = vmatprep.subr.bf16.mxu0 %v2191_v33  ;;  %v2240_v33 = vld [vmem:[%s2917_s11 + $0x58] sm:$0xff]  }
 0x718   :  { %1329 = vmatpush1.bf16.msra.mxu0 %v2189_v32  ;;  %v2239_v32 = vld [vmem:[%s2917_s11 + $0x90] sm:$0xff]  }
 0x719   :  { %1330 = vmatprep.subr.bf16.mxu0 %v2197_v43  ;;  %v2250_v43 = vld [vmem:[%s2917_s11 + $0x28] sm:$0xff]  }
 0x71c   :  { %1331 = vmatpush1.bf16.msra.mxu0 %v2195_v45  ;;  %v2252_v45 = vld [vmem:[%s2917_s11 + $0x70] sm:$0xff]  }
 0x71d   :  { %1332 = vmatprep.subr.bf16.mxu0 %v2203_v47  ;;  %v2254_v47 = vld [vmem:[%s2917_s11 + $0x30] sm:$0xff]  }
 0x720   :  { %1333 = vmatpush1.bf16.msra.mxu0 %v2201_v49  ;;  %v2256_v49 = vld [vmem:[%s2917_s11 + $0x78] sm:$0xff]  }
 0x721   :  { %1334 = vmatprep.subr.bf16.mxu0 %v2209_v51  ;;  %v2258_v51 = vld [vmem:[%s2917_s11 + $0x38] sm:$0xff]  }
 0x724   :  { %1335 = vmatpush1.bf16.msra.mxu0 %v2207_v53  ;;  %v1103_v53 = vlaneseq }
 0x725   :  { %1336 = vmatprep.subr.bf16.mxu0 %v2215_v55 }
 0x726   :  { %v1104_v54 = vshrl.u32 %v1103_v53, 7 }
 0x728   :  { %1337 = vmatpush1.bf16.msra.mxu0 %v2213_v57  ;;  %v1105_v55 = vsub.s32 0, %v1104_v54  ;;  %v1113_v56 = vsub.s32 2, %v1104_v54  ;;  %v1101_v57 = vld [vmem:[%s2918_s10] sm:$0xf]  ;;  %v1109_v58 = vsub.s32 1, %v1104_v54  ;;  %v1117_v59 = vsub.s32 3, %v1104_v54 }
 0x729   :  { %1338 = vmatprep.subr.bf16.mxu0 %v2221_v61 }
 0x72a   :  { %v1114_v61 = vrot.slane %v1101_v57, %v1113_v56  ;;  %v1110_v62 = vrot.slane %v1101_v57, %v1109_v58 }
 0x72c   :  { %1339 = vmatpush1.bf16.msra.mxu0 %v2219_v60  ;;  %v1106_v60 = vrot.slane %v1101_v57, %v1105_v55 }
 0x72d   :  { %1340 = vmatprep.subr.bf16.mxu0 %v2227_v63  ;;  %v1118_v63 = vrot.slane %v1101_v57, %v1117_v59 }
 0x730   :  { %1341 = vmatpush1.bf16.msra.mxu0 %v2225_v4 }
 0x731   :  { %1964 = vmatprep.subr.bf16.mxu0 %v2229_v22 }
 0x79f   :  { %v1031_v34 = vpop.xlane.xlu0 %1030 }
 0x7a0   :  { %v1034_v35 = vmul.f32 0.0078125, %v1031_v34  ;;  %v2241_v34 = vld [vmem:[%s2917_s11 + $0xd8] sm:$0xff]  }
 0x7a1   :  { %v1033_v36 = vpop.xlane.xlu1 %1032 }
 0x7a2   :  { %v2666_v37 = vsub.f32 %v2634_v24, %v1034_v35  ;;  %v1035_v38 = vmul.f32 0.0078125, %v1033_v36  ;;  %v2242_v35 = vld [vmem:[%s2917_s11 + $0x18] sm:$0xff]  }
 0x7a3   :  { %v2243_v36 = vld [vmem:[%s2917_s11 + $0x98] sm:$0xff]  }
 0x7a4   :  { %v2669_v39 = vsub.f32 %v2637_v27, %v1035_v38  ;;  %v1038_v40 = vmul.f32 %v2666_v37, %v2666_v37  ;;  %v2245_v38 = vld [vmem:[%s2917_s11 + $0xe0] sm:$0xff]  }
 0x7a6   :  { %1040 = vadd.xlane.f32.xlu0 %v1038_v40  ;;  %v1039_v41 = vmul.f32 %v2669_v39, %v2669_v39  ;;  %v2247_v40 = vld [vmem:[%s2917_s11 + $0xa0] sm:$0xff]  }
 0x7aa   :  { %1042 = vadd.xlane.f32.xlu0 %v1039_v41  ;;  %v2248_v41 = vld [vmem:[%s2917_s11 + $0x68] sm:$0xff]  }
 0x833   :  { %v1041_v6 = vpop.xlane.xlu0 %1040 }
 0x834   :  { %v1044_v7 = vmul.f32 0.0078125, %v1041_v6 }
 0x836   :  { %v1046_v8 = vadd.f32 1e-05, %v1044_v7 }
 0x837   :  { %v1043_v9 = vpop.xlane.xlu0 %1042 }
 0x838   :  { %2296 = vrsqrt.f32 %v1046_v8  ;;  %v1045_v3 = vmul.f32 0.0078125, %v1043_v9 }
 0x83a   :  { %v1047_v10 = vadd.f32 1e-05, %v1045_v3 }
 0x83c   :  { %2298 = vrsqrt.f32 %v1047_v10 }
 0x842   :  { %v2297_v11 = vpop.eup %2296 }
 0x843   :  { %v1050_v12 = vmul.f32 %v2297_v11, %v2666_v37  ;;  %v2244_v37 = vld [vmem:[%s2917_s11 + $0x60] sm:$0xff]  }
 0x845   :  { %v1058_v16 = vmul.f32 %v1841_v13, %v1050_v12 }
 0x846   :  { %v2299_v14 = vpop.eup %2298 }
 0x847   :  { %v1051_v15 = vmul.f32 %v2299_v14, %v2669_v39  ;;  %v1066_v18 = vadd.f32 %v1842_v17, %v1058_v16  ;;  %v2246_v39 = vld [vmem:[%s2917_s11 + $0x20] sm:$0xff]  }
 0x849   :  { %v1059_v5 = vmul.f32 %v1841_v13, %v1051_v15 }
 0x84b   :  { %v1067_v19 = vadd.f32 %v1842_v17, %v1059_v5 }
 0x84d   :  { %v1068_v20 = vpack.c.bf16 %v1067_v19, %v1066_v18 }
 0x84f   :  { %1316 = vmatmul.mubr.bf16.vlgmr.msra.gmra.mrb[28].mxu1 %v1068_v20  ;;  %1359 = vmatmul.mubr.bf16.vlgmr.msra.gmra.mrb[16].mxu0 %v1068_v20 }
 0x850   :  { %1943 = vmatpush3.bf16.msra.mxu1 %v2230_v23  ;;  %1965 = vmatpush3.bf16.msra.mxu0 %v2231_v25 }
 0x851   :  { %1944 = vmatprep.subr.bf16.mxu1 %v2232_v26  ;;  %1966 = vmatprep.subr.bf16.mxu0 %v2233_v30 }
 0x854   :  { %1945 = vmatpush3.bf16.msra.mxu1 %v2234_v28  ;;  %1967 = vmatpush3.bf16.msra.mxu0 %v2235_v0 }
 0x855   :  { %1946 = vmatprep.subr.bf16.mxu1 %v2236_v1  ;;  %1968 = vmatprep.subr.bf16.mxu0 %v2237_v29 }
 0x858   :  { %1947 = vmatpush3.bf16.msra.mxu1 %v2238_v31  ;;  %1969 = vmatpush3.bf16.msra.mxu0 %v2239_v32 }
 0x859   :  { %1948 = vmatprep.subr.bf16.mxu1 %v2240_v33  ;;  %1970 = vmatprep.subr.bf16.mxu0 %v2241_v34 }
 0x85c   :  { %1949 = vmatpush3.bf16.msra.mxu1 %v2242_v35  ;;  %1971 = vmatpush3.bf16.msra.mxu0 %v2243_v36 }
 0x85d   :  { %1950 = vmatprep.subr.bf16.mxu1 %v2244_v37  ;;  %1972 = vmatprep.subr.bf16.mxu0 %v2245_v38 }
 0x860   :  { %1951 = vmatpush3.bf16.msra.mxu1 %v2246_v39  ;;  %1973 = vmatpush3.bf16.msra.mxu0 %v2247_v40 }
 0x861   :  { %1952 = vmatprep.subr.bf16.mxu1 %v2248_v41  ;;  %1974 = vmatprep.subr.bf16.mxu0 %v2249_v42 }
 0x864   :  { %1953 = vmatpush3.bf16.msra.mxu1 %v2250_v43  ;;  %1975 = vmatpush3.bf16.msra.mxu0 %v2251_v44 }
 0x865   :  { %1954 = vmatprep.subr.bf16.mxu1 %v2252_v45  ;;  %1976 = vmatprep.subr.bf16.mxu0 %v2253_v46 }
 0x868   :  { %1955 = vmatpush3.bf16.msra.mxu1 %v2254_v47  ;;  %1977 = vmatpush3.bf16.msra.mxu0 %v2255_v48 }
 0x869   :  { %1956 = vmatprep.subr.bf16.mxu1 %v2256_v49  ;;  %1978 = vmatprep.subr.bf16.mxu0 %v2257_v50 }
 0x86c   :  { %1957 = vmatpush3.bf16.msra.mxu1 %v2258_v51  ;;  %1979 = vmatpush3.bf16.msra.mxu0 %v2259_v52 }
 0x922   :  { %v1317_v2 = vpop.f32.mrb[28].mxu1  ;;  %v1360_v4 = vpop.f32.mrb[16].mxu0 }
 0x923   :  { %v2854_v6 = vadd.f32 %v1317_v2, %v1106_v60  ;;  %v2856_v7 = vadd.f32 %v1360_v4, %v1114_v61  ;;  %v1319_v8 = vpop.f32.mrb[29].mxu1  ;;  %v1362_v9 = vpop.f32.mrb[17].mxu0 }
 0x924   :  { %v2858_v3 = vadd.f32 %v1319_v8, %v1110_v62  ;;  %v2860_v10 = vadd.f32 %v1362_v9, %v1118_v63  ;;  %v1321_v11 = vpop.f32.mrb[30].mxu1  ;;  %v1364_v12 = vpop.f32.mrb[18].mxu0 }
 0x925   :  { %v1377_v13 = vmul.f32 0.044715, %v2854_v6  ;;  %v1379_v14 = vmul.f32 0.044715, %v2856_v7  ;;  %v1322_v15 = vadd.f32 %v1321_v11, %v1106_v60  ;;  %v1365_v16 = vadd.f32 %v1364_v12, %v1114_v61  ;;  %v1323_v17 = vpop.f32.mrb[31].mxu1  ;;  %v1366_v5 = vpop.f32.mrb[19].mxu0 }
 0x926   :  { %v1378_v18 = vmul.f32 0.044715, %v2858_v3  ;;  %v1380_v19 = vmul.f32 0.044715, %v2860_v10  ;;  %v2866_v20 = vadd.f32 %v1323_v17, %v1110_v62  ;;  %v2868_v21 = vadd.f32 %v1366_v5, %v1118_v63 }
 0x927   :  { %v1385_v22 = vmul.f32 %v1377_v13, %v2854_v6  ;;  %v1387_v23 = vmul.f32 %v1379_v14, %v2856_v7  ;;  %v1381_v25 = vmul.f32 0.044715, %v1322_v15  ;;  %v1383_v26 = vmul.f32 0.044715, %v1365_v16 }
 0x928   :  { %v1386_v30 = vmul.f32 %v1378_v18, %v2858_v3  ;;  %v1388_v28 = vmul.f32 %v1380_v19, %v2860_v10  ;;  %v1382_v0 = vmul.f32 0.044715, %v2866_v20  ;;  %v1384_v1 = vmul.f32 0.044715, %v2868_v21 }
 0x929   :  { %v1393_v29 = vmul.f32 %v1385_v22, %v2854_v6  ;;  %v1395_v31 = vmul.f32 %v1387_v23, %v2856_v7  ;;  %v1389_v32 = vmul.f32 %v1381_v25, %v1322_v15  ;;  %v1391_v33 = vmul.f32 %v1383_v26, %v1365_v16 }
 0x92a   :  { %v1394_v34 = vmul.f32 %v1386_v30, %v2858_v3  ;;  %v1396_v35 = vmul.f32 %v1388_v28, %v2860_v10  ;;  %v1390_v36 = vmul.f32 %v1382_v0, %v2866_v20  ;;  %v1392_v37 = vmul.f32 %v1384_v1, %v2868_v21 }
 0x92b   :  { %v1401_v38 = vadd.f32 %v1393_v29, %v2854_v6  ;;  %v1403_v39 = vadd.f32 %v1395_v31, %v2856_v7  ;;  %v1397_v40 = vmul.f32 %v1389_v32, %v1322_v15  ;;  %v1399_v41 = vmul.f32 %v1391_v33, %v1365_v16 }
 0x92c   :  { %v1398_v42 = vmul.f32 %v1390_v36, %v2866_v20  ;;  %v1400_v43 = vmul.f32 %v1392_v37, %v2868_v21  ;;  %v1402_v48 = vadd.f32 %v1394_v34, %v2858_v3  ;;  %v1404_v52 = vadd.f32 %v1396_v35, %v2860_v10 }
 0x92d   :  { %v1409_v44 = vmul.f32 0.7978846, %v1401_v38  ;;  %v1411_v45 = vmul.f32 0.7978846, %v1403_v39  ;;  %v1405_v46 = vadd.f32 %v1397_v40, %v1322_v15  ;;  %v1407_v47 = vadd.f32 %v1399_v41, %v1365_v16 }
 0x92e   :  { %v1406_v49 = vadd.f32 %v1398_v42, %v2866_v20  ;;  %v1410_v53 = vmul.f32 0.7978846, %v1402_v48  ;;  %v1408_v55 = vadd.f32 %v1400_v43, %v2868_v21  ;;  %v1412_v56 = vmul.f32 0.7978846, %v1404_v52 }
 0x92f   :  { %2300 = vtanh.f32 %v1409_v44  ;;  %v1413_v50 = vmul.f32 0.7978846, %v1405_v46  ;;  %v1415_v51 = vmul.f32 0.7978846, %v1407_v47  ;;  %v1369_v2 = vmul.f32 0.5, %v2854_v6 }
 0x930   :  { %2302 = vtanh.f32 %v1411_v45  ;;  %v1414_v54 = vmul.f32 0.7978846, %v1406_v49  ;;  %v1416_v57 = vmul.f32 0.7978846, %v1408_v55  ;;  %v1373_v4 = vmul.f32 0.5, %v1322_v15 }
 0x931   :  { %2304 = vtanh.f32 %v1413_v50  ;;  %v1371_v11 = vmul.f32 0.5, %v2856_v7  ;;  %v1375_v12 = vmul.f32 0.5, %v1365_v16  ;;  %v1370_v17 = vmul.f32 0.5, %v2858_v3 }
 0x932   :  { %2306 = vtanh.f32 %v1415_v51  ;;  %v1374_v23 = vmul.f32 0.5, %v2866_v20  ;;  %v1372_v15 = vmul.f32 0.5, %v2860_v10  ;;  %v1376_v28 = vmul.f32 0.5, %v2868_v21  ;;  %v1875_v10 = vld [vmem:[%s2919_s12] ss:$0 sm:$0xff] }
 0x933   :  { %2308 = vtanh.f32 %v1410_v53 }
 0x934   :  { %2310 = vtanh.f32 %v1414_v54 }
 0x935   :  { %2312 = vtanh.f32 %v1412_v56 }
 0x936   :  { %2314 = vtanh.f32 %v1416_v57 }
 0x939   :  { %v2301_v58 = vpop.eup %2300 }
 0x93a   :  { %v2303_v59 = vpop.eup %2302  ;;  %v1425_v60 = vadd.f32 1.0, %v2301_v58 }
 0x93b   :  { %v2305_v61 = vpop.eup %2304  ;;  %v1427_v62 = vadd.f32 1.0, %v2303_v59 }
 0x93c   :  { %v2307_v63 = vpop.eup %2306  ;;  %v1429_v8 = vadd.f32 1.0, %v2305_v61  ;;  %v1433_v18 = vmul.f32 %v1425_v60, %v1369_v2 }
 0x93d   :  { %v2309_v9 = vpop.eup %2308  ;;  %v1431_v13 = vadd.f32 1.0, %v2307_v63  ;;  %v1435_v26 = vmul.f32 %v1427_v62, %v1371_v11 }
 0x93e   :  { %v2311_v14 = vpop.eup %2310  ;;  %v1426_v5 = vadd.f32 1.0, %v2309_v9  ;;  %v1437_v19 = vmul.f32 %v1429_v8, %v1373_v4 }
 0x93f   :  { %v2313_v22 = vpop.eup %2312  ;;  %v1430_v25 = vadd.f32 1.0, %v2311_v14  ;;  %v1439_v30 = vmul.f32 %v1431_v13, %v1375_v12 }
 0x940   :  { %v2315_v6 = vpop.eup %2314  ;;  %v1428_v7 = vadd.f32 1.0, %v2313_v22  ;;  %v1441_v16 = vpack.c.bf16 %v1437_v19, %v1433_v18  ;;  %v1434_v0 = vmul.f32 %v1426_v5, %v1370_v17 }
 0x941   :  { %v1438_v1 = vmul.f32 %v1430_v25, %v1374_v23  ;;  %v1432_v29 = vadd.f32 1.0, %v2315_v6  ;;  %v1443_v3 = vpack.c.bf16 %v1439_v30, %v1435_v26 }
 0x942   :  { %v1436_v32 = vmul.f32 %v1428_v7, %v1372_v15 }
 0x943   :  { %v1442_v31 = vpack.c.bf16 %v1438_v1, %v1434_v0  ;;  %v1440_v33 = vmul.f32 %v1432_v29, %v1376_v28 }
 0x945   :  { %1740 = vmatprep.mubr.bf16.mxu1 %v1442_v31  ;;  %v1444_v34 = vpack.c.bf16 %v1440_v33, %v1436_v32 }
 0x946   :  { %1741 = vmatmul.mubr.bf16.vlgmr.msra.gmra.mrb[32].mxu1 %v1441_v16 }
 0x947   :  { %1781 = vmatprep.mubr.bf16.mxu0 %v1444_v34 }
 0x948   :  { %1782 = vmatmul.mubr.bf16.vlgmr.msra.gmra.mrb[20].mxu0 %v1443_v3 }
 0xa19   :  { %v1958_v20 = vpop.f32.mrb[32].mxu1 }
 0xa1a   :  { %v1959_v21 = vpop.f32.mrb[33].mxu1 }
 0xa1b   :  { %v1980_v35 = vpop.f32.mrb[20].mxu0  ;;  %v1960_v36 = vadd.f32 %v1959_v21, %v1958_v20  ;;  %v1961_v37 = vpop.f32.mrb[34].mxu1 }
 0xa1c   :  { %v1981_v38 = vpop.f32.mrb[21].mxu0  ;;  %v1962_v39 = vpop.f32.mrb[35].mxu1 }
 0xa1d   :  { %v1743_v40 = vadd.f32 %v1960_v36, %v1875_v10  ;;  %v1982_v41 = vadd.f32 %v1981_v38, %v1980_v35  ;;  %v1983_v42 = vpop.f32.mrb[22].mxu0  ;;  %v1963_v43 = vadd.f32 %v1962_v39, %v1961_v37 }
 0xa1e   :  { %v1984_v44 = vpop.f32.mrb[23].mxu0 }
 0xa1f   :  { %v1784_v45 = vadd.f32 %v1982_v41, %v1743_v40  ;;  %v1746_v46 = vadd.f32 %v1963_v43, %v1875_v10  ;;  %v1985_v47 = vadd.f32 %v1984_v44, %v1983_v42 }
 0xa21   :  { %v1790_v48 = vadd.f32 %v1784_v45, %v2634_v24  ;;  %v1787_v49 = vadd.f32 %v1985_v47, %v1746_v46 }
 0xa23   :  { %1792 = vst [vmem:[%s2920_s13] sm:$0xff] %v1790_v48  ;;  %v1791_v50 = vadd.f32 %v1787_v49, %v2637_v27 }
 0xa25   :  { %1793 = vst [vmem:[%s2920_s13 + $0x8] sm:$0xff] %v1791_v50 }

// kernel: gpt_forward.3
= control target key start
LH: loop header
LB: loop body
LE: loop exit
PB: predicated region body
PF: predicated region fallthrough
CT: control target
= control target key end

     0   :  { %18 = vsyncpa [#allocation3], 0  ;;  %s2880_s0 = inlined_call_operand.vmem [shape: f32[16,128], index: 0, kind: input, shape index: {}]   ;;  %s2881_s1 = inlined_call_operand.vmem [shape: f32[16,16], index: 1, kind: input, shape index: {}]   ;;  %s2882_s2 = inlined_call_operand.vmem [shape: f32[1,128], index: 2, kind: input, shape index: {}]   ;;  %s2883_s3 = inlined_call_operand.vmem [shape: f32[1,128], index: 3, kind: input, shape index: {}]   ;;  %s2884_s4 = inlined_call_operand.hbm [shape: bf16[128,384], index: 4, kind: input, shape index: {}]   ;;  %s2885_s5 = inlined_call_operand.hbm [shape: bf16[128,128], index: 5, kind: input, shape index: {}]   ;;  %s2886_s6 = inlined_call_operand.vmem [shape: f32[1,128], index: 6, kind: input, shape index: {}]   ;;  %s2887_s7 = inlined_call_operand.vmem [shape: f32[1,128], index: 7, kind: input, shape index: {}]   ;;  %s2888_s8 = inlined_call_operand.vmem [shape: f32[1,128], index: 8, kind: input, shape index: {}]   ;;  %s2889_s9 = inlined_call_operand.vmem [shape: bf16[128,512], index: 9, kind: input, shape index: {}]   ;;  %s2890_s10 = inlined_call_operand.vmem [shape: f32[1,512], index: 10, kind: input, shape index: {}]   ;;  %s2891_s11 = inlined_call_operand.hbm [shape: bf16[512,128], index: 11, kind: input, shape index: {}]   ;;  %s2892_s12 = inlined_call_operand.vmem [shape: f32[1,128], index: 12, kind: input, shape index: {}]   ;;  %s2893_s13 = inlined_call_operand.vmem [shape: f32[16,128], index: 13, kind: output, shape index: {}]  }
   0x1   :  { %19 = vsyncpa [#allocation5], 0  ;;  %s2437_s25 = smov [#allocation4]   ;;  %s2367_s29 = scalar_lea.hbm %s2885_s5, 1024 }
   0x2   :  { %s45_s26 = sshll.u32 %s2437_s25, 4  ;;  %p2368_p0 = scmp.ne.s32.totalorder %s2885_s5, %s2367_s29  ;;  %s46_s26 = int_to_ptr.vmem [resolvable:$true] %s45_s26 }
   0x3   :  { %p2371_p1 = scmp.lt.u32.totalorder %s2367_s29, %s2885_s5 }
   0x5   :  { %p2373_p2 = pnand %p2371_p1, %p2368_p0 }
   0x7   :  { %2376 = shalt.err (!%p2373_p2)
}
   0x8   :  { %s2377_s17 = scalar_lea.vmem %s46_s26, 1024  ;;  %p2382_p4 = scmp.lt.s32.totalorder %s46_s26, %s46_s26 }
   0x9   :  { %p2378_p3 = scmp.ne.s32.totalorder %s46_s26, %s2377_s17  ;;  %p2383_p5 = scmp.lt.s32.totalorder %s2377_s17, %s2377_s17 }
   0xb   :  { %p2384_p6 = por %p2383_p5, %p2382_p4 }
   0xd   :  { %p2385_p7 = pnand %p2384_p6, %p2378_p3 }
   0xf   :  { %2388 = shalt.err (!%p2385_p7)
}
  0x10   :  { %s2438_s18 = smov 64   ;;  %s2439_s19 = smov 4  }
  0x11   :  { %51 = dma.hbm_to_vmem [thread:$0]  %s2885_s5, 1024, %s46_s26, [#allocation5], %s2438_s18, %s2438_s18, %s2439_s19  }
  0x12   :  { %s2440_s22 = smov [#allocation2]   ;;  %s2389_s27 = scalar_lea.hbm %s2884_s4, 3072 }
  0x13   :  { %s33_s23 = sshll.u32 %s2440_s22, 4  ;;  %p2390_p8 = scmp.ne.s32.totalorder %s2884_s4, %s2389_s27  ;;  %s34_s23 = int_to_ptr.vmem [resolvable:$true] %s33_s23 }
  0x14   :  { %p2393_p9 = scmp.lt.u32.totalorder %s2389_s27, %s2884_s4 }
  0x16   :  { %p2395_p10 = pnand %p2393_p9, %p2390_p8 }
  0x18   :  { %2398 = shalt.err (!%p2395_p10)
}
  0x19   :  { %s2399_s15 = scalar_lea.vmem %s34_s23, 3072  ;;  %p2404_p12 = scmp.lt.s32.totalorder %s34_s23, %s34_s23 }
  0x1a   :  { %p2400_p11 = scmp.ne.s32.totalorder %s34_s23, %s2399_s15  ;;  %p2405_p13 = scmp.lt.s32.totalorder %s2399_s15, %s2399_s15 }
  0x1c   :  { %p2406_p0 = por %p2405_p13, %p2404_p12 }
  0x1e   :  { %p2407_p1 = pnand %p2406_p0, %p2400_p11 }
  0x20   :  { %2410 = shalt.err (!%p2407_p1)
}
  0x21   :  { %s2441_s5 = smov 192   ;;  %s2442_s26 = smov 12  }
  0x22   :  { %39 = dma.hbm_to_vmem [thread:$0]  %s2884_s4, 3072, %s34_s23, [#allocation3], %s2441_s5, %s2441_s5, %s2442_s26  }
  0x23   :  { %s2443_s20 = smov [#allocation6]   ;;  %s2411_s25 = scalar_lea.hbm %s2891_s11, 4096 }
  0x24   :  { %s67_s21 = sshll.u32 %s2443_s20, 4  ;;  %p2412_p2 = scmp.ne.s32.totalorder %s2891_s11, %s2411_s25  ;;  %s68_s21 = int_to_ptr.vmem [resolvable:$true] %s67_s21 }
  0x25   :  { %p2415_p3 = scmp.lt.u32.totalorder %s2411_s25, %s2891_s11 }
  0x27   :  { %p2417_p4 = pnand %p2415_p3, %p2412_p2 }
  0x29   :  { %2420 = shalt.err (!%p2417_p4)
}
  0x2a   :  { %s2421_s14 = scalar_lea.vmem %s68_s21, 4096  ;;  %p2426_p6 = scmp.lt.s32.totalorder %s68_s21, %s68_s21 }
  0x2b   :  { %p2422_p5 = scmp.ne.s32.totalorder %s68_s21, %s2421_s14  ;;  %p2427_p7 = scmp.lt.s32.totalorder %s2421_s14, %s2421_s14 }
  0x2d   :  { %p2428_p8 = por %p2427_p7, %p2426_p6 }
  0x2f   :  { %p2429_p9 = pnand %p2428_p8, %p2422_p5 }
  0x31   :  { %2432 = shalt.err (!%p2429_p9)
}
  0x32   :  { %73 = dma.hbm_to_vmem [thread:$0]  %s2891_s11, 4096, %s68_s21, [#allocation5], %s2438_s18, %s2438_s18, %s2439_s19  }
  0x33   :  { %2433 = dma.done.wait [#allocation3], 3072  }
  0x34   :  { %2434 = vsyncadd [#allocation3], 4294964224 }
  0x35   :  { %2435 = dma.done.wait [#allocation5], 5120  }
  0x36   :  { %2436 = vsyncadd [#allocation5], 4294962176  ;;  %v86_v0 = vld [vmem:[%s2880_s0] sm:$0xff]  ;;  %v87_v1 = vld [vmem:[%s2880_s0 + $0x8] sm:$0xff]  ;;  %v2444_v4 = vmov 0.0   ;;  %v2445_v30 = vmov 0  }
  0x37   :  { %90 = vadd.xlane.f32.xlu0 %v86_v0  ;;  %v2189_v2 = vld [vmem:[#allocation2 + $0x4] ss:$12 sps:$4 sm:$0xff]   ;;  %v2191_v3 = vld [vmem:[#allocation2] ss:$12 sps:$4 sm:$0xff]   ;;  %2029 = vmatprep.subr.bf16.mxu1 %v2444_v4  ;;  %v2192_v5 = vld [vmem:[#allocation2 + $0x8] ss:$12 sps:$4 sm:$0xff]  }
  0x38   :  { %v2193_v6 = vld [vmem:[#allocation2 + $0x1c] ss:$12 sps:$4 sm:$0xff]   ;;  %290 = vmatprep.subr.bf16.mxu0 %v2189_v2  ;;  %2030 = vmatpush3.bf16.msra.mxu1 %v2192_v5  ;;  %v2195_v15 = vld [vmem:[#allocation2 + $0x18] ss:$12 sps:$4 sm:$0xff]   ;;  %v2196_v16 = vld [vmem:[#allocation2 + $0x20] ss:$12 sps:$4 sm:$0xff]  }
  0x39   :  { %291 = vmatpush1.bf16.msra.mxu0 %v2191_v3  ;;  %2031 = vmatprep.subr.bf16.mxu1 %v2444_v4  ;;  %v2197_v17 = vld [vmem:[#allocation2 + $0x34] ss:$12 sps:$4 sm:$0xff]   ;;  %v2199_v18 = vld [vmem:[#allocation2 + $0x30] ss:$12 sps:$4 sm:$0xff]   ;;  %v2200_v19 = vld [vmem:[#allocation2 + $0x38] ss:$12 sps:$4 sm:$0xff]  }
  0x3a   :  { %292 = vmatprep.subr.bf16.mxu0 %v2193_v6  ;;  %v2201_v20 = vld [vmem:[#allocation2 + $0x4c] ss:$12 sps:$4 sm:$0xff]   ;;  %v2203_v21 = vld [vmem:[#allocation2 + $0x48] ss:$12 sps:$4 sm:$0xff]   ;;  %v2204_v22 = vld [vmem:[#allocation2 + $0x50] ss:$12 sps:$4 sm:$0xff]   ;;  %322 = vmatprep.mubr.bf16.mxu0 %v2445_v30 }
  0x3b   :  { %92 = vadd.xlane.f32.xlu0 %v87_v1  ;;  %v2205_v23 = vld [vmem:[#allocation2 + $0x64] ss:$12 sps:$4 sm:$0xff]   ;;  %v2207_v24 = vld [vmem:[#allocation2 + $0x60] ss:$12 sps:$4 sm:$0xff]   ;;  %v2208_v25 = vld [vmem:[#allocation2 + $0x68] ss:$12 sps:$4 sm:$0xff]  }
  0x3c   :  { %2032 = vmatpush3.bf16.msra.mxu1 %v2196_v16  ;;  %v2209_v26 = vld [vmem:[#allocation2 + $0x7c] ss:$12 sps:$4 sm:$0xff]   ;;  %v2211_v27 = vld [vmem:[#allocation2 + $0x78] ss:$12 sps:$4 sm:$0xff]   ;;  %v2212_v28 = vld [vmem:[#allocation2 + $0x80] ss:$12 sps:$4 sm:$0xff]  }
  0x3d   :  { %293 = vmatpush1.bf16.msra.mxu0 %v2195_v15  ;;  %2033 = vmatprep.subr.bf16.mxu1 %v2444_v4  ;;  %v2213_v29 = vld [vmem:[#allocation2 + $0x94] ss:$12 sps:$4 sm:$0xff]   ;;  %vm2446_vm0 = vmmov 0   ;;  %v2215_v31 = vld [vmem:[#allocation2 + $0x90] ss:$12 sps:$4 sm:$0xff]   ;;  %vm446_vm1 = vcmask 261120  }
  0x3e   :  { %294 = vmatprep.subr.bf16.mxu0 %v2197_v17  ;;  %2045 = vmatprep.mubr.msk.bf16.mxu1 %vm2446_vm0, %v2444_v4  ;;  %v2216_v32 = vld [vmem:[#allocation2 + $0x98] ss:$12 sps:$4 sm:$0xff]   ;;  %v2219_v34 = vld [vmem:[#allocation2 + $0xa8] ss:$12 sps:$4 sm:$0xff]   ;;  %v2220_v35 = vld [vmem:[#allocation2 + $0xb0] ss:$12 sps:$4 sm:$0xff]  }
  0x3f   :  { %v2217_v33 = vld [vmem:[#allocation2 + $0xac] ss:$12 sps:$4 sm:$0xff]   ;;  %v1841_v44 = vld [vmem:[%s2882_s2] ss:$0 sm:$0xff]  ;;  %s2447_s2 = smov 96   ;;  %vm653_vm2 = vcmask 130048  }
  0x40   :  { %2034 = vmatpush3.bf16.msra.mxu1 %v2200_v19  ;;  %v1842_v48 = vld [vmem:[%s2883_s3] ss:$0 sm:$0xff]  ;;  %s2448_s3 = smov 32   ;;  %vm948_vm3 = vcmask 523264   ;;  %vm951_vm4 = vcmask 785408  }
  0x41   :  { %295 = vmatpush1.bf16.msra.mxu0 %v2199_v18  ;;  %2035 = vmatprep.subr.bf16.mxu1 %v2444_v4 }
  0x42   :  { %296 = vmatprep.subr.bf16.mxu0 %v2201_v20 }
  0x44   :  { %2036 = vmatpush3.bf16.msra.mxu1 %v2204_v22 }
  0x45   :  { %297 = vmatpush1.bf16.msra.mxu0 %v2203_v21  ;;  %2037 = vmatprep.subr.bf16.mxu1 %v2444_v4 }
  0x46   :  { %298 = vmatprep.subr.bf16.mxu0 %v2205_v23 }
  0x48   :  { %2038 = vmatpush3.bf16.msra.mxu1 %v2208_v25 }
  0x49   :  { %299 = vmatpush1.bf16.msra.mxu0 %v2207_v24  ;;  %2039 = vmatprep.subr.bf16.mxu1 %v2444_v4 }
  0x4a   :  { %300 = vmatprep.subr.bf16.mxu0 %v2209_v26 }
  0x4c   :  { %2040 = vmatpush3.bf16.msra.mxu1 %v2212_v28 }
  0x4d   :  { %301 = vmatpush1.bf16.msra.mxu0 %v2211_v27  ;;  %2041 = vmatprep.subr.bf16.mxu1 %v2444_v4 }
  0x4e   :  { %302 = vmatprep.subr.bf16.mxu0 %v2213_v29 }
  0x50   :  { %2042 = vmatpush3.bf16.msra.mxu1 %v2216_v32 }
  0x51   :  { %303 = vmatpush1.bf16.msra.mxu0 %v2215_v31  ;;  %2043 = vmatprep.subr.bf16.mxu1 %v2444_v4 }
  0x52   :  { %304 = vmatprep.subr.bf16.mxu0 %v2217_v33 }
  0x54   :  { %2044 = vmatpush3.bf16.msra.mxu1 %v2220_v35 }
  0x55   :  { %305 = vmatpush1.bf16.msra.mxu0 %v2219_v34  ;;  %2049 = vmatprep.subr.bf16.mxu1 %v2444_v4  ;;  %v643_v34 = vld [vmem:[%s2881_s1] sm:$0xff] }
  0x56   :  { %2073 = vmatprep.subr.bf16.mxu0 %v2444_v4 }
  0xc4   :  { %v91_v7 = vpop.xlane.xlu0 %90 }
  0xc5   :  { %v95_v8 = vmul.f32 0.0078125, %v91_v7 }
  0xc7   :  { %v2569_v9 = vsub.f32 %v86_v0, %v95_v8 }
  0xc8   :  { %v93_v10 = vpop.xlane.xlu0 %92 }
  0xc9   :  { %v96_v11 = vmul.f32 0.0078125, %v93_v10  ;;  %v99_v12 = vmul.f32 %v2569_v9, %v2569_v9 }
  0xcb   :  { %v2573_v13 = vsub.f32 %v87_v1, %v96_v11  ;;  %101 = vadd.xlane.f32.xlu1 %v99_v12 }
  0xcd   :  { %v100_v14 = vmul.f32 %v2573_v13, %v2573_v13 }
  0xcf   :  { %103 = vadd.xlane.f32.xlu1 %v100_v14 }
 0x158   :  { %v102_v36 = vpop.xlane.xlu1 %101 }
 0x159   :  { %v105_v37 = vmul.f32 0.0078125, %v102_v36 }
 0x15b   :  { %v107_v38 = vadd.f32 1e-05, %v105_v37 }
 0x15c   :  { %v104_v39 = vpop.xlane.xlu1 %103 }
 0x15d   :  { %2309 = vrsqrt.f32 %v107_v38  ;;  %v106_v40 = vmul.f32 0.0078125, %v104_v39  ;;  %v644_v38 = vld [vmem:[%s2881_s1 + $0x8] sm:$0xff] }
 0x15f   :  { %v108_v41 = vadd.f32 1e-05, %v106_v40 }
 0x161   :  { %2311 = vrsqrt.f32 %v108_v41 }
 0x167   :  { %v2310_v42 = vpop.eup %2309 }
 0x168   :  { %v111_v43 = vmul.f32 %v2310_v42, %v2569_v9 }
 0x16a   :  { %v119_v47 = vmul.f32 %v1841_v44, %v111_v43 }
 0x16b   :  { %v2312_v45 = vpop.eup %2311 }
 0x16c   :  { %v112_v46 = vmul.f32 %v2312_v45, %v2573_v13  ;;  %v127_v50 = vadd.f32 %v1842_v48, %v119_v47 }
 0x16e   :  { %v120_v49 = vmul.f32 %v1841_v44, %v112_v46 }
 0x170   :  { %v128_v51 = vadd.f32 %v1842_v48, %v120_v49 }
 0x172   :  { %v129_v52 = vpack.c.bf16 %v128_v51, %v127_v50 }
 0x174   :  { %323 = vmatmul.mubr.bf16.vlgmr.msra.gmra.mrb[0].mxu0 %v129_v52  ;;  %2046 = vmatmul.mubr.bf16.vlgmr.msra.gmra.mrb[0].mxu1 %v129_v52 }
 0x175   :  { %2051 = vmatprep.mubr.msk.bf16.mxu1 %vm2446_vm0, %v2444_v4  ;;  %2075 = vmatprep.mubr.msk.bf16.mxu0 %vm2446_vm0, %v2444_v4 }
 0x247   :  { %v324_v53 = vpop.f32.mrb[0].mxu0  ;;  %v367_v54 = vpop.f32.mrb[0].mxu1 }
 0x248   :  { %v326_v55 = vpop.f32.mrb[1].mxu0  ;;  %v2047_v56 = vpop.f32.mrb[1].mxu1 }
 0x249   :  { %v328_v57 = vpop.f32.mrb[2].mxu0  ;;  %v370_v58 = vpop.f32.mrb[2].mxu1 }
 0x24a   :  { %v434_v59 = vpack.c.bf16 %v328_v57, %v324_v53  ;;  %v442_v60 = vpack.c.bf16 %v370_v58, %v367_v54  ;;  %v330_v61 = vpop.f32.mrb[3].mxu0  ;;  %v2048_v62 = vpop.f32.mrb[3].mxu1  ;;  %v2134_v63 = vpack.i.bf16 %v328_v57, %v324_v53  ;;  %v2601_v2 = vpack.i.bf16 %v370_v58, %v367_v54 }
 0x24b   :  { %v2129_v0 = vpack.i.bf16 %v330_v61, %v326_v55  ;;  %v438_v1 = vpack.c.bf16 %v330_v61, %v326_v55 }
 0x24c   :  { %2074 = vmatpush3.bf16.msra.mxu0 %v442_v60  ;;  %2135 = vrot.lane.b32.xlu1 %v2134_v63, %s2447_s2 }
 0x24d   :  { %2130 = vrot.lane.b32.xlu0 %v2129_v0, %s2447_s2  ;;  %v451_v3 = vsel %vm446_vm1, %v438_v1, 0  ;;  %2085 = vmatprep.subr.bf16.mxu0 %v2444_v4 }
 0x24e   :  { %2050 = vmatpush3.bf16.xpose.msra.mxu1 %v451_v3 }
 0x24f   :  { %2055 = vmatprep.subr.bf16.mxu1 %v2444_v4 }
 0x250   :  { %2140 = vrot.lane.b32.xlu1 %v2129_v0, %s2438_s18 }
 0x251   :  { %2150 = vrot.lane.b32.xlu0 %v2129_v0, %s2448_s3 }
 0x254   :  { %2145 = vrot.lane.b32.xlu1 %v2134_v63, %s2438_s18 }
 0x255   :  { %2052 = vmatmul.mubr.msk.bf16.vlgmr.msra.gmra.mrb[4].mxu1 %vm446_vm1, %v434_v59 }
 0x256   :  { %2057 = vmatprep.mubr.msk.bf16.mxu1 %vm2446_vm0, %v2444_v4 }
 0x258   :  { %2155 = vrot.lane.b32.xlu1 %v2134_v63, %s2448_s3 }
 0x2be   :  { %v2136_v5 = vpop.permute.xlu1 %2135 }
 0x2bf   :  { %v2131_v6 = vpop.permute.xlu0 %2130  ;;  %v2138_v14 = vunpack.i.h.bf16 %v2136_v5  ;;  %v2137_v15 = vunpack.i.l.bf16 %v2136_v5 }
 0x2c0   :  { %v2133_v7 = vunpack.i.h.bf16 %v2131_v6  ;;  %v2132_v8 = vunpack.i.l.bf16 %v2131_v6 }
 0x2c1   :  { %v435_v18 = vpack.c.bf16 %v2138_v14, %v2137_v15 }
 0x2c2   :  { %v439_v9 = vpack.c.bf16 %v2133_v7, %v2132_v8  ;;  %v2141_v10 = vpop.permute.xlu1 %2140 }
 0x2c3   :  { %v2143_v11 = vunpack.i.h.bf16 %v2141_v10  ;;  %v2142_v12 = vunpack.i.l.bf16 %v2141_v10  ;;  %v2151_v17 = vpop.permute.xlu0 %2150 }
 0x2c4   :  { %v498_v13 = vsel %vm446_vm1, %v439_v9, 0  ;;  %v2153_v20 = vunpack.i.h.bf16 %v2151_v17  ;;  %v2152_v21 = vunpack.i.l.bf16 %v2151_v17 }
 0x2c5   :  { %2056 = vmatpush3.bf16.xpose.msra.mxu1 %v498_v13  ;;  %v440_v16 = vpack.c.bf16 %v2143_v11, %v2142_v12 }
 0x2c6   :  { %2061 = vmatprep.subr.bf16.mxu1 %v2444_v4  ;;  %v2146_v19 = vpop.permute.xlu1 %2145  ;;  %v441_v25 = vpack.c.bf16 %v2153_v20, %v2152_v21 }
 0x2c7   :  { %v545_v22 = vsel %vm446_vm1, %v440_v16, 0  ;;  %v2148_v23 = vunpack.i.h.bf16 %v2146_v19  ;;  %v2147_v24 = vunpack.i.l.bf16 %v2146_v19 }
 0x2c8   :  { %v592_v28 = vsel %vm446_vm1, %v441_v25, 0 }
 0x2c9   :  { %v436_v26 = vpack.c.bf16 %v2148_v23, %v2147_v24 }
 0x2ca   :  { %v2156_v27 = vpop.permute.xlu1 %2155 }
 0x2cb   :  { %v2158_v29 = vunpack.i.h.bf16 %v2156_v27  ;;  %v2157_v31 = vunpack.i.l.bf16 %v2156_v27 }
 0x2cc   :  { %2058 = vmatmul.mubr.msk.bf16.vlgmr.msra.gmra.mrb[8].mxu1 %vm446_vm1, %v435_v18 }
 0x2cd   :  { %2062 = vmatpush3.bf16.xpose.msra.mxu1 %v545_v22  ;;  %2063 = vmatprep.mubr.msk.bf16.mxu1 %vm2446_vm0, %v2444_v4  ;;  %v437_v32 = vpack.c.bf16 %v2158_v29, %v2157_v31 }
 0x2ce   :  { %2067 = vmatprep.subr.bf16.mxu1 %v2444_v4 }
 0x2d4   :  { %2064 = vmatmul.mubr.msk.bf16.vlgmr.msra.gmra.mrb[12].mxu1 %vm446_vm1, %v436_v26 }
 0x2d5   :  { %2068 = vmatpush3.bf16.xpose.msra.mxu1 %v592_v28  ;;  %2069 = vmatprep.mubr.msk.bf16.mxu1 %vm2446_vm0, %v2444_v4 }
 0x2d6   :  { %2079 = vmatprep.subr.bf16.mxu1 %v2444_v4 }
 0x2dc   :  { %2070 = vmatmul.mubr.msk.bf16.vlgmr.msra.gmra.mrb[16].mxu1 %vm446_vm1, %v437_v32 }
 0x2dd   :  { %2081 = vmatprep.mubr.msk.bf16.mxu1 %vm2446_vm0, %v2444_v4 }
 0x328   :  { %v487_v33 = vpop.f32.mrb[4].mxu1 }
 0x329   :  { %v635_v35 = vmul.f32 0.17677669, %v487_v33  ;;  %v2053_v36 = vpop.f32.mrb[5].mxu1 }
 0x32a   :  { %v490_v37 = vpop.f32.mrb[6].mxu1 }
 0x32b   :  { %v636_v39 = vmul.f32 0.17677669, %v490_v37  ;;  %v2054_v40 = vpop.f32.mrb[7].mxu1  ;;  %v645_v41 = vadd.f32 %v643_v34, %v635_v35 }
 0x32d   :  { %v654_v42 = vsel %vm653_vm2, %v645_v41, -inf  ;;  %v646_v43 = vadd.f32 %v644_v38, %v636_v39 }
 0x32e   :  { %655 = vmax.xlane.f32.xlu0 %v654_v42 }
 0x32f   :  { %v657_v44 = vsel %vm653_vm2, %v646_v43, -inf }
 0x330   :  { %658 = vmax.xlane.f32.xlu1 %v657_v44 }
 0x39f   :  { %v534_v45 = vpop.f32.mrb[8].mxu1 }
 0x3a0   :  { %v637_v46 = vmul.f32 0.17677669, %v534_v45  ;;  %v2059_v47 = vpop.f32.mrb[9].mxu1 }
 0x3a1   :  { %v537_v48 = vpop.f32.mrb[10].mxu1 }
 0x3a2   :  { %v638_v49 = vmul.f32 0.17677669, %v537_v48  ;;  %v2060_v50 = vpop.f32.mrb[11].mxu1  ;;  %v647_v51 = vadd.f32 %v643_v34, %v637_v46 }
 0x3a4   :  { %v660_v52 = vsel %vm653_vm2, %v647_v51, -inf  ;;  %v648_v53 = vadd.f32 %v644_v38, %v638_v49 }
 0x3a5   :  { %661 = vmax.xlane.f32.xlu0 %v660_v52 }
 0x3a6   :  { %v663_v57 = vsel %vm653_vm2, %v648_v53, -inf }
 0x3a7   :  { %v581_v54 = vpop.f32.mrb[12].mxu1 }
 0x3a8   :  { %v639_v55 = vmul.f32 0.17677669, %v581_v54  ;;  %v2065_v56 = vpop.f32.mrb[13].mxu1 }
 0x3a9   :  { %664 = vmax.xlane.f32.xlu0 %v663_v57  ;;  %v584_v58 = vpop.f32.mrb[14].mxu1 }
 0x3aa   :  { %v640_v59 = vmul.f32 0.17677669, %v584_v58  ;;  %v2066_v60 = vpop.f32.mrb[15].mxu1  ;;  %v649_v61 = vadd.f32 %v643_v34, %v639_v55 }
 0x3ac   :  { %v666_v62 = vsel %vm653_vm2, %v649_v61, -inf  ;;  %v650_v63 = vadd.f32 %v644_v38, %v640_v59 }
 0x3ad   :  { %667 = vmax.xlane.f32.xlu0 %v666_v62 }
 0x3ae   :  { %v669_v0 = vsel %vm653_vm2, %v650_v63, -inf }
 0x3af   :  { %670 = vmax.xlane.f32.xlu1 %v669_v0  ;;  %v628_v1 = vpop.f32.mrb[16].mxu1 }
 0x3b0   :  { %v641_v3 = vmul.f32 0.17677669, %v628_v1  ;;  %v2071_v5 = vpop.f32.mrb[17].mxu1 }
 0x3b1   :  { %v631_v6 = vpop.f32.mrb[18].mxu1 }
 0x3b2   :  { %v642_v7 = vmul.f32 0.17677669, %v631_v6  ;;  %v2072_v8 = vpop.f32.mrb[19].mxu1  ;;  %v651_v9 = vadd.f32 %v643_v34, %v641_v3 }
 0x3b4   :  { %v672_v10 = vsel %vm653_vm2, %v651_v9, -inf  ;;  %v2642_v11 = vadd.f32 %v644_v38, %v642_v7 }
 0x3b5   :  { %673 = vmax.xlane.f32.xlu0 %v672_v10 }
 0x3b6   :  { %v675_v12 = vsel %vm653_vm2, %v2642_v11, -inf }
 0x3b7   :  { %676 = vmax.xlane.f32.xlu1 %v675_v12 }
 0x3bb   :  { %v656_v13 = vpop.xlane.xlu0 %655 }
 0x3bc   :  { %v678_v14 = vsub.f32 %v645_v41, %v656_v13 }
 0x3bd   :  { %v659_v15 = vpop.xlane.xlu1 %658 }
 0x3be   :  { %v686_v16 = vmul.f32 1.442695, %v678_v14  ;;  %v679_v17 = vsub.f32 %v646_v43, %v659_v15 }
 0x3c0   :  { %2313 = vpow2.f32 %v686_v16  ;;  %v688_v18 = vmul.f32 1.442695, %v679_v17 }
 0x3c2   :  { %2315 = vpow2.f32 %v688_v18 }
 0x3ca   :  { %v2314_v19 = vpop.eup %2313 }
 0x3cb   :  { %v702_v20 = vsel %vm653_vm2, %v2314_v19, 0.0 }
 0x3cc   :  { %v2316_v21 = vpop.eup %2315  ;;  %703 = vadd.xlane.f32.xlu0 %v702_v20 }
 0x3cd   :  { %v705_v22 = vsel %vm653_vm2, %v2316_v21, 0.0 }
 0x3ce   :  { %706 = vadd.xlane.f32.xlu1 %v705_v22 }
 0x432   :  { %v662_v23 = vpop.xlane.xlu0 %661 }
 0x433   :  { %v680_v24 = vsub.f32 %v647_v51, %v662_v23 }
 0x435   :  { %v690_v25 = vmul.f32 1.442695, %v680_v24 }
 0x436   :  { %v665_v26 = vpop.xlane.xlu0 %664 }
 0x437   :  { %2317 = vpow2.f32 %v690_v25  ;;  %v681_v27 = vsub.f32 %v648_v53, %v665_v26 }
 0x439   :  { %v692_v28 = vmul.f32 1.442695, %v681_v27 }
 0x43a   :  { %v668_v29 = vpop.xlane.xlu0 %667 }
 0x43b   :  { %2319 = vpow2.f32 %v692_v28  ;;  %v682_v31 = vsub.f32 %v649_v61, %v668_v29 }
 0x43c   :  { %v671_v32 = vpop.xlane.xlu1 %670 }
 0x43d   :  { %v694_v33 = vmul.f32 1.442695, %v682_v31  ;;  %v683_v34 = vsub.f32 %v650_v63, %v671_v32 }
 0x43f   :  { %2321 = vpow2.f32 %v694_v33  ;;  %v696_v35 = vmul.f32 1.442695, %v683_v34 }
 0x441   :  { %v2648_v36 = vpop.eup %2317  ;;  %2323 = vpow2.f32 %v696_v35 }
 0x442   :  { %v674_v37 = vpop.xlane.xlu0 %673  ;;  %v708_v38 = vsel %vm653_vm2, %v2648_v36, 0.0 }
 0x443   :  { %v684_v39 = vsub.f32 %v651_v9, %v674_v37  ;;  %709 = vadd.xlane.f32.xlu0 %v708_v38  ;;  %v2222_v37 = vld [vmem:[#allocation4 + $0x8] sm:$0xff]  }
 0x444   :  { %v677_v49 = vpop.xlane.xlu1 %676 }
 0x445   :  { %v2320_v40 = vpop.eup %2319  ;;  %v698_v41 = vmul.f32 1.442695, %v684_v39  ;;  %v685_v57 = vsub.f32 %v2642_v11, %v677_v49  ;;  %v2224_v49 = vld [vmem:[#allocation4 + $0x18] sm:$0xff]  }
 0x446   :  { %v711_v42 = vsel %vm653_vm2, %v2320_v40, 0.0 }
 0x447   :  { %2325 = vpow2.f32 %v698_v41  ;;  %712 = vadd.xlane.f32.xlu1 %v711_v42  ;;  %v700_v58 = vmul.f32 1.442695, %v685_v57  ;;  %v2223_v42 = vld [vmem:[#allocation4 + $0x10] sm:$0xff]  }
 0x449   :  { %v2322_v43 = vpop.eup %2321 }
 0x44a   :  { %v714_v44 = vsel %vm653_vm2, %v2322_v43, 0.0 }
 0x44b   :  { %v2324_v45 = vpop.eup %2323  ;;  %715 = vadd.xlane.f32.xlu0 %v714_v44 }
 0x44c   :  { %v717_v46 = vsel %vm653_vm2, %v2324_v45, 0.0 }
 0x44d   :  { %718 = vadd.xlane.f32.xlu1 %v717_v46 }
 0x451   :  { %v2655_v47 = vpop.eup %2325 }
 0x452   :  { %v720_v48 = vsel %vm653_vm2, %v2655_v47, 0.0 }
 0x453   :  { %721 = vadd.xlane.f32.xlu0 %v720_v48 }
 0x459   :  { %v704_v50 = vpop.xlane.xlu0 %703 }
 0x45a   :  { %2327 = vrcp.f32 %v704_v50  ;;  %v2225_v50 = vld [vmem:[#allocation4 + $0x20] sm:$0xff]  }
 0x45b   :  { %v707_v51 = vpop.xlane.xlu1 %706 }
 0x45c   :  { %2329 = vrcp.f32 %v707_v51  ;;  %v2226_v51 = vld [vmem:[#allocation4 + $0x28] sm:$0xff]  }
 0x45d   :  { %2331 = vpow2.f32 %v700_v58 }
 0x45e   :  { %2165 = vrot.lane.b32.xlu1 %v2601_v2, %s2438_s18 }
 0x464   :  { %v2328_v52 = vpop.eup %2327 }
 0x465   :  { %v727_v54 = vmul.f32 %v2328_v52, %v2314_v19  ;;  %v2227_v52 = vld [vmem:[#allocation4 + $0x30] sm:$0xff]  }
 0x466   :  { %v2330_v53 = vpop.eup %2329 }
 0x467   :  { %v729_v55 = vmul.f32 %v2330_v53, %v2316_v21  ;;  %v2332_v59 = vpop.eup %2331  ;;  %v2228_v53 = vld [vmem:[#allocation4 + $0x38] sm:$0xff]  }
 0x468   :  { %v723_v60 = vsel %vm653_vm2, %v2332_v59, 0.0 }
 0x469   :  { %2160 = vrot.lane.b32.xlu0 %v2601_v2, %s2447_s2  ;;  %v742_v56 = vpack.c.bf16 %v729_v55, %v727_v54 }
 0x46b   :  { %2076 = vmatmul.mubr.msk.bf16.vlgmr.msra.gmra.mrb[4].mxu0 %vm653_vm2, %v742_v56 }
 0x46c   :  { %2087 = vmatprep.mubr.msk.bf16.mxu0 %vm2446_vm0, %v2444_v4 }
 0x482   :  { %724 = vadd.xlane.f32.xlu1 %v723_v60 }
 0x493   :  { %2170 = vrot.lane.b32.xlu1 %v2601_v2, %s2448_s3 }
 0x4d0   :  { %v710_v61 = vpop.xlane.xlu0 %709 }
 0x4d4   :  { %v713_v62 = vpop.xlane.xlu1 %712 }
 0x4d5   :  { %2333 = vrcp.f32 %v713_v62 }
 0x4d8   :  { %v716_v63 = vpop.xlane.xlu0 %715 }
 0x4d9   :  { %2335 = vrcp.f32 %v716_v63 }
 0x4da   :  { %2337 = vrcp.f32 %v710_v61  ;;  %v719_v0 = vpop.xlane.xlu1 %718 }
 0x4db   :  { %2339 = vrcp.f32 %v719_v0 }
 0x4de   :  { %v2166_v1 = vpop.permute.xlu1 %2165 }
 0x4df   :  { %v2168_v3 = vunpack.i.h.bf16 %v2166_v1  ;;  %v2167_v5 = vunpack.i.l.bf16 %v2166_v1  ;;  %v2334_v8 = vpop.eup %2333 }
 0x4e0   :  { %v722_v6 = vpop.xlane.xlu0 %721  ;;  %v733_v14 = vmul.f32 %v2334_v8, %v2320_v40 }
 0x4e1   :  { %v444_v7 = vpack.c.bf16 %v2168_v3, %v2167_v5  ;;  %2341 = vrcp.f32 %v722_v6 }
 0x4e3   :  { %v2336_v9 = vpop.eup %2335  ;;  %2086 = vmatpush3.bf16.msra.mxu0 %v444_v7 }
 0x4e4   :  { %v2338_v10 = vpop.eup %2337  ;;  %v2161_v11 = vpop.permute.xlu0 %2160  ;;  %2097 = vmatprep.subr.bf16.mxu0 %v2444_v4  ;;  %v735_v15 = vmul.f32 %v2336_v9, %v2322_v43 }
 0x4e5   :  { %v2340_v2 = vpop.eup %2339  ;;  %v2163_v12 = vunpack.i.h.bf16 %v2161_v11  ;;  %v2162_v13 = vunpack.i.l.bf16 %v2161_v11  ;;  %v731_v18 = vmul.f32 %v2338_v10, %v2648_v36  ;;  %v2221_v36 = vld [vmem:[#allocation4] sm:$0xff]  }
 0x4e6   :  { %v737_v16 = vmul.f32 %v2340_v2, %v2324_v45  ;;  %v1875_v2 = vld [vmem:[%s2886_s6] ss:$0 sm:$0xff] }
 0x4e7   :  { %v443_v17 = vpack.c.bf16 %v2163_v12, %v2162_v13  ;;  %v743_v20 = vpack.c.bf16 %v733_v14, %v731_v18 }
 0x4e8   :  { %v744_v19 = vpack.c.bf16 %v737_v16, %v735_v15  ;;  %v2365_v16 = vld [vmem:[%s2880_s0] sm:$0xff] }
 0x4e9   :  { %2080 = vmatpush3.bf16.msra.mxu1 %v443_v17 }
 0x4ea   :  { %2088 = vmatmul.mubr.msk.bf16.vlgmr.msra.gmra.mrb[8].mxu0 %vm653_vm2, %v744_v19  ;;  %2091 = vmatprep.subr.bf16.mxu1 %v2444_v4 }
 0x4eb   :  { %2113 = vmatprep.mubr.msk.bf16.mxu0 %vm2446_vm0, %v2444_v4  ;;  %v2342_v26 = vpop.eup %2341  ;;  %2098 = vmatpush3.bf16.msra.mxu0 %v2221_v36 }
 0x4ec   :  { %2082 = vmatmul.mubr.msk.bf16.vlgmr.msra.gmra.mrb[20].mxu1 %vm653_vm2, %v743_v20  ;;  %v739_v28 = vmul.f32 %v2342_v26, %v2655_v47  ;;  %2099 = vmatprep.subr.bf16.mxu0 %v2444_v4  ;;  %v2240_v26 = vld [vmem:[%s2889_s9 + $0x2c] ss:$16 sps:$4 sm:$0xff]  }
 0x4ed   :  { %2093 = vmatprep.mubr.msk.bf16.mxu1 %vm2446_vm0, %v2444_v4 }
 0x4ef   :  { %2100 = vmatpush3.bf16.msra.mxu0 %v2222_v37 }
 0x4f0   :  { %2101 = vmatprep.subr.bf16.mxu0 %v2444_v4 }
 0x4f3   :  { %2102 = vmatpush3.bf16.msra.mxu0 %v2223_v42  ;;  %v2249_v42 = vld [vmem:[%s2889_s9 + $0x64] ss:$16 sps:$4 sm:$0xff]  }
 0x4f4   :  { %2103 = vmatprep.subr.bf16.mxu0 %v2444_v4 }
 0x4f7   :  { %2104 = vmatpush3.bf16.msra.mxu0 %v2224_v49  ;;  %v2256_v49 = vld [vmem:[%s2889_s9 + $0x88] ss:$16 sps:$4 sm:$0xff]  }
 0x4f8   :  { %2105 = vmatprep.subr.bf16.mxu0 %v2444_v4 }
 0x4fb   :  { %2106 = vmatpush3.bf16.msra.mxu0 %v2225_v50  ;;  %v2261_v50 = vld [vmem:[%s2889_s9 + $0xa4] ss:$16 sps:$4 sm:$0xff]  }
 0x4fc   :  { %2107 = vmatprep.subr.bf16.mxu0 %v2444_v4 }
 0x4ff   :  { %2108 = vmatpush3.bf16.msra.mxu0 %v2226_v51  ;;  %v2264_v51 = vld [vmem:[%s2889_s9 + $0xac] ss:$16 sps:$4 sm:$0xff]  }
 0x500   :  { %2109 = vmatprep.subr.bf16.mxu0 %v2444_v4 }
 0x503   :  { %2110 = vmatpush3.bf16.msra.mxu0 %v2227_v52  ;;  %v2259_v52 = vld [vmem:[%s2889_s9 + $0xa0] ss:$16 sps:$4 sm:$0xff]  }
 0x504   :  { %2111 = vmatprep.subr.bf16.mxu0 %v2444_v4 }
 0x507   :  { %2112 = vmatpush3.bf16.msra.mxu0 %v2228_v53  ;;  %v2262_v53 = vld [vmem:[%s2889_s9 + $0xa8] ss:$16 sps:$4 sm:$0xff]  }
 0x50f   :  { %v725_v21 = vpop.xlane.xlu1 %724 }
 0x510   :  { %2343 = vrcp.f32 %v725_v21  ;;  %v2229_v21 = vld [vmem:[%s2889_s9] ss:$16 sps:$4 sm:$0xff]  }
 0x513   :  { %v2171_v22 = vpop.permute.xlu1 %2170 }
 0x514   :  { %v2173_v23 = vunpack.i.h.bf16 %v2171_v22  ;;  %v2172_v24 = vunpack.i.l.bf16 %v2171_v22  ;;  %v2231_v22 = vld [vmem:[%s2889_s9 + $0x4] ss:$16 sps:$4 sm:$0xff]  }
 0x516   :  { %v445_v25 = vpack.c.bf16 %v2173_v23, %v2172_v24  ;;  %v2232_v23 = vld [vmem:[%s2889_s9 + $0x8] ss:$16 sps:$4 sm:$0xff]   ;;  %v2234_v24 = vld [vmem:[%s2889_s9 + $0xc] ss:$16 sps:$4 sm:$0xff]  }
 0x517   :  { %1367 = vmatprep.subr.bf16.mxu0 %v2234_v24  ;;  %v2285_v24 = vld [vmem:[#allocation6 + $0x50] sm:$0xff]  }
 0x518   :  { %2092 = vmatpush3.bf16.msra.mxu1 %v445_v25  ;;  %v2237_v25 = vld [vmem:[%s2889_s9 + $0x24] ss:$16 sps:$4 sm:$0xff]  }
 0x519   :  { %1324 = vmatprep.subr.bf16.mxu1 %v2231_v22  ;;  %v2283_v22 = vld [vmem:[#allocation6 + $0x8] sm:$0xff]  }
 0x51a   :  { %v2344_v27 = vpop.eup %2343 }
 0x51b   :  { %v741_v29 = vmul.f32 %v2344_v27, %v2332_v59  ;;  %v2235_v27 = vld [vmem:[%s2889_s9 + $0x20] ss:$16 sps:$4 sm:$0xff]  }
 0x51d   :  { %v745_v31 = vpack.c.bf16 %v741_v29, %v739_v28  ;;  %v2238_v28 = vld [vmem:[%s2889_s9 + $0x28] ss:$16 sps:$4 sm:$0xff]  }
 0x51f   :  { %2094 = vmatmul.mubr.msk.bf16.vlgmr.msra.gmra.mrb[24].mxu1 %vm653_vm2, %v745_v31 }
 0x520   :  { %1356 = vmatprep.mubr.bf16.mxu1 %v2445_v30  ;;  %1325 = vmatpush1.bf16.msra.mxu1 %v2229_v21  ;;  %v2282_v21 = vld [vmem:[#allocation6 + $0xc8] sm:$0xff]  }
 0x521   :  { %1326 = vmatprep.subr.bf16.mxu1 %v2237_v25  ;;  %v2286_v25 = vld [vmem:[#allocation6 + $0xd0] sm:$0xff]  }
 0x524   :  { %1327 = vmatpush1.bf16.msra.mxu1 %v2235_v27  ;;  %v2288_v27 = vld [vmem:[#allocation6 + $0x90] sm:$0xff]  }
 0x53e   :  { %v783_v32 = vpop.f32.mrb[4].mxu0 }
 0x53f   :  { %v2077_v33 = vpop.f32.mrb[5].mxu0 }
 0x540   :  { %v786_v34 = vpop.f32.mrb[6].mxu0 }
 0x541   :  { %v2078_v35 = vpop.f32.mrb[7].mxu0 }
 0x5bd   :  { %v871_v38 = vpop.f32.mrb[8].mxu0 }
 0x5be   :  { %v2089_v39 = vpop.f32.mrb[9].mxu0 }
 0x5bf   :  { %v827_v40 = vpop.f32.mrb[20].mxu1  ;;  %v874_v41 = vpop.f32.mrb[10].mxu0  ;;  %v2246_v39 = vld [vmem:[%s2889_s9 + $0x4c] ss:$16 sps:$4 sm:$0xff]  }
 0x5c0   :  { %v2179_v43 = vpack.i.bf16 %v874_v41, %v871_v38  ;;  %v2083_v44 = vpop.f32.mrb[21].mxu1  ;;  %v2090_v45 = vpop.f32.mrb[11].mxu0  ;;  %v2243_v38 = vld [vmem:[%s2889_s9 + $0x44] ss:$16 sps:$4 sm:$0xff]   ;;  %v2244_v41 = vld [vmem:[%s2889_s9 + $0x48] ss:$16 sps:$4 sm:$0xff]  }
 0x5c1   :  { %v830_v46 = vpop.f32.mrb[22].mxu1  ;;  %1328 = vmatprep.subr.bf16.mxu1 %v2243_v38  ;;  %v2247_v44 = vld [vmem:[%s2889_s9 + $0x60] ss:$16 sps:$4 sm:$0xff]   ;;  %v2250_v45 = vld [vmem:[%s2889_s9 + $0x68] ss:$16 sps:$4 sm:$0xff]  }
 0x5c2   :  { %v2174_v47 = vpack.i.bf16 %v830_v46, %v827_v40  ;;  %2180 = vrot.lane.b32.xlu0 %v2179_v43, %s2438_s18  ;;  %v2084_v48 = vpop.f32.mrb[23].mxu1  ;;  %v2241_v40 = vld [vmem:[%s2889_s9 + $0x40] ss:$16 sps:$4 sm:$0xff]   ;;  %v2252_v43 = vld [vmem:[%s2889_s9 + $0x6c] ss:$16 sps:$4 sm:$0xff]  }
 0x5c3   :  { %1329 = vmatpush1.bf16.msra.mxu1 %v2241_v40  ;;  %v2255_v46 = vld [vmem:[%s2889_s9 + $0x84] ss:$16 sps:$4 sm:$0xff]   ;;  %v2253_v48 = vld [vmem:[%s2889_s9 + $0x80] ss:$16 sps:$4 sm:$0xff]   ;;  %v2298_v38 = vld [vmem:[#allocation6 + $0xe8] sm:$0xff]  }
 0x5c4   :  { %2175 = vrot.lane.b32.xlu1 %v2174_v47, %s2448_s3  ;;  %1330 = vmatprep.subr.bf16.mxu1 %v2249_v42  ;;  %v2258_v47 = vld [vmem:[%s2889_s9 + $0x8c] ss:$16 sps:$4 sm:$0xff]   ;;  %v2302_v42 = vld [vmem:[#allocation6 + $0xf0] sm:$0xff]  }
 0x5c5   :  { %v2300_v40 = vld [vmem:[#allocation6 + $0xa8] sm:$0xff]  }
 0x5c7   :  { %1331 = vmatpush1.bf16.msra.mxu1 %v2247_v44  ;;  %v2304_v44 = vld [vmem:[#allocation6 + $0xb0] sm:$0xff]  }
 0x5c8   :  { %1332 = vmatprep.subr.bf16.mxu1 %v2255_v46  ;;  %v2306_v46 = vld [vmem:[#allocation6 + $0xf8] sm:$0xff]  }
 0x5cb   :  { %1333 = vmatpush1.bf16.msra.mxu1 %v2253_v48  ;;  %v2308_v48 = vld [vmem:[#allocation6 + $0xb8] sm:$0xff]  }
 0x5cc   :  { %1334 = vmatprep.subr.bf16.mxu1 %v2261_v50 }
 0x5cf   :  { %1335 = vmatpush1.bf16.msra.mxu1 %v2259_v52 }
 0x5f2   :  { %v915_v54 = vpop.f32.mrb[24].mxu1 }
 0x5f3   :  { %v2095_v55 = vpop.f32.mrb[25].mxu1 }
 0x5f4   :  { %v918_v56 = vpop.f32.mrb[26].mxu1  ;;  %v2267_v55 = vld [vmem:[%s2889_s9 + $0xc4] ss:$16 sps:$4 sm:$0xff]  }
 0x5f5   :  { %v2184_v57 = vpack.i.bf16 %v918_v56, %v915_v54  ;;  %v2096_v58 = vpop.f32.mrb[27].mxu1  ;;  %v2265_v54 = vld [vmem:[%s2889_s9 + $0xc0] ss:$16 sps:$4 sm:$0xff]   ;;  %v2268_v56 = vld [vmem:[%s2889_s9 + $0xc8] ss:$16 sps:$4 sm:$0xff]   ;;  %1336 = vmatprep.subr.bf16.mxu1 %v2267_v55 }
 0x5f6   :  { %v2273_v58 = vld [vmem:[%s2889_s9 + $0xe4] ss:$16 sps:$4 sm:$0xff]   ;;  %1337 = vmatpush1.bf16.msra.mxu1 %v2265_v54 }
 0x5f7   :  { %2185 = vrot.lane.b32.xlu1 %v2184_v57, %s2447_s2  ;;  %v2270_v57 = vld [vmem:[%s2889_s9 + $0xcc] ss:$16 sps:$4 sm:$0xff]   ;;  %1338 = vmatprep.subr.bf16.mxu1 %v2273_v58 }
 0x634   :  { %v2181_v62 = vpop.permute.xlu0 %2180 }
 0x635   :  { %v2183_v1 = vunpack.i.h.bf16 %v2181_v62  ;;  %v2182_v4 = vunpack.i.l.bf16 %v2181_v62 }
 0x636   :  { %v2176_v59 = vpop.permute.xlu1 %2175 }
 0x637   :  { %v2178_v60 = vunpack.i.h.bf16 %v2176_v59  ;;  %v2177_v61 = vunpack.i.l.bf16 %v2176_v59  ;;  %v2276_v59 = vld [vmem:[%s2889_s9 + $0xec] ss:$16 sps:$4 sm:$0xff]  }
 0x639   :  { %v947_v63 = vsel %vm446_vm1, %v786_v34, %v2178_v60  ;;  %v946_v0 = vsel %vm446_vm1, %v783_v32, %v2177_v61  ;;  %v2271_v60 = vld [vmem:[%s2889_s9 + $0xe0] ss:$16 sps:$4 sm:$0xff]   ;;  %v2274_v61 = vld [vmem:[%s2889_s9 + $0xe8] ss:$16 sps:$4 sm:$0xff]  }
 0x63a   :  { %v949_v7 = vsel %vm948_vm3, %v946_v0, %v2182_v4  ;;  %v950_v8 = vsel %vm948_vm3, %v947_v63, %v2183_v1  ;;  %1339 = vmatpush1.bf16.msra.mxu1 %v2271_v60 }
 0x669   :  { %v2186_v3 = vpop.permute.xlu1 %2185 }
 0x66a   :  { %v2188_v5 = vunpack.i.h.bf16 %v2186_v3  ;;  %v2187_v6 = vunpack.i.l.bf16 %v2186_v3 }
 0x66c   :  { %v953_v9 = vsel %vm951_vm4, %v950_v8, %v2188_v5  ;;  %v952_v10 = vsel %vm951_vm4, %v949_v7, %v2187_v6  ;;  %v1884_v7 = vld [vmem:[%s2887_s7] ss:$0 sm:$0xff] }
 0x66d   :  { %v954_v11 = vpack.c.bf16 %v953_v9, %v952_v10 }
 0x66f   :  { %2114 = vmatmul.mubr.bf16.vlgmr.msra.gmra.mrb[12].mxu0 %v954_v11  ;;  %v1885_v11 = vld [vmem:[%s2888_s8] ss:$0 sm:$0xff] }
 0x670   :  { %1399 = vmatprep.mubr.bf16.mxu0 %v2445_v30  ;;  %v2366_v30 = vld [vmem:[%s2880_s0 + $0x8] sm:$0xff]  ;;  %1368 = vmatpush1.bf16.msra.mxu0 %v2232_v23 }
 0x671   :  { %1369 = vmatprep.subr.bf16.mxu0 %v2240_v26  ;;  %v2284_v23 = vld [vmem:[#allocation6 + $0x88] sm:$0xff]   ;;  %v2287_v26 = vld [vmem:[#allocation6 + $0x10] sm:$0xff]  }
 0x674   :  { %1370 = vmatpush1.bf16.msra.mxu0 %v2238_v28  ;;  %v2289_v28 = vld [vmem:[#allocation6 + $0x58] sm:$0xff]  }
 0x675   :  { %1371 = vmatprep.subr.bf16.mxu0 %v2246_v39  ;;  %v2299_v39 = vld [vmem:[#allocation6 + $0x28] sm:$0xff]  }
 0x678   :  { %1372 = vmatpush1.bf16.msra.mxu0 %v2244_v41  ;;  %v2301_v41 = vld [vmem:[#allocation6 + $0x70] sm:$0xff]  }
 0x679   :  { %1373 = vmatprep.subr.bf16.mxu0 %v2252_v43  ;;  %v2303_v43 = vld [vmem:[#allocation6 + $0x30] sm:$0xff]  }
 0x67c   :  { %1374 = vmatpush1.bf16.msra.mxu0 %v2250_v45  ;;  %v2305_v45 = vld [vmem:[#allocation6 + $0x78] sm:$0xff]  }
 0x67d   :  { %1375 = vmatprep.subr.bf16.mxu0 %v2258_v47  ;;  %v2307_v47 = vld [vmem:[#allocation6 + $0x38] sm:$0xff]  }
 0x680   :  { %1376 = vmatpush1.bf16.msra.mxu0 %v2256_v49  ;;  %v1144_v49 = vlaneseq }
 0x681   :  { %1377 = vmatprep.subr.bf16.mxu0 %v2264_v51 }
 0x682   :  { %v1145_v50 = vshrl.u32 %v1144_v49, 7 }
 0x684   :  { %1378 = vmatpush1.bf16.msra.mxu0 %v2262_v53  ;;  %v1146_v51 = vsub.s32 0, %v1145_v50  ;;  %v1154_v52 = vsub.s32 2, %v1145_v50  ;;  %v1142_v53 = vld [vmem:[%s2890_s10] sm:$0xf]  ;;  %v1150_v54 = vsub.s32 1, %v1145_v50  ;;  %v1158_v55 = vsub.s32 3, %v1145_v50 }
 0x685   :  { %1379 = vmatprep.subr.bf16.mxu0 %v2270_v57 }
 0x686   :  { %v1155_v57 = vrot.slane %v1142_v53, %v1154_v52  ;;  %v1151_v58 = vrot.slane %v1142_v53, %v1150_v54 }
 0x688   :  { %1380 = vmatpush1.bf16.msra.mxu0 %v2268_v56  ;;  %v1147_v56 = vrot.slane %v1142_v53, %v1146_v51 }
 0x689   :  { %1381 = vmatprep.subr.bf16.mxu0 %v2276_v59  ;;  %v1159_v59 = vrot.slane %v1142_v53, %v1158_v55 }
 0x68c   :  { %1382 = vmatpush1.bf16.msra.mxu0 %v2274_v61 }
 0x742   :  { %v1060_v12 = vpop.f32.mrb[12].mxu0 }
 0x743   :  { %v1061_v13 = vadd.f32 %v1875_v2, %v1060_v12  ;;  %v2115_v14 = vpop.f32.mrb[13].mxu0 }
 0x744   :  { %v1063_v15 = vpop.f32.mrb[14].mxu0 }
 0x745   :  { %v2701_v17 = vadd.f32 %v2365_v16, %v1061_v13  ;;  %v1064_v18 = vadd.f32 %v1875_v2, %v1063_v15  ;;  %v2116_v19 = vpop.f32.mrb[15].mxu0  ;;  %v2277_v15 = vld [vmem:[#allocation6 + $0x40] sm:$0xff]  }
 0x746   :  { %v2278_v16 = vld [vmem:[#allocation6 + $0xc0] sm:$0xff]   ;;  %1985 = vmatprep.subr.bf16.mxu1 %v2277_v15 }
 0x747   :  { %v2706_v20 = vadd.f32 %v2366_v30, %v1064_v18  ;;  %1071 = vadd.xlane.f32.xlu0 %v2701_v17  ;;  %v2279_v18 = vld [vmem:[#allocation6] sm:$0xff]   ;;  %2007 = vmatprep.subr.bf16.mxu0 %v2278_v16  ;;  %v2281_v30 = vld [vmem:[#allocation6 + $0x48] sm:$0xff]  }
 0x748   :  { %v2280_v19 = vld [vmem:[#allocation6 + $0x80] sm:$0xff]  }
 0x749   :  { %1073 = vadd.xlane.f32.xlu1 %v2706_v20 }
 0x7d4   :  { %v1072_v29 = vpop.xlane.xlu0 %1071 }
 0x7d5   :  { %v1075_v31 = vmul.f32 0.0078125, %v1072_v29  ;;  %v2290_v29 = vld [vmem:[#allocation6 + $0xd8] sm:$0xff]  }
 0x7d6   :  { %v1074_v32 = vpop.xlane.xlu1 %1073 }
 0x7d7   :  { %v2735_v33 = vsub.f32 %v2701_v17, %v1075_v31  ;;  %v1076_v34 = vmul.f32 0.0078125, %v1074_v32  ;;  %v2291_v31 = vld [vmem:[#allocation6 + $0x18] sm:$0xff]  }
 0x7d8   :  { %v2292_v32 = vld [vmem:[#allocation6 + $0x98] sm:$0xff]  }
 0x7d9   :  { %v2738_v35 = vsub.f32 %v2706_v20, %v1076_v34  ;;  %v1079_v36 = vmul.f32 %v2735_v33, %v2735_v33  ;;  %v2294_v34 = vld [vmem:[#allocation6 + $0xe0] sm:$0xff]  }
 0x7db   :  { %1081 = vadd.xlane.f32.xlu0 %v1079_v36  ;;  %v1080_v37 = vmul.f32 %v2738_v35, %v2738_v35  ;;  %v2296_v36 = vld [vmem:[#allocation6 + $0xa0] sm:$0xff]  }
 0x7df   :  { %1083 = vadd.xlane.f32.xlu0 %v1080_v37  ;;  %v2297_v37 = vld [vmem:[#allocation6 + $0x68] sm:$0xff]  }
 0x868   :  { %v1082_v62 = vpop.xlane.xlu0 %1081 }
 0x869   :  { %v1085_v63 = vmul.f32 0.0078125, %v1082_v62 }
 0x86b   :  { %v1087_v0 = vadd.f32 1e-05, %v1085_v63 }
 0x86c   :  { %v1084_v1 = vpop.xlane.xlu0 %1083 }
 0x86d   :  { %2345 = vrsqrt.f32 %v1087_v0  ;;  %v1086_v4 = vmul.f32 0.0078125, %v1084_v1 }
 0x86f   :  { %v1088_v3 = vadd.f32 1e-05, %v1086_v4 }
 0x871   :  { %2347 = vrsqrt.f32 %v1088_v3 }
 0x877   :  { %v2346_v5 = vpop.eup %2345 }
 0x878   :  { %v1091_v6 = vmul.f32 %v2346_v5, %v2735_v33  ;;  %v2293_v33 = vld [vmem:[#allocation6 + $0x60] sm:$0xff]  }
 0x87a   :  { %v1099_v10 = vmul.f32 %v1884_v7, %v1091_v6 }
 0x87b   :  { %v2348_v8 = vpop.eup %2347 }
 0x87c   :  { %v1092_v9 = vmul.f32 %v2348_v8, %v2738_v35  ;;  %v1107_v12 = vadd.f32 %v1885_v11, %v1099_v10  ;;  %v2295_v35 = vld [vmem:[#allocation6 + $0x20] sm:$0xff]  }
 0x87e   :  { %v1100_v2 = vmul.f32 %v1884_v7, %v1092_v9 }
 0x880   :  { %v1108_v13 = vadd.f32 %v1885_v11, %v1100_v2 }
 0x882   :  { %v1109_v14 = vpack.c.bf16 %v1108_v13, %v1107_v12 }
 0x884   :  { %1357 = vmatmul.mubr.bf16.vlgmr.msra.gmra.mrb[28].mxu1 %v1109_v14  ;;  %1400 = vmatmul.mubr.bf16.vlgmr.msra.gmra.mrb[16].mxu0 %v1109_v14 }
 0x885   :  { %1986 = vmatpush3.bf16.msra.mxu1 %v2279_v18  ;;  %2008 = vmatpush3.bf16.msra.mxu0 %v2280_v19 }
 0x886   :  { %1987 = vmatprep.subr.bf16.mxu1 %v2281_v30  ;;  %2009 = vmatprep.subr.bf16.mxu0 %v2282_v21 }
 0x889   :  { %1988 = vmatpush3.bf16.msra.mxu1 %v2283_v22  ;;  %2010 = vmatpush3.bf16.msra.mxu0 %v2284_v23 }
 0x88a   :  { %1989 = vmatprep.subr.bf16.mxu1 %v2285_v24  ;;  %2011 = vmatprep.subr.bf16.mxu0 %v2286_v25 }
 0x88d   :  { %1990 = vmatpush3.bf16.msra.mxu1 %v2287_v26  ;;  %2012 = vmatpush3.bf16.msra.mxu0 %v2288_v27 }
 0x88e   :  { %1991 = vmatprep.subr.bf16.mxu1 %v2289_v28  ;;  %2013 = vmatprep.subr.bf16.mxu0 %v2290_v29 }
 0x891   :  { %1992 = vmatpush3.bf16.msra.mxu1 %v2291_v31  ;;  %2014 = vmatpush3.bf16.msra.mxu0 %v2292_v32 }
 0x892   :  { %1993 = vmatprep.subr.bf16.mxu1 %v2293_v33  ;;  %2015 = vmatprep.subr.bf16.mxu0 %v2294_v34 }
 0x895   :  { %1994 = vmatpush3.bf16.msra.mxu1 %v2295_v35  ;;  %2016 = vmatpush3.bf16.msra.mxu0 %v2296_v36 }
 0x896   :  { %1995 = vmatprep.subr.bf16.mxu1 %v2297_v37  ;;  %2017 = vmatprep.subr.bf16.mxu0 %v2298_v38 }
 0x899   :  { %1996 = vmatpush3.bf16.msra.mxu1 %v2299_v39  ;;  %2018 = vmatpush3.bf16.msra.mxu0 %v2300_v40 }
 0x89a   :  { %1997 = vmatprep.subr.bf16.mxu1 %v2301_v41  ;;  %2019 = vmatprep.subr.bf16.mxu0 %v2302_v42 }
 0x89d   :  { %1998 = vmatpush3.bf16.msra.mxu1 %v2303_v43  ;;  %2020 = vmatpush3.bf16.msra.mxu0 %v2304_v44 }
 0x89e   :  { %1999 = vmatprep.subr.bf16.mxu1 %v2305_v45  ;;  %2021 = vmatprep.subr.bf16.mxu0 %v2306_v46 }
 0x8a1   :  { %2000 = vmatpush3.bf16.msra.mxu1 %v2307_v47  ;;  %2022 = vmatpush3.bf16.msra.mxu0 %v2308_v48 }
 0x957   :  { %v1358_v60 = vpop.f32.mrb[28].mxu1  ;;  %v1401_v61 = vpop.f32.mrb[16].mxu0 }
 0x958   :  { %v2827_v62 = vadd.f32 %v1358_v60, %v1147_v56  ;;  %v2829_v63 = vadd.f32 %v1401_v61, %v1155_v57  ;;  %v1360_v0 = vpop.f32.mrb[29].mxu1  ;;  %v1403_v1 = vpop.f32.mrb[17].mxu0 }
 0x959   :  { %v2831_v4 = vadd.f32 %v1360_v0, %v1151_v58  ;;  %v2833_v3 = vadd.f32 %v1403_v1, %v1159_v59  ;;  %v1362_v5 = vpop.f32.mrb[30].mxu1  ;;  %v1405_v6 = vpop.f32.mrb[18].mxu0 }
 0x95a   :  { %v1418_v7 = vmul.f32 0.044715, %v2827_v62  ;;  %v1420_v8 = vmul.f32 0.044715, %v2829_v63  ;;  %v1363_v9 = vadd.f32 %v1362_v5, %v1147_v56  ;;  %v1406_v10 = vadd.f32 %v1405_v6, %v1155_v57  ;;  %v1364_v11 = vpop.f32.mrb[31].mxu1  ;;  %v1407_v2 = vpop.f32.mrb[19].mxu0 }
 0x95b   :  { %v1419_v12 = vmul.f32 0.044715, %v2831_v4  ;;  %v1421_v13 = vmul.f32 0.044715, %v2833_v3  ;;  %v2839_v14 = vadd.f32 %v1364_v11, %v1151_v58  ;;  %v2841_v15 = vadd.f32 %v1407_v2, %v1159_v59 }
 0x95c   :  { %v1426_v16 = vmul.f32 %v1418_v7, %v2827_v62  ;;  %v1428_v18 = vmul.f32 %v1420_v8, %v2829_v63  ;;  %v1422_v19 = vmul.f32 0.044715, %v1363_v9  ;;  %v1424_v30 = vmul.f32 0.044715, %v1406_v10 }
 0x95d   :  { %v1427_v21 = vmul.f32 %v1419_v12, %v2831_v4  ;;  %v1429_v22 = vmul.f32 %v1421_v13, %v2833_v3  ;;  %v1423_v23 = vmul.f32 0.044715, %v2839_v14  ;;  %v1425_v24 = vmul.f32 0.044715, %v2841_v15 }
 0x95e   :  { %v1434_v25 = vmul.f32 %v1426_v16, %v2827_v62  ;;  %v1436_v26 = vmul.f32 %v1428_v18, %v2829_v63  ;;  %v1430_v27 = vmul.f32 %v1422_v19, %v1363_v9  ;;  %v1432_v28 = vmul.f32 %v1424_v30, %v1406_v10 }
 0x95f   :  { %v1435_v29 = vmul.f32 %v1427_v21, %v2831_v4  ;;  %v1437_v31 = vmul.f32 %v1429_v22, %v2833_v3  ;;  %v1431_v32 = vmul.f32 %v1423_v23, %v2839_v14  ;;  %v1433_v33 = vmul.f32 %v1425_v24, %v2841_v15 }
 0x960   :  { %v1442_v34 = vadd.f32 %v1434_v25, %v2827_v62  ;;  %v1444_v35 = vadd.f32 %v1436_v26, %v2829_v63  ;;  %v1438_v36 = vmul.f32 %v1430_v27, %v1363_v9  ;;  %v1440_v37 = vmul.f32 %v1432_v28, %v1406_v10 }
 0x961   :  { %v1439_v38 = vmul.f32 %v1431_v32, %v2839_v14  ;;  %v1441_v39 = vmul.f32 %v1433_v33, %v2841_v15  ;;  %v1443_v44 = vadd.f32 %v1435_v29, %v2831_v4  ;;  %v1445_v48 = vadd.f32 %v1437_v31, %v2833_v3 }
 0x962   :  { %v1450_v40 = vmul.f32 0.7978846, %v1442_v34  ;;  %v1452_v41 = vmul.f32 0.7978846, %v1444_v35  ;;  %v1446_v42 = vadd.f32 %v1438_v36, %v1363_v9  ;;  %v1448_v43 = vadd.f32 %v1440_v37, %v1406_v10 }
 0x963   :  { %v1447_v45 = vadd.f32 %v1439_v38, %v2839_v14  ;;  %v1451_v49 = vmul.f32 0.7978846, %v1443_v44  ;;  %v1449_v51 = vadd.f32 %v1441_v39, %v2841_v15  ;;  %v1453_v52 = vmul.f32 0.7978846, %v1445_v48 }
 0x964   :  { %2349 = vtanh.f32 %v1450_v40  ;;  %v1454_v46 = vmul.f32 0.7978846, %v1446_v42  ;;  %v1456_v47 = vmul.f32 0.7978846, %v1448_v43  ;;  %v1410_v60 = vmul.f32 0.5, %v2827_v62 }
 0x965   :  { %2351 = vtanh.f32 %v1452_v41  ;;  %v1455_v50 = vmul.f32 0.7978846, %v1447_v45  ;;  %v1457_v53 = vmul.f32 0.7978846, %v1449_v51  ;;  %v1414_v61 = vmul.f32 0.5, %v1363_v9 }
 0x966   :  { %2353 = vtanh.f32 %v1454_v46  ;;  %v1412_v5 = vmul.f32 0.5, %v2829_v63  ;;  %v1416_v6 = vmul.f32 0.5, %v1406_v10  ;;  %v1411_v11 = vmul.f32 0.5, %v2831_v4 }
 0x967   :  { %2355 = vtanh.f32 %v1456_v47  ;;  %v1415_v18 = vmul.f32 0.5, %v2839_v14  ;;  %v1413_v9 = vmul.f32 0.5, %v2833_v3  ;;  %v1417_v22 = vmul.f32 0.5, %v2841_v15  ;;  %v1918_v3 = vld [vmem:[%s2892_s12] ss:$0 sm:$0xff] }
 0x968   :  { %2357 = vtanh.f32 %v1451_v49 }
 0x969   :  { %2359 = vtanh.f32 %v1455_v50 }
 0x96a   :  { %2361 = vtanh.f32 %v1453_v52 }
 0x96b   :  { %2363 = vtanh.f32 %v1457_v53 }
 0x96e   :  { %v2350_v54 = vpop.eup %2349 }
 0x96f   :  { %v2352_v55 = vpop.eup %2351  ;;  %v1466_v56 = vadd.f32 1.0, %v2350_v54 }
 0x970   :  { %v2354_v57 = vpop.eup %2353  ;;  %v1468_v58 = vadd.f32 1.0, %v2352_v55 }
 0x971   :  { %v2356_v59 = vpop.eup %2355  ;;  %v1470_v0 = vadd.f32 1.0, %v2354_v57  ;;  %v1474_v12 = vmul.f32 %v1466_v56, %v1410_v60 }
 0x972   :  { %v2358_v1 = vpop.eup %2357  ;;  %v1472_v7 = vadd.f32 1.0, %v2356_v59  ;;  %v1476_v30 = vmul.f32 %v1468_v58, %v1412_v5 }
 0x973   :  { %v2360_v8 = vpop.eup %2359  ;;  %v1467_v2 = vadd.f32 1.0, %v2358_v1  ;;  %v1478_v13 = vmul.f32 %v1470_v0, %v1414_v61 }
 0x974   :  { %v2362_v16 = vpop.eup %2361  ;;  %v1471_v19 = vadd.f32 1.0, %v2360_v8  ;;  %v1480_v21 = vmul.f32 %v1472_v7, %v1416_v6 }
 0x975   :  { %v2364_v62 = vpop.eup %2363  ;;  %v1469_v63 = vadd.f32 1.0, %v2362_v16  ;;  %v1482_v10 = vpack.c.bf16 %v1478_v13, %v1474_v12  ;;  %v1475_v23 = vmul.f32 %v1467_v2, %v1411_v11 }
 0x976   :  { %v1479_v24 = vmul.f32 %v1471_v19, %v1415_v18  ;;  %v1473_v25 = vadd.f32 1.0, %v2364_v62  ;;  %v1484_v4 = vpack.c.bf16 %v1480_v21, %v1476_v30 }
 0x977   :  { %v1477_v27 = vmul.f32 %v1469_v63, %v1413_v9 }
 0x978   :  { %v1483_v26 = vpack.c.bf16 %v1479_v24, %v1475_v23  ;;  %v1481_v28 = vmul.f32 %v1473_v25, %v1417_v22 }
 0x97a   :  { %1781 = vmatprep.mubr.bf16.mxu1 %v1483_v26  ;;  %v1485_v29 = vpack.c.bf16 %v1481_v28, %v1477_v27 }
 0x97b   :  { %1782 = vmatmul.mubr.bf16.vlgmr.msra.gmra.mrb[32].mxu1 %v1482_v10 }
 0x97c   :  { %1822 = vmatprep.mubr.bf16.mxu0 %v1485_v29 }
 0x97d   :  { %1823 = vmatmul.mubr.bf16.vlgmr.msra.gmra.mrb[20].mxu0 %v1484_v4 }
 0xa4e   :  { %v2001_v14 = vpop.f32.mrb[32].mxu1 }
 0xa4f   :  { %v2002_v15 = vpop.f32.mrb[33].mxu1 }
 0xa50   :  { %v2023_v31 = vpop.f32.mrb[20].mxu0  ;;  %v2003_v32 = vadd.f32 %v2002_v15, %v2001_v14  ;;  %v2004_v33 = vpop.f32.mrb[34].mxu1 }
 0xa51   :  { %v2024_v34 = vpop.f32.mrb[21].mxu0  ;;  %v2005_v35 = vpop.f32.mrb[35].mxu1 }
 0xa52   :  { %v1784_v36 = vadd.f32 %v2003_v32, %v1918_v3  ;;  %v2025_v37 = vadd.f32 %v2024_v34, %v2023_v31  ;;  %v2026_v38 = vpop.f32.mrb[22].mxu0  ;;  %v2006_v39 = vadd.f32 %v2005_v35, %v2004_v33 }
 0xa53   :  { %v2027_v40 = vpop.f32.mrb[23].mxu0 }
 0xa54   :  { %v1825_v41 = vadd.f32 %v2025_v37, %v1784_v36  ;;  %v1787_v42 = vadd.f32 %v2006_v39, %v1918_v3  ;;  %v2028_v43 = vadd.f32 %v2027_v40, %v2026_v38 }
 0xa56   :  { %v1831_v44 = vadd.f32 %v1825_v41, %v2701_v17  ;;  %v1828_v45 = vadd.f32 %v2028_v43, %v1787_v42 }
 0xa58   :  { %1833 = vst [vmem:[%s2893_s13] sm:$0xff] %v1831_v44  ;;  %v1832_v46 = vadd.f32 %v1828_v45, %v2706_v20 }
 0xa5a   :  { %1834 = vst [vmem:[%s2893_s13 + $0x8] sm:$0xff] %v1832_v46 }
 0xa5b   :  { %1839 = vsyncpa [#allocation3], 1 }
 0xa5c   :  { %1840 = vsyncpa [#allocation5], 1 }

</bundles_post_ra>
